<compile_context>
chip_gen: v7x
topology: tpu7x:2x2x1
jax: 0.10.0
libtpu: 0.0.40
codegen_flags: <defaults>
</compile_context>

<pallas_src>
import math
import functools

import jax
import jax.numpy as jnp
from jax.experimental import pallas as pl
from jax.experimental.pallas import tpu as pltpu


# ----------------------------- GRU kernel ------------------------------------

def _gru_kernel(xs_ref, wih_ref, bih_ref, whhT_ref, bhh_ref, enc_ref, *, gru_dim):
    """nn.GRU(input_size=1) recurrence for a tile of (batch*series) sequences.

    xs_ref : (T, BN_tile, 1) raw scalar inputs; gate inputs are formed in-kernel.
    """
    G = gru_dim
    T = xs_ref.shape[0]

    # Hoist loop-invariant weight reads out of the recurrence.
    wih = wih_ref[...]      # (1, 3G)  == GRU weight_ih_l0[:, 0] (gates r|z|n)
    bih = bih_ref[...]      # (1, 3G)
    whhT = whhT_ref[...]    # (G, 3G)  == weight_hh_l0.T
    bhh = bhh_ref[...]      # (1, 3G)

    def step(t, h):
        gi = xs_ref[t] * wih + bih                                       # (BNt, 3G)
        gh = jnp.dot(h, whhT, preferred_element_type=jnp.float32) + bhh  # (BNt, 3G)
        r = jax.nn.sigmoid(gi[:, :G] + gh[:, :G])
        z = jax.nn.sigmoid(gi[:, G:2 * G] + gh[:, G:2 * G])
        n = jnp.tanh(gi[:, 2 * G:] + r * gh[:, 2 * G:])
        return (1.0 - z) * n + z * h

    h0 = jnp.zeros(enc_ref.shape, jnp.float32)
    enc_ref[...] = jax.lax.fori_loop(0, T, step, h0, unroll=True)


# ----------------------------- fused kernel ----------------------------------

def _make_fused_kernel(window, series, dim, qk_dim, kernel_sizes):
    """attention + gcn_norm + x_to_inter_dim + all blocks + l_out, per batch."""
    WN = window * series
    NB = len(kernel_sizes)
    inv_sqrt_qk = 1.0 / math.sqrt(qk_dim)
    all_shifts = sorted({k - K // 2 for K in kernel_sizes for k in range(K)} - {0})

    def kernel(*refs):
        enc_ref, wqkT_ref, bqk_ref, x_ref, ew_ref, eb_ref = refs[:6]
        blk_refs = refs[6:6 + 4 * NB]
        lw_ref = refs[6 + 4 * NB]                    # (WN, dim, SH)
        lb_ref = refs[7 + 4 * NB]                    # (1, SH)
        o_ref = refs[8 + 4 * NB]                     # (1, 1, SH)

        # ---- latentCorrelation attention + gcn_norm (add_self_loops=False) ---
        e = enc_ref[0]                                                   # (S, G)
        qk = jnp.dot(e, wqkT_ref[...], preferred_element_type=jnp.float32) + bqk_ref[...]
        q = qk[:, :qk_dim]
        km = qk[:, qk_dim:]
        sc = jax.lax.dot_general(q, km, (((1,), (1,)), ((), ())),
                                 preferred_element_type=jnp.float32) * inv_sqrt_qk
        mx = jnp.max(sc, axis=-1, keepdims=True)
        ex = jnp.exp(sc - mx)
        w = ex / jnp.sum(ex, axis=-1, keepdims=True)                     # w[src, dst]
        wt = w.T                                                         # wt[dst, src]
        deg_dst = jnp.maximum(jnp.sum(wt, axis=1, keepdims=True), 1e-12)  # (S, 1)
        deg_src = jnp.maximum(jnp.sum(w, axis=0, keepdims=True), 1e-12)   # (1, S)
        adjn = jax.lax.rsqrt(deg_dst) * wt * jax.lax.rsqrt(deg_src)       # adjn[dst, src]
        adjn_b = jnp.broadcast_to(adjn, (window, series, series))

        # ---- 'same' temporal-conv zero-pad masks (hoisted, pre-broadcast) ----
        rows = jax.lax.broadcasted_iota(jnp.int32, (WN, 1), 0)
        pad_mask = {
            s: jnp.broadcast_to(
                jnp.logical_and(rows + s * series >= 0, rows + s * series < WN),
                (WN, dim))
            for s in all_shifts}

        # ---- x_to_inter_dim: Conv1d(in=1, out=dim, kernel=1) -----------------
        h = x_ref[0] * ew_ref[...] + eb_ref[...]                          # (WN, dim)

        # ---- SimpleBlockSingleGraph chain, activations resident on-chip ------
        for i in range(NB):
            wlinT_ref, bgcn_ref, convwT_ref, bconv_ref = blk_refs[4 * i:4 * i + 4]
            K = kernel_sizes[i]
            P = K // 2                                                    # 'same' pad
            hl = jnp.dot(h, wlinT_ref[...], preferred_element_type=jnp.float32)
            # GCN aggregation applied per timestep (rows are time-major), no
            # (WN, WN) block-diagonal matrix is ever materialized.
            hl3 = hl.reshape(window, series, dim)
            g3 = jnp.einsum('wst,wtd->wsd', adjn_b, hl3,
                            preferred_element_type=jnp.float32)
            g = g3.reshape(WN, dim) + bgcn_ref[...]
            # temporal conv: shifting one timestep == shifting `series` rows.
            acc = jnp.dot(g, convwT_ref[P], preferred_element_type=jnp.float32) + bconv_ref[...]
            for kk in range(K):
                s = kk - P
                if s == 0:
                    continue
                gk = pltpu.roll(g, shift=(-s * series) % WN, axis=0)      # gk[r] = g[r + s*S]
                gk = jnp.where(pad_mask[s], gk, 0.0)
                acc = acc + jnp.dot(gk, convwT_ref[kk], preferred_element_type=jnp.float32)
            # TODO(synk): if MXU-issue-bound, concat the K taps into one
            # (WN, K*dim) operand and use a single (K*dim, dim) matmul.
            h = jnp.where(acc > 0, acc, 0.01 * acc)                       # LeakyReLU(0.01)

        # ---- l_out folded into the epilogue: h never leaves VMEM -------------
        part = jnp.einsum('rad,rdo->rao', h[:, None, :], lw_ref[...],
                          preferred_element_type=jnp.float32)             # (WN, 1, SH)
        pred = jnp.sum(part[:, 0, :], axis=0, keepdims=True) + lb_ref[...]  # (1, SH)
        o_ref[0] = pred
        # TODO(synk): for large window*series, tile this epilogue (and the
        # (WN, dim, SH) l_out weight block) over WN instead of holding it whole.

    return kernel


# ------------------------------ helpers --------------------------------------

def _pick_tile(n, unit, cap):
    """Largest multiple of `unit` dividing n and <= cap; falls back to n."""
    t = (min(cap, n) // unit) * unit
    while t >= unit:
        if n % t == 0:
            return t
        t -= unit
    return n


# ------------------------------ forward --------------------------------------

def forward(x, params, *, window, series, horizon, dim, gru_dim, qk_dim):
    """x: (batch, window, series) -> (batch, horizon, series)."""
    B = x.shape[0]
    WN = window * series
    G = gru_dim
    BN = B * series
    SH = series * horizon
    lp = params["lcorr"]

    # ---- 1) GRU encodings, one scalar sequence per (batch, series) ----------
    xs = jnp.transpose(x, (1, 0, 2)).reshape(window, BN, 1).astype(jnp.float32)
    bn_tile = _pick_tile(BN, 8, 512)
    if BN >= 16 and BN // bn_tile < 2:
        # keep >=2 "parallel" grid steps so both v7x TensorCores get work
        bn_tile = _pick_tile(BN, 8, BN // 2)
    enc = pl.pallas_call(
        functools.partial(_gru_kernel, gru_dim=G),
        out_shape=jax.ShapeDtypeStruct((BN, G), jnp.float32),
        grid=(BN // bn_tile,),
        in_specs=[
            pl.BlockSpec((window, bn_tile, 1), lambda i: (0, i, 0)),
            pl.BlockSpec((1, 3 * G), lambda i: (0, 0)),
            pl.BlockSpec((1, 3 * G), lambda i: (0, 0)),
            pl.BlockSpec((G, 3 * G), lambda i: (0, 0)),
            pl.BlockSpec((1, 3 * G), lambda i: (0, 0)),
        ],
        out_specs=pl.BlockSpec((bn_tile, G), lambda i: (i, 0)),
        compiler_params=pltpu.CompilerParams(
            dimension_semantics=("parallel",),
            vmem_limit_bytes=48 * 1024 * 1024),
    )(xs, lp["w_ih_row"], lp["b_ih"], lp["whhT"], lp["b_hh"])
    enc = enc.reshape(B, series, G)

    # ---- 2) fused attention + gcn_norm + embedding + blocks + l_out ----------
    x3 = x.reshape(B, WN, 1).astype(jnp.float32)            # time-major node rows
    kernel_sizes = tuple(int(b["conv_wT"].shape[0]) for b in params["blocks"])

    args = [enc, lp["wqkT"], lp["bqk"], x3, params["embed_w"], params["embed_b"]]
    in_specs = [
        pl.BlockSpec((1, series, G), lambda b: (b, 0, 0)),
        pl.BlockSpec((G, 2 * qk_dim), lambda b: (0, 0)),
        pl.BlockSpec((1, 2 * qk_dim), lambda b: (0, 0)),
        pl.BlockSpec((1, WN, 1), lambda b: (b, 0, 0)),
        pl.BlockSpec((1, dim), lambda b: (0, 0)),
        pl.BlockSpec((1, dim), lambda b: (0, 0)),
    ]
    # TODO(synk): set pipeline_mode=pl.Buffered(1) on the constant-index weight
    # specs below (halves their VMEM footprint on v7x) once verified on target jax.
    for blk in params["blocks"]:
        K = int(blk["conv_wT"].shape[0])
        args += [blk["gcn_wT"], blk["gcn_b"], blk["conv_wT"], blk["conv_b"]]
        in_specs += [
            pl.BlockSpec((dim, dim), lambda b: (0, 0)),
            pl.BlockSpec((1, dim), lambda b: (0, 0)),
            pl.BlockSpec((K, dim, dim), lambda b: (0, 0, 0)),
            pl.BlockSpec((1, dim), lambda b: (0, 0)),
        ]
    args += [params["lout_w3"], params["lout_b"]]
    in_specs += [
        pl.BlockSpec((WN, dim, SH), lambda b: (0, 0, 0)),
        pl.BlockSpec((1, SH), lambda b: (0, 0)),
    ]
    pred = pl.pallas_call(
        _make_fused_kernel(window, series, dim, qk_dim, kernel_sizes),
        out_shape=jax.ShapeDtypeStruct((B, 1, SH), jnp.float32),
        grid=(B,),
        in_specs=in_specs,
        out_specs=pl.BlockSpec((1, 1, SH), lambda b: (b, 0, 0)),
        compiler_params=pltpu.CompilerParams(
            dimension_semantics=("parallel",),
            vmem_limit_bytes=48 * 1024 * 1024),
    )(*args)
    # TODO(synk): for v6e MXU occupancy, block this grid over several batches
    # per step and batch the per-graph matmuls.
    return pred.reshape(B, horizon, series)


# ------------------------------ parameters ------------------------------------
# Weights are generated directly in kernel-friendly (pre-transposed) layouts.
# Correspondence to the PyTorch module:
#   w_ih_row = GRU.weight_ih_l0[:, 0] as (1, 3G)   (gates packed r|z|n)
#   whhT     = GRU.weight_hh_l0.T                   (G, 3G)
#   wqkT     = cat([wq.weight.T, wk.weight.T], 1)   (G, 2*qk)
#   embed_w  = x_to_inter_dim.weight[:, 0, 0]       (1, dim)
#   gcn_wT   = gcnConv.lin.weight.T                 (dim, dim)
#   conv_wT  = conv1d.weight.permute(2, 1, 0)       (K, dim_in, dim_out)
#   lout_w3  = l_out.weight.reshape(SH, WN, dim).permute(1, 2, 0)  (WN, dim, SH)

def init_params(key, *, window, series, horizon, dim, gru_dim, qk_dim,
                num_blocks, temporal_kernel):
    keys = jax.random.split(key, 10 + 4 * num_blocks)

    def nrm(k, shape, scale=0.1):
        return (scale * jax.random.normal(k, shape)).astype(jnp.float32)

    WN = window * series
    SH = series * horizon
    p = {
        "lcorr": {
            "w_ih_row": nrm(keys[0], (1, 3 * gru_dim)),
            "whhT": nrm(keys[1], (gru_dim, 3 * gru_dim)),
            "b_ih": nrm(keys[2], (1, 3 * gru_dim)),
            "b_hh": nrm(keys[3], (1, 3 * gru_dim)),
            "wqkT": nrm(keys[4], (gru_dim, 2 * qk_dim)),
            "bqk": nrm(keys[5], (1, 2 * qk_dim)),
        },
        "embed_w": nrm(keys[6], (1, dim)),
        "embed_b": nrm(keys[7], (1, dim)),
        "blocks": [],
        "lout_w3": nrm(keys[8], (WN, dim, SH), scale=0.02),
        "lout_b": nrm(keys[9], (1, SH)),
    }
    for i in range(num_blocks):
        K = temporal_kernel + 2 * i
        k0, k1, k2, k3 = keys[10 + 4 * i: 14 + 4 * i]
        p["blocks"].append({
            "gcn_wT": nrm(k0, (dim, dim)),
            "gcn_b": nrm(k1, (1, dim)),
            "conv_wT": nrm(k2, (K, dim, dim)),
            "conv_b": nrm(k3, (1, dim)),
        })
    return p


# --------------------------------- main ---------------------------------------

if __name__ == "__main__":
    BATCH, WINDOW, SERIES, HORIZON = 2, 8, 4, 3
    NUM_BLOCKS, DIM, GRU_DIM, QK_DIM, TK = 2, 32, 32, 16, 3

    key = jax.random.PRNGKey(0)
    kx, kp = jax.random.split(key)
    x = jax.random.normal(kx, (BATCH, WINDOW, SERIES), dtype=jnp.float32)
    params = init_params(kp, window=WINDOW, series=SERIES, horizon=HORIZON, dim=DIM,
                         gru_dim=GRU_DIM, qk_dim=QK_DIM, num_blocks=NUM_BLOCKS,
                         temporal_kernel=TK)

    fwd = jax.jit(functools.partial(forward, window=WINDOW, series=SERIES,
                                    horizon=HORIZON, dim=DIM,
                                    gru_dim=GRU_DIM, qk_dim=QK_DIM))
    out = fwd(x, params)
    jax.block_until_ready(out)
    assert out.shape == (BATCH, HORIZON, SERIES)
    assert bool(jnp.all(jnp.isfinite(out)))
    print("KERNEL_OK")
</pallas_src>

<mosaic_0001>
module attributes {stable_mosaic.version = 11 : i64} {
  func.func @_gru_kernel(%arg0: i32, %arg1: memref<8x8x1xf32, #tpu.memory_space<vmem>>, %arg2: memref<1x96xf32, #tpu.memory_space<vmem>>, %arg3: memref<1x96xf32, #tpu.memory_space<vmem>>, %arg4: memref<32x96xf32, #tpu.memory_space<vmem>>, %arg5: memref<1x96xf32, #tpu.memory_space<vmem>>, %arg6: memref<8x32xf32, #tpu.memory_space<vmem>>) attributes {dimension_semantics = [#tpu.dimension_semantics<parallel>], iteration_bounds = array<i64: 1>, scalar_prefetch = 0 : i64, scratch_operands = 0 : i64, tpu.core_type = #tpu.core_type<tc>, window_params = [{transform_indices = @transform_0, window_bounds = array<i64: 8, 8, 1>}, {pipeline_mode = #tpu.pipeline_mode<synchronous>, transform_indices = @transform_1, window_bounds = array<i64: 1, 96>}, {pipeline_mode = #tpu.pipeline_mode<synchronous>, transform_indices = @transform_2, window_bounds = array<i64: 1, 96>}, {pipeline_mode = #tpu.pipeline_mode<synchronous>, transform_indices = @transform_3, window_bounds = array<i64: 32, 96>}, {pipeline_mode = #tpu.pipeline_mode<synchronous>, transform_indices = @transform_4, window_bounds = array<i64: 1, 96>}, {transform_indices = @transform_5, window_bounds = array<i64: 8, 32>}]} {
    %c0 = arith.constant 0 : index
    %c0_0 = arith.constant 0 : index
    %0 = vector.load %arg2[%c0, %c0_0] : memref<1x96xf32, #tpu.memory_space<vmem>>, vector<1x96xf32>
    %c0_1 = arith.constant 0 : index
    %c0_2 = arith.constant 0 : index
    %1 = vector.load %arg3[%c0_1, %c0_2] : memref<1x96xf32, #tpu.memory_space<vmem>>, vector<1x96xf32>
    %c0_3 = arith.constant 0 : index
    %c0_4 = arith.constant 0 : index
    %2 = vector.load %arg4[%c0_3, %c0_4] : memref<32x96xf32, #tpu.memory_space<vmem>>, vector<32x96xf32>
    %c0_5 = arith.constant 0 : index
    %c0_6 = arith.constant 0 : index
    %3 = vector.load %arg5[%c0_5, %c0_6] : memref<1x96xf32, #tpu.memory_space<vmem>>, vector<1x96xf32>
    %cst = arith.constant 0.000000e+00 : f32
    %4 = vector.broadcast %cst : f32 to vector<8x32xf32>
    %c0_i32 = arith.constant 0 : i32
    %5 = arith.index_cast %c0_i32 : i32 to index
    %c0_7 = arith.constant 0 : index
    %c0_8 = arith.constant 0 : index
    %6 = vector.load %arg1[%5, %c0_7, %c0_8] : memref<8x8x1xf32, #tpu.memory_space<vmem>>, vector<1x8x1xf32>
    %7 = vector.shape_cast %6 : vector<1x8x1xf32> to vector<8x1xf32>
    %8 = vector.broadcast %7 : vector<8x1xf32> to vector<8x96xf32>
    %9 = vector.broadcast %0 : vector<1x96xf32> to vector<8x96xf32>
    %10 = arith.mulf %8, %9 : vector<8x96xf32>
    %11 = vector.broadcast %1 : vector<1x96xf32> to vector<8x96xf32>
    %12 = arith.addf %10, %11 : vector<8x96xf32>
    %cst_9 = arith.constant dense<0.000000e+00> : vector<8x96xf32>
    %13 = tpu.matmul %4, %2, %cst_9 {dimension_numbers = #tpu.dot_dimension_numbers<[1], [0], [0], [1], [0, 0, 1, 1], [], []>} : vector<8x32xf32>, vector<32x96xf32>, vector<8x96xf32> -> vector<8x96xf32>
    %14 = vector.broadcast %3 : vector<1x96xf32> to vector<8x96xf32>
    %15 = arith.addf %13, %14 : vector<8x96xf32>
    %16 = vector.extract_strided_slice %12 {offsets = [0, 0], sizes = [8, 32], strides = [1, 1]} : vector<8x96xf32> to vector<8x32xf32>
    %17 = vector.extract_strided_slice %15 {offsets = [0, 0], sizes = [8, 32], strides = [1, 1]} : vector<8x96xf32> to vector<8x32xf32>
    %18 = arith.addf %16, %17 : vector<8x32xf32>
    %19 = arith.negf %18 : vector<8x32xf32>
    %20 = math.exp %19 : vector<8x32xf32>
    %cst_10 = arith.constant 1.000000e+00 : f32
    %21 = vector.broadcast %cst_10 : f32 to vector<8x32xf32>
    %22 = arith.addf %21, %20 : vector<8x32xf32>
    %23 = arith.divf %21, %22 : vector<8x32xf32>
    %24 = vector.extract_strided_slice %12 {offsets = [0, 32], sizes = [8, 32], strides = [1, 1]} : vector<8x96xf32> to vector<8x32xf32>
    %25 = vector.extract_strided_slice %15 {offsets = [0, 32], sizes = [8, 32], strides = [1, 1]} : vector<8x96xf32> to vector<8x32xf32>
    %26 = arith.addf %24, %25 : vector<8x32xf32>
    %27 = arith.negf %26 : vector<8x32xf32>
    %28 = math.exp %27 : vector<8x32xf32>
    %cst_11 = arith.constant 1.000000e+00 : f32
    %29 = vector.broadcast %cst_11 : f32 to vector<8x32xf32>
    %30 = arith.addf %29, %28 : vector<8x32xf32>
    %31 = arith.divf %29, %30 : vector<8x32xf32>
    %32 = vector.extract_strided_slice %12 {offsets = [0, 64], sizes = [8, 32], strides = [1, 1]} : vector<8x96xf32> to vector<8x32xf32>
    %33 = vector.extract_strided_slice %15 {offsets = [0, 64], sizes = [8, 32], strides = [1, 1]} : vector<8x96xf32> to vector<8x32xf32>
    %34 = arith.mulf %23, %33 : vector<8x32xf32>
    %35 = arith.addf %32, %34 : vector<8x32xf32>
    %36 = math.tanh %35 : vector<8x32xf32>
    %cst_12 = arith.constant 1.000000e+00 : f32
    %37 = vector.broadcast %cst_12 : f32 to vector<8x32xf32>
    %38 = arith.subf %37, %31 : vector<8x32xf32>
    %39 = arith.mulf %38, %36 : vector<8x32xf32>
    %40 = arith.mulf %31, %4 : vector<8x32xf32>
    %41 = arith.addf %39, %40 : vector<8x32xf32>
    %c1_i32 = arith.constant 1 : i32
    %42 = arith.index_cast %c1_i32 : i32 to index
    %c0_13 = arith.constant 0 : index
    %c0_14 = arith.constant 0 : index
    %43 = vector.load %arg1[%42, %c0_13, %c0_14] : memref<8x8x1xf32, #tpu.memory_space<vmem>>, vector<1x8x1xf32>
    %44 = vector.shape_cast %43 : vector<1x8x1xf32> to vector<8x1xf32>
    %45 = vector.broadcast %44 : vector<8x1xf32> to vector<8x96xf32>
    %46 = vector.broadcast %0 : vector<1x96xf32> to vector<8x96xf32>
    %47 = arith.mulf %45, %46 : vector<8x96xf32>
    %48 = vector.broadcast %1 : vector<1x96xf32> to vector<8x96xf32>
    %49 = arith.addf %47, %48 : vector<8x96xf32>
    %cst_15 = arith.constant dense<0.000000e+00> : vector<8x96xf32>
    %50 = tpu.matmul %41, %2, %cst_15 {dimension_numbers = #tpu.dot_dimension_numbers<[1], [0], [0], [1], [0, 0, 1, 1], [], []>} : vector<8x32xf32>, vector<32x96xf32>, vector<8x96xf32> -> vector<8x96xf32>
    %51 = vector.broadcast %3 : vector<1x96xf32> to vector<8x96xf32>
    %52 = arith.addf %50, %51 : vector<8x96xf32>
    %53 = vector.extract_strided_slice %49 {offsets = [0, 0], sizes = [8, 32], strides = [1, 1]} : vector<8x96xf32> to vector<8x32xf32>
    %54 = vector.extract_strided_slice %52 {offsets = [0, 0], sizes = [8, 32], strides = [1, 1]} : vector<8x96xf32> to vector<8x32xf32>
    %55 = arith.addf %53, %54 : vector<8x32xf32>
    %56 = arith.negf %55 : vector<8x32xf32>
    %57 = math.exp %56 : vector<8x32xf32>
    %cst_16 = arith.constant 1.000000e+00 : f32
    %58 = vector.broadcast %cst_16 : f32 to vector<8x32xf32>
    %59 = arith.addf %58, %57 : vector<8x32xf32>
    %60 = arith.divf %58, %59 : vector<8x32xf32>
    %61 = vector.extract_strided_slice %49 {offsets = [0, 32], sizes = [8, 32], strides = [1, 1]} : vector<8x96xf32> to vector<8x32xf32>
    %62 = vector.extract_strided_slice %52 {offsets = [0, 32], sizes = [8, 32], strides = [1, 1]} : vector<8x96xf32> to vector<8x32xf32>
    %63 = arith.addf %61, %62 : vector<8x32xf32>
    %64 = arith.negf %63 : vector<8x32xf32>
    %65 = math.exp %64 : vector<8x32xf32>
    %cst_17 = arith.constant 1.000000e+00 : f32
    %66 = vector.broadcast %cst_17 : f32 to vector<8x32xf32>
    %67 = arith.addf %66, %65 : vector<8x32xf32>
    %68 = arith.divf %66, %67 : vector<8x32xf32>
    %69 = vector.extract_strided_slice %49 {offsets = [0, 64], sizes = [8, 32], strides = [1, 1]} : vector<8x96xf32> to vector<8x32xf32>
    %70 = vector.extract_strided_slice %52 {offsets = [0, 64], sizes = [8, 32], strides = [1, 1]} : vector<8x96xf32> to vector<8x32xf32>
    %71 = arith.mulf %60, %70 : vector<8x32xf32>
    %72 = arith.addf %69, %71 : vector<8x32xf32>
    %73 = math.tanh %72 : vector<8x32xf32>
    %cst_18 = arith.constant 1.000000e+00 : f32
    %74 = vector.broadcast %cst_18 : f32 to vector<8x32xf32>
    %75 = arith.subf %74, %68 : vector<8x32xf32>
    %76 = arith.mulf %75, %73 : vector<8x32xf32>
    %77 = arith.mulf %68, %41 : vector<8x32xf32>
    %78 = arith.addf %76, %77 : vector<8x32xf32>
    %c2_i32 = arith.constant 2 : i32
    %79 = arith.index_cast %c2_i32 : i32 to index
    %c0_19 = arith.constant 0 : index
    %c0_20 = arith.constant 0 : index
    %80 = vector.load %arg1[%79, %c0_19, %c0_20] : memref<8x8x1xf32, #tpu.memory_space<vmem>>, vector<1x8x1xf32>
    %81 = vector.shape_cast %80 : vector<1x8x1xf32> to vector<8x1xf32>
    %82 = vector.broadcast %81 : vector<8x1xf32> to vector<8x96xf32>
    %83 = vector.broadcast %0 : vector<1x96xf32> to vector<8x96xf32>
    %84 = arith.mulf %82, %83 : vector<8x96xf32>
    %85 = vector.broadcast %1 : vector<1x96xf32> to vector<8x96xf32>
    %86 = arith.addf %84, %85 : vector<8x96xf32>
    %cst_21 = arith.constant dense<0.000000e+00> : vector<8x96xf32>
    %87 = tpu.matmul %78, %2, %cst_21 {dimension_numbers = #tpu.dot_dimension_numbers<[1], [0], [0], [1], [0, 0, 1, 1], [], []>} : vector<8x32xf32>, vector<32x96xf32>, vector<8x96xf32> -> vector<8x96xf32>
    %88 = vector.broadcast %3 : vector<1x96xf32> to vector<8x96xf32>
    %89 = arith.addf %87, %88 : vector<8x96xf32>
    %90 = vector.extract_strided_slice %86 {offsets = [0, 0], sizes = [8, 32], strides = [1, 1]} : vector<8x96xf32> to vector<8x32xf32>
    %91 = vector.extract_strided_slice %89 {offsets = [0, 0], sizes = [8, 32], strides = [1, 1]} : vector<8x96xf32> to vector<8x32xf32>
    %92 = arith.addf %90, %91 : vector<8x32xf32>
    %93 = arith.negf %92 : vector<8x32xf32>
    %94 = math.exp %93 : vector<8x32xf32>
    %cst_22 = arith.constant 1.000000e+00 : f32
    %95 = vector.broadcast %cst_22 : f32 to vector<8x32xf32>
    %96 = arith.addf %95, %94 : vector<8x32xf32>
    %97 = arith.divf %95, %96 : vector<8x32xf32>
    %98 = vector.extract_strided_slice %86 {offsets = [0, 32], sizes = [8, 32], strides = [1, 1]} : vector<8x96xf32> to vector<8x32xf32>
    %99 = vector.extract_strided_slice %89 {offsets = [0, 32], sizes = [8, 32], strides = [1, 1]} : vector<8x96xf32> to vector<8x32xf32>
    %100 = arith.addf %98, %99 : vector<8x32xf32>
    %101 = arith.negf %100 : vector<8x32xf32>
    %102 = math.exp %101 : vector<8x32xf32>
    %cst_23 = arith.constant 1.000000e+00 : f32
    %103 = vector.broadcast %cst_23 : f32 to vector<8x32xf32>
    %104 = arith.addf %103, %102 : vector<8x32xf32>
    %105 = arith.divf %103, %104 : vector<8x32xf32>
    %106 = vector.extract_strided_slice %86 {offsets = [0, 64], sizes = [8, 32], strides = [1, 1]} : vector<8x96xf32> to vector<8x32xf32>
    %107 = vector.extract_strided_slice %89 {offsets = [0, 64], sizes = [8, 32], strides = [1, 1]} : vector<8x96xf32> to vector<8x32xf32>
    %108 = arith.mulf %97, %107 : vector<8x32xf32>
    %109 = arith.addf %106, %108 : vector<8x32xf32>
    %110 = math.tanh %109 : vector<8x32xf32>
    %cst_24 = arith.constant 1.000000e+00 : f32
    %111 = vector.broadcast %cst_24 : f32 to vector<8x32xf32>
    %112 = arith.subf %111, %105 : vector<8x32xf32>
    %113 = arith.mulf %112, %110 : vector<8x32xf32>
    %114 = arith.mulf %105, %78 : vector<8x32xf32>
    %115 = arith.addf %113, %114 : vector<8x32xf32>
    %c3_i32 = arith.constant 3 : i32
    %116 = arith.index_cast %c3_i32 : i32 to index
    %c0_25 = arith.constant 0 : index
    %c0_26 = arith.constant 0 : index
    %117 = vector.load %arg1[%116, %c0_25, %c0_26] : memref<8x8x1xf32, #tpu.memory_space<vmem>>, vector<1x8x1xf32>
    %118 = vector.shape_cast %117 : vector<1x8x1xf32> to vector<8x1xf32>
    %119 = vector.broadcast %118 : vector<8x1xf32> to vector<8x96xf32>
    %120 = vector.broadcast %0 : vector<1x96xf32> to vector<8x96xf32>
    %121 = arith.mulf %119, %120 : vector<8x96xf32>
    %122 = vector.broadcast %1 : vector<1x96xf32> to vector<8x96xf32>
    %123 = arith.addf %121, %122 : vector<8x96xf32>
    %cst_27 = arith.constant dense<0.000000e+00> : vector<8x96xf32>
    %124 = tpu.matmul %115, %2, %cst_27 {dimension_numbers = #tpu.dot_dimension_numbers<[1], [0], [0], [1], [0, 0, 1, 1], [], []>} : vector<8x32xf32>, vector<32x96xf32>, vector<8x96xf32> -> vector<8x96xf32>
    %125 = vector.broadcast %3 : vector<1x96xf32> to vector<8x96xf32>
    %126 = arith.addf %124, %125 : vector<8x96xf32>
    %127 = vector.extract_strided_slice %123 {offsets = [0, 0], sizes = [8, 32], strides = [1, 1]} : vector<8x96xf32> to vector<8x32xf32>
    %128 = vector.extract_strided_slice %126 {offsets = [0, 0], sizes = [8, 32], strides = [1, 1]} : vector<8x96xf32> to vector<8x32xf32>
    %129 = arith.addf %127, %128 : vector<8x32xf32>
    %130 = arith.negf %129 : vector<8x32xf32>
    %131 = math.exp %130 : vector<8x32xf32>
    %cst_28 = arith.constant 1.000000e+00 : f32
    %132 = vector.broadcast %cst_28 : f32 to vector<8x32xf32>
    %133 = arith.addf %132, %131 : vector<8x32xf32>
    %134 = arith.divf %132, %133 : vector<8x32xf32>
    %135 = vector.extract_strided_slice %123 {offsets = [0, 32], sizes = [8, 32], strides = [1, 1]} : vector<8x96xf32> to vector<8x32xf32>
    %136 = vector.extract_strided_slice %126 {offsets = [0, 32], sizes = [8, 32], strides = [1, 1]} : vector<8x96xf32> to vector<8x32xf32>
    %137 = arith.addf %135, %136 : vector<8x32xf32>
    %138 = arith.negf %137 : vector<8x32xf32>
    %139 = math.exp %138 : vector<8x32xf32>
    %cst_29 = arith.constant 1.000000e+00 : f32
    %140 = vector.broadcast %cst_29 : f32 to vector<8x32xf32>
    %141 = arith.addf %140, %139 : vector<8x32xf32>
    %142 = arith.divf %140, %141 : vector<8x32xf32>
    %143 = vector.extract_strided_slice %123 {offsets = [0, 64], sizes = [8, 32], strides = [1, 1]} : vector<8x96xf32> to vector<8x32xf32>
    %144 = vector.extract_strided_slice %126 {offsets = [0, 64], sizes = [8, 32], strides = [1, 1]} : vector<8x96xf32> to vector<8x32xf32>
    %145 = arith.mulf %134, %144 : vector<8x32xf32>
    %146 = arith.addf %143, %145 : vector<8x32xf32>
    %147 = math.tanh %146 : vector<8x32xf32>
    %cst_30 = arith.constant 1.000000e+00 : f32
    %148 = vector.broadcast %cst_30 : f32 to vector<8x32xf32>
    %149 = arith.subf %148, %142 : vector<8x32xf32>
    %150 = arith.mulf %149, %147 : vector<8x32xf32>
    %151 = arith.mulf %142, %115 : vector<8x32xf32>
    %152 = arith.addf %150, %151 : vector<8x32xf32>
    %c4_i32 = arith.constant 4 : i32
    %153 = arith.index_cast %c4_i32 : i32 to index
    %c0_31 = arith.constant 0 : index
    %c0_32 = arith.constant 0 : index
    %154 = vector.load %arg1[%153, %c0_31, %c0_32] : memref<8x8x1xf32, #tpu.memory_space<vmem>>, vector<1x8x1xf32>
    %155 = vector.shape_cast %154 : vector<1x8x1xf32> to vector<8x1xf32>
    %156 = vector.broadcast %155 : vector<8x1xf32> to vector<8x96xf32>
    %157 = vector.broadcast %0 : vector<1x96xf32> to vector<8x96xf32>
    %158 = arith.mulf %156, %157 : vector<8x96xf32>
    %159 = vector.broadcast %1 : vector<1x96xf32> to vector<8x96xf32>
    %160 = arith.addf %158, %159 : vector<8x96xf32>
    %cst_33 = arith.constant dense<0.000000e+00> : vector<8x96xf32>
    %161 = tpu.matmul %152, %2, %cst_33 {dimension_numbers = #tpu.dot_dimension_numbers<[1], [0], [0], [1], [0, 0, 1, 1], [], []>} : vector<8x32xf32>, vector<32x96xf32>, vector<8x96xf32> -> vector<8x96xf32>
    %162 = vector.broadcast %3 : vector<1x96xf32> to vector<8x96xf32>
    %163 = arith.addf %161, %162 : vector<8x96xf32>
    %164 = vector.extract_strided_slice %160 {offsets = [0, 0], sizes = [8, 32], strides = [1, 1]} : vector<8x96xf32> to vector<8x32xf32>
    %165 = vector.extract_strided_slice %163 {offsets = [0, 0], sizes = [8, 32], strides = [1, 1]} : vector<8x96xf32> to vector<8x32xf32>
    %166 = arith.addf %164, %165 : vector<8x32xf32>
    %167 = arith.negf %166 : vector<8x32xf32>
    %168 = math.exp %167 : vector<8x32xf32>
    %cst_34 = arith.constant 1.000000e+00 : f32
    %169 = vector.broadcast %cst_34 : f32 to vector<8x32xf32>
    %170 = arith.addf %169, %168 : vector<8x32xf32>
    %171 = arith.divf %169, %170 : vector<8x32xf32>
    %172 = vector.extract_strided_slice %160 {offsets = [0, 32], sizes = [8, 32], strides = [1, 1]} : vector<8x96xf32> to vector<8x32xf32>
    %173 = vector.extract_strided_slice %163 {offsets = [0, 32], sizes = [8, 32], strides = [1, 1]} : vector<8x96xf32> to vector<8x32xf32>
    %174 = arith.addf %172, %173 : vector<8x32xf32>
    %175 = arith.negf %174 : vector<8x32xf32>
    %176 = math.exp %175 : vector<8x32xf32>
    %cst_35 = arith.constant 1.000000e+00 : f32
    %177 = vector.broadcast %cst_35 : f32 to vector<8x32xf32>
    %178 = arith.addf %177, %176 : vector<8x32xf32>
    %179 = arith.divf %177, %178 : vector<8x32xf32>
    %180 = vector.extract_strided_slice %160 {offsets = [0, 64], sizes = [8, 32], strides = [1, 1]} : vector<8x96xf32> to vector<8x32xf32>
    %181 = vector.extract_strided_slice %163 {offsets = [0, 64], sizes = [8, 32], strides = [1, 1]} : vector<8x96xf32> to vector<8x32xf32>
    %182 = arith.mulf %171, %181 : vector<8x32xf32>
    %183 = arith.addf %180, %182 : vector<8x32xf32>
    %184 = math.tanh %183 : vector<8x32xf32>
    %cst_36 = arith.constant 1.000000e+00 : f32
    %185 = vector.broadcast %cst_36 : f32 to vector<8x32xf32>
    %186 = arith.subf %185, %179 : vector<8x32xf32>
    %187 = arith.mulf %186, %184 : vector<8x32xf32>
    %188 = arith.mulf %179, %152 : vector<8x32xf32>
    %189 = arith.addf %187, %188 : vector<8x32xf32>
    %c5_i32 = arith.constant 5 : i32
    %190 = arith.index_cast %c5_i32 : i32 to index
    %c0_37 = arith.constant 0 : index
    %c0_38 = arith.constant 0 : index
    %191 = vector.load %arg1[%190, %c0_37, %c0_38] : memref<8x8x1xf32, #tpu.memory_space<vmem>>, vector<1x8x1xf32>
    %192 = vector.shape_cast %191 : vector<1x8x1xf32> to vector<8x1xf32>
    %193 = vector.broadcast %192 : vector<8x1xf32> to vector<8x96xf32>
    %194 = vector.broadcast %0 : vector<1x96xf32> to vector<8x96xf32>
    %195 = arith.mulf %193, %194 : vector<8x96xf32>
    %196 = vector.broadcast %1 : vector<1x96xf32> to vector<8x96xf32>
    %197 = arith.addf %195, %196 : vector<8x96xf32>
    %cst_39 = arith.constant dense<0.000000e+00> : vector<8x96xf32>
    %198 = tpu.matmul %189, %2, %cst_39 {dimension_numbers = #tpu.dot_dimension_numbers<[1], [0], [0], [1], [0, 0, 1, 1], [], []>} : vector<8x32xf32>, vector<32x96xf32>, vector<8x96xf32> -> vector<8x96xf32>
    %199 = vector.broadcast %3 : vector<1x96xf32> to vector<8x96xf32>
    %200 = arith.addf %198, %199 : vector<8x96xf32>
    %201 = vector.extract_strided_slice %197 {offsets = [0, 0], sizes = [8, 32], strides = [1, 1]} : vector<8x96xf32> to vector<8x32xf32>
    %202 = vector.extract_strided_slice %200 {offsets = [0, 0], sizes = [8, 32], strides = [1, 1]} : vector<8x96xf32> to vector<8x32xf32>
    %203 = arith.addf %201, %202 : vector<8x32xf32>
    %204 = arith.negf %203 : vector<8x32xf32>
    %205 = math.exp %204 : vector<8x32xf32>
    %cst_40 = arith.constant 1.000000e+00 : f32
    %206 = vector.broadcast %cst_40 : f32 to vector<8x32xf32>
    %207 = arith.addf %206, %205 : vector<8x32xf32>
    %208 = arith.divf %206, %207 : vector<8x32xf32>
    %209 = vector.extract_strided_slice %197 {offsets = [0, 32], sizes = [8, 32], strides = [1, 1]} : vector<8x96xf32> to vector<8x32xf32>
    %210 = vector.extract_strided_slice %200 {offsets = [0, 32], sizes = [8, 32], strides = [1, 1]} : vector<8x96xf32> to vector<8x32xf32>
    %211 = arith.addf %209, %210 : vector<8x32xf32>
    %212 = arith.negf %211 : vector<8x32xf32>
    %213 = math.exp %212 : vector<8x32xf32>
    %cst_41 = arith.constant 1.000000e+00 : f32
    %214 = vector.broadcast %cst_41 : f32 to vector<8x32xf32>
    %215 = arith.addf %214, %213 : vector<8x32xf32>
    %216 = arith.divf %214, %215 : vector<8x32xf32>
    %217 = vector.extract_strided_slice %197 {offsets = [0, 64], sizes = [8, 32], strides = [1, 1]} : vector<8x96xf32> to vector<8x32xf32>
    %218 = vector.extract_strided_slice %200 {offsets = [0, 64], sizes = [8, 32], strides = [1, 1]} : vector<8x96xf32> to vector<8x32xf32>
    %219 = arith.mulf %208, %218 : vector<8x32xf32>
    %220 = arith.addf %217, %219 : vector<8x32xf32>
    %221 = math.tanh %220 : vector<8x32xf32>
    %cst_42 = arith.constant 1.000000e+00 : f32
    %222 = vector.broadcast %cst_42 : f32 to vector<8x32xf32>
    %223 = arith.subf %222, %216 : vector<8x32xf32>
    %224 = arith.mulf %223, %221 : vector<8x32xf32>
    %225 = arith.mulf %216, %189 : vector<8x32xf32>
    %226 = arith.addf %224, %225 : vector<8x32xf32>
    %c6_i32 = arith.constant 6 : i32
    %227 = arith.index_cast %c6_i32 : i32 to index
    %c0_43 = arith.constant 0 : index
    %c0_44 = arith.constant 0 : index
    %228 = vector.load %arg1[%227, %c0_43, %c0_44] : memref<8x8x1xf32, #tpu.memory_space<vmem>>, vector<1x8x1xf32>
    %229 = vector.shape_cast %228 : vector<1x8x1xf32> to vector<8x1xf32>
    %230 = vector.broadcast %229 : vector<8x1xf32> to vector<8x96xf32>
    %231 = vector.broadcast %0 : vector<1x96xf32> to vector<8x96xf32>
    %232 = arith.mulf %230, %231 : vector<8x96xf32>
    %233 = vector.broadcast %1 : vector<1x96xf32> to vector<8x96xf32>
    %234 = arith.addf %232, %233 : vector<8x96xf32>
    %cst_45 = arith.constant dense<0.000000e+00> : vector<8x96xf32>
    %235 = tpu.matmul %226, %2, %cst_45 {dimension_numbers = #tpu.dot_dimension_numbers<[1], [0], [0], [1], [0, 0, 1, 1], [], []>} : vector<8x32xf32>, vector<32x96xf32>, vector<8x96xf32> -> vector<8x96xf32>
    %236 = vector.broadcast %3 : vector<1x96xf32> to vector<8x96xf32>
    %237 = arith.addf %235, %236 : vector<8x96xf32>
    %238 = vector.extract_strided_slice %234 {offsets = [0, 0], sizes = [8, 32], strides = [1, 1]} : vector<8x96xf32> to vector<8x32xf32>
    %239 = vector.extract_strided_slice %237 {offsets = [0, 0], sizes = [8, 32], strides = [1, 1]} : vector<8x96xf32> to vector<8x32xf32>
    %240 = arith.addf %238, %239 : vector<8x32xf32>
    %241 = arith.negf %240 : vector<8x32xf32>
    %242 = math.exp %241 : vector<8x32xf32>
    %cst_46 = arith.constant 1.000000e+00 : f32
    %243 = vector.broadcast %cst_46 : f32 to vector<8x32xf32>
    %244 = arith.addf %243, %242 : vector<8x32xf32>
    %245 = arith.divf %243, %244 : vector<8x32xf32>
    %246 = vector.extract_strided_slice %234 {offsets = [0, 32], sizes = [8, 32], strides = [1, 1]} : vector<8x96xf32> to vector<8x32xf32>
    %247 = vector.extract_strided_slice %237 {offsets = [0, 32], sizes = [8, 32], strides = [1, 1]} : vector<8x96xf32> to vector<8x32xf32>
    %248 = arith.addf %246, %247 : vector<8x32xf32>
    %249 = arith.negf %248 : vector<8x32xf32>
    %250 = math.exp %249 : vector<8x32xf32>
    %cst_47 = arith.constant 1.000000e+00 : f32
    %251 = vector.broadcast %cst_47 : f32 to vector<8x32xf32>
    %252 = arith.addf %251, %250 : vector<8x32xf32>
    %253 = arith.divf %251, %252 : vector<8x32xf32>
    %254 = vector.extract_strided_slice %234 {offsets = [0, 64], sizes = [8, 32], strides = [1, 1]} : vector<8x96xf32> to vector<8x32xf32>
    %255 = vector.extract_strided_slice %237 {offsets = [0, 64], sizes = [8, 32], strides = [1, 1]} : vector<8x96xf32> to vector<8x32xf32>
    %256 = arith.mulf %245, %255 : vector<8x32xf32>
    %257 = arith.addf %254, %256 : vector<8x32xf32>
    %258 = math.tanh %257 : vector<8x32xf32>
    %cst_48 = arith.constant 1.000000e+00 : f32
    %259 = vector.broadcast %cst_48 : f32 to vector<8x32xf32>
    %260 = arith.subf %259, %253 : vector<8x32xf32>
    %261 = arith.mulf %260, %258 : vector<8x32xf32>
    %262 = arith.mulf %253, %226 : vector<8x32xf32>
    %263 = arith.addf %261, %262 : vector<8x32xf32>
    %c7_i32 = arith.constant 7 : i32
    %264 = arith.index_cast %c7_i32 : i32 to index
    %c0_49 = arith.constant 0 : index
    %c0_50 = arith.constant 0 : index
    %265 = vector.load %arg1[%264, %c0_49, %c0_50] : memref<8x8x1xf32, #tpu.memory_space<vmem>>, vector<1x8x1xf32>
    %266 = vector.shape_cast %265 : vector<1x8x1xf32> to vector<8x1xf32>
    %267 = vector.broadcast %266 : vector<8x1xf32> to vector<8x96xf32>
    %268 = vector.broadcast %0 : vector<1x96xf32> to vector<8x96xf32>
    %269 = arith.mulf %267, %268 : vector<8x96xf32>
    %270 = vector.broadcast %1 : vector<1x96xf32> to vector<8x96xf32>
    %271 = arith.addf %269, %270 : vector<8x96xf32>
    %cst_51 = arith.constant dense<0.000000e+00> : vector<8x96xf32>
    %272 = tpu.matmul %263, %2, %cst_51 {dimension_numbers = #tpu.dot_dimension_numbers<[1], [0], [0], [1], [0, 0, 1, 1], [], []>} : vector<8x32xf32>, vector<32x96xf32>, vector<8x96xf32> -> vector<8x96xf32>
    %273 = vector.broadcast %3 : vector<1x96xf32> to vector<8x96xf32>
    %274 = arith.addf %272, %273 : vector<8x96xf32>
    %275 = vector.extract_strided_slice %271 {offsets = [0, 0], sizes = [8, 32], strides = [1, 1]} : vector<8x96xf32> to vector<8x32xf32>
    %276 = vector.extract_strided_slice %274 {offsets = [0, 0], sizes = [8, 32], strides = [1, 1]} : vector<8x96xf32> to vector<8x32xf32>
    %277 = arith.addf %275, %276 : vector<8x32xf32>
    %278 = arith.negf %277 : vector<8x32xf32>
    %279 = math.exp %278 : vector<8x32xf32>
    %cst_52 = arith.constant 1.000000e+00 : f32
    %280 = vector.broadcast %cst_52 : f32 to vector<8x32xf32>
    %281 = arith.addf %280, %279 : vector<8x32xf32>
    %282 = arith.divf %280, %281 : vector<8x32xf32>
    %283 = vector.extract_strided_slice %271 {offsets = [0, 32], sizes = [8, 32], strides = [1, 1]} : vector<8x96xf32> to vector<8x32xf32>
    %284 = vector.extract_strided_slice %274 {offsets = [0, 32], sizes = [8, 32], strides = [1, 1]} : vector<8x96xf32> to vector<8x32xf32>
    %285 = arith.addf %283, %284 : vector<8x32xf32>
    %286 = arith.negf %285 : vector<8x32xf32>
    %287 = math.exp %286 : vector<8x32xf32>
    %cst_53 = arith.constant 1.000000e+00 : f32
    %288 = vector.broadcast %cst_53 : f32 to vector<8x32xf32>
    %289 = arith.addf %288, %287 : vector<8x32xf32>
    %290 = arith.divf %288, %289 : vector<8x32xf32>
    %291 = vector.extract_strided_slice %271 {offsets = [0, 64], sizes = [8, 32], strides = [1, 1]} : vector<8x96xf32> to vector<8x32xf32>
    %292 = vector.extract_strided_slice %274 {offsets = [0, 64], sizes = [8, 32], strides = [1, 1]} : vector<8x96xf32> to vector<8x32xf32>
    %293 = arith.mulf %282, %292 : vector<8x32xf32>
    %294 = arith.addf %291, %293 : vector<8x32xf32>
    %295 = math.tanh %294 : vector<8x32xf32>
    %cst_54 = arith.constant 1.000000e+00 : f32
    %296 = vector.broadcast %cst_54 : f32 to vector<8x32xf32>
    %297 = arith.subf %296, %290 : vector<8x32xf32>
    %298 = arith.mulf %297, %295 : vector<8x32xf32>
    %299 = arith.mulf %290, %263 : vector<8x32xf32>
    %300 = arith.addf %298, %299 : vector<8x32xf32>
    %c8_i32 = arith.constant 8 : i32
    %c0_55 = arith.constant 0 : index
    %c0_56 = arith.constant 0 : index
    %301 = vector.load %arg6[%c0_55, %c0_56] : memref<8x32xf32, #tpu.memory_space<vmem>>, vector<8x32xf32>
    tpu.vector_store %arg6[%c0_55, %c0_56], %300 {strides = array<i32>} : memref<8x32xf32, #tpu.memory_space<vmem>>, vector<8x32xf32>,
    return
  }
  func.func @transform_0(%arg0: i32) -> (i32, i32, i32) {
    %c0_i32 = arith.constant 0 : i32
    %c0_i32_0 = arith.constant 0 : i32
    %c0_i32_1 = arith.constant 0 : i32
    return %c0_i32, %arg0, %c0_i32_0 : i32, i32, i32
  }
  func.func @transform_1(%arg0: i32) -> (i32, i32) {
    %c0_i32 = arith.constant 0 : i32
    %c0_i32_0 = arith.constant 0 : i32
    %c0_i32_1 = arith.constant 0 : i32
    return %c0_i32, %c0_i32_0 : i32, i32
  }
  func.func @transform_2(%arg0: i32) -> (i32, i32) {
    %c0_i32 = arith.constant 0 : i32
    %c0_i32_0 = arith.constant 0 : i32
    %c0_i32_1 = arith.constant 0 : i32
    return %c0_i32, %c0_i32_0 : i32, i32
  }
  func.func @transform_3(%arg0: i32) -> (i32, i32) {
    %c0_i32 = arith.constant 0 : i32
    %c0_i32_0 = arith.constant 0 : i32
    %c0_i32_1 = arith.constant 0 : i32
    return %c0_i32, %c0_i32_0 : i32, i32
  }
  func.func @transform_4(%arg0: i32) -> (i32, i32) {
    %c0_i32 = arith.constant 0 : i32
    %c0_i32_0 = arith.constant 0 : i32
    %c0_i32_1 = arith.constant 0 : i32
    return %c0_i32, %c0_i32_0 : i32, i32
  }
  func.func @transform_5(%arg0: i32) -> (i32, i32) {
    %c0_i32 = arith.constant 0 : i32
    %c0_i32_0 = arith.constant 0 : i32
    return %arg0, %c0_i32 : i32, i32
  }
}

module attributes {stable_mosaic.version = 11 : i64} {
  func.func @kernel(%arg0: i32, %arg1: memref<1x4x32xf32, #tpu.memory_space<vmem>>, %arg2: memref<32x32xf32, #tpu.memory_space<vmem>>, %arg3: memref<1x32xf32, #tpu.memory_space<vmem>>, %arg4: memref<1x32x1xf32, #tpu.memory_space<vmem>>, %arg5: memref<1x32xf32, #tpu.memory_space<vmem>>, %arg6: memref<1x32xf32, #tpu.memory_space<vmem>>, %arg7: memref<32x32xf32, #tpu.memory_space<vmem>>, %arg8: memref<1x32xf32, #tpu.memory_space<vmem>>, %arg9: memref<3x32x32xf32, #tpu.memory_space<vmem>>, %arg10: memref<1x32xf32, #tpu.memory_space<vmem>>, %arg11: memref<32x32xf32, #tpu.memory_space<vmem>>, %arg12: memref<1x32xf32, #tpu.memory_space<vmem>>, %arg13: memref<5x32x32xf32, #tpu.memory_space<vmem>>, %arg14: memref<1x32xf32, #tpu.memory_space<vmem>>, %arg15: memref<32x32x12xf32, #tpu.memory_space<vmem>>, %arg16: memref<1x12xf32, #tpu.memory_space<vmem>>, %arg17: memref<1x1x12xf32, #tpu.memory_space<vmem>>) attributes {dimension_semantics = [#tpu.dimension_semantics<parallel>], iteration_bounds = array<i64: 2>, scalar_prefetch = 0 : i64, scratch_operands = 0 : i64, tpu.core_type = #tpu.core_type<tc>, window_params = [{transform_indices = @transform_0, window_bounds = array<i64: 1, 4, 32>}, {pipeline_mode = #tpu.pipeline_mode<synchronous>, transform_indices = @transform_1, window_bounds = array<i64: 32, 32>}, {pipeline_mode = #tpu.pipeline_mode<synchronous>, transform_indices = @transform_2, window_bounds = array<i64: 1, 32>}, {transform_indices = @transform_3, window_bounds = array<i64: 1, 32, 1>}, {pipeline_mode = #tpu.pipeline_mode<synchronous>, transform_indices = @transform_4, window_bounds = array<i64: 1, 32>}, {pipeline_mode = #tpu.pipeline_mode<synchronous>, transform_indices = @transform_5, window_bounds = array<i64: 1, 32>}, {pipeline_mode = #tpu.pipeline_mode<synchronous>, transform_indices = @transform_6, window_bounds = array<i64: 32, 32>}, {pipeline_mode = #tpu.pipeline_mode<synchronous>, transform_indices = @transform_7, window_bounds = array<i64: 1, 32>}, {pipeline_mode = #tpu.pipeline_mode<synchronous>, transform_indices = @transform_8, window_bounds = array<i64: 3, 32, 32>}, {pipeline_mode = #tpu.pipeline_mode<synchronous>, transform_indices = @transform_9, window_bounds = array<i64: 1, 32>}, {pipeline_mode = #tpu.pipeline_mode<synchronous>, transform_indices = @transform_10, window_bounds = array<i64: 32, 32>}, {pipeline_mode = #tpu.pipeline_mode<synchronous>, transform_indices = @transform_11, window_bounds = array<i64: 1, 32>}, {pipeline_mode = #tpu.pipeline_mode<synchronous>, transform_indices = @transform_12, window_bounds = array<i64: 5, 32, 32>}, {pipeline_mode = #tpu.pipeline_mode<synchronous>, transform_indices = @transform_13, window_bounds = array<i64: 1, 32>}, {pipeline_mode = #tpu.pipeline_mode<synchronous>, transform_indices = @transform_14, window_bounds = array<i64: 32, 32, 12>}, {pipeline_mode = #tpu.pipeline_mode<synchronous>, transform_indices = @transform_15, window_bounds = array<i64: 1, 12>}, {transform_indices = @transform_16, window_bounds = array<i64: 1, 1, 12>}]} {
    %c0 = arith.constant 0 : index
    %c0_0 = arith.constant 0 : index
    %c0_1 = arith.constant 0 : index
    %0 = vector.load %arg1[%c0, %c0_0, %c0_1] : memref<1x4x32xf32, #tpu.memory_space<vmem>>, vector<1x4x32xf32>
    %1 = vector.shape_cast %0 : vector<1x4x32xf32> to vector<4x32xf32>
    %c0_2 = arith.constant 0 : index
    %c0_3 = arith.constant 0 : index
    %2 = vector.load %arg2[%c0_2, %c0_3] : memref<32x32xf32, #tpu.memory_space<vmem>>, vector<32x32xf32>
    %cst = arith.constant dense<0.000000e+00> : vector<4x32xf32>
    %3 = tpu.matmul %1, %2, %cst {dimension_numbers = #tpu.dot_dimension_numbers<[1], [0], [0], [1], [0, 0, 1, 1], [], []>} : vector<4x32xf32>, vector<32x32xf32>, vector<4x32xf32> -> vector<4x32xf32>
    %c0_4 = arith.constant 0 : index
    %c0_5 = arith.constant 0 : index
    %4 = vector.load %arg3[%c0_4, %c0_5] : memref<1x32xf32, #tpu.memory_space<vmem>>, vector<1x32xf32>
    %5 = vector.broadcast %4 : vector<1x32xf32> to vector<4x32xf32>
    %6 = arith.addf %3, %5 : vector<4x32xf32>
    %7 = vector.extract_strided_slice %6 {offsets = [0, 0], sizes = [4, 16], strides = [1, 1]} : vector<4x32xf32> to vector<4x16xf32>
    %8 = vector.extract_strided_slice %6 {offsets = [0, 16], sizes = [4, 16], strides = [1, 1]} : vector<4x32xf32> to vector<4x16xf32>
    %cst_6 = arith.constant dense<0.000000e+00> : vector<4x4xf32>
    %9 = tpu.matmul %7, %8, %cst_6 {dimension_numbers = #tpu.dot_dimension_numbers<[1], [1], [0], [0], [0, 0, 1, 0], [], []>} : vector<4x16xf32>, vector<4x16xf32>, vector<4x4xf32> -> vector<4x4xf32>
    %cst_7 = arith.constant 2.500000e-01 : f32
    %10 = vector.broadcast %cst_7 : f32 to vector<4x4xf32>
    %11 = arith.mulf %9, %10 : vector<4x4xf32>
    %cst_8 = arith.constant dense<0xFF800000> : vector<4xf32>
    %12 = vector.multi_reduction <maximumf>, %11, %cst_8 [1] : vector<4x4xf32> to vector<4xf32>
    %13 = vector.shape_cast %12 : vector<4xf32> to vector<4x1xf32>
    %14 = vector.broadcast %13 : vector<4x1xf32> to vector<4x4xf32>
    %15 = arith.subf %11, %14 : vector<4x4xf32>
    %16 = math.exp %15 : vector<4x4xf32>
    %cst_9 = arith.constant dense<0.000000e+00> : vector<4xf32>
    %17 = vector.multi_reduction <add>, %16, %cst_9 [1] : vector<4x4xf32> to vector<4xf32>
    %18 = vector.shape_cast %17 : vector<4xf32> to vector<4x1xf32>
    %19 = vector.broadcast %18 : vector<4x1xf32> to vector<4x4xf32>
    %20 = arith.divf %16, %19 : vector<4x4xf32>
    %21 = tpu.transpose %20, [1, 0] : vector<4x4xf32> -> vector<4x4xf32>
    %cst_10 = arith.constant dense<0.000000e+00> : vector<4xf32>
    %22 = vector.multi_reduction <add>, %21, %cst_10 [1] : vector<4x4xf32> to vector<4xf32>
    %23 = vector.shape_cast %22 : vector<4xf32> to vector<4x1xf32>
    %cst_11 = arith.constant 9.99999996E-13 : f32
    %24 = vector.broadcast %cst_11 : f32 to vector<4x1xf32>
    %25 = arith.maximumf %23, %24 : vector<4x1xf32>
    %cst_12 = arith.constant dense<0.000000e+00> : vector<4xf32>
    %26 = vector.multi_reduction <add>, %20, %cst_12 [0] : vector<4x4xf32> to vector<4xf32>
    %27 = vector.shape_cast %26 : vector<4xf32> to vector<1x4xf32>
    %cst_13 = arith.constant 9.99999996E-13 : f32
    %28 = vector.broadcast %cst_13 : f32 to vector<1x4xf32>
    %29 = arith.maximumf %27, %28 : vector<1x4xf32>
    %30 = math.rsqrt %25 : vector<4x1xf32>
    %31 = vector.broadcast %30 : vector<4x1xf32> to vector<4x4xf32>
    %32 = arith.mulf %31, %21 : vector<4x4xf32>
    %33 = math.rsqrt %29 : vector<1x4xf32>
    %34 = vector.broadcast %33 : vector<1x4xf32> to vector<4x4xf32>
    %35 = arith.mulf %32, %34 : vector<4x4xf32>
    %36 = vector.shape_cast %35 : vector<4x4xf32> to vector<1x4x4xf32>
    %37 = vector.broadcast %36 : vector<1x4x4xf32> to vector<8x4x4xf32>
    %38 = tpu.iota {dimensions = array<i32: 0>} : vector<32x1xi32>
    %c-8_i32 = arith.constant -8 : i32
    %39 = vector.broadcast %c-8_i32 : i32 to vector<32x1xi32>
    %40 = arith.addi %38, %39 : vector<32x1xi32>
    %c0_i32 = arith.constant 0 : i32
    %41 = vector.broadcast %c0_i32 : i32 to vector<32x1xi32>
    %42 = arith.cmpi sge, %40, %41 : vector<32x1xi32>
    %c-8_i32_14 = arith.constant -8 : i32
    %43 = vector.broadcast %c-8_i32_14 : i32 to vector<32x1xi32>
    %44 = arith.addi %38, %43 : vector<32x1xi32>
    %c32_i32 = arith.constant 32 : i32
    %45 = vector.broadcast %c32_i32 : i32 to vector<32x1xi32>
    %46 = arith.cmpi slt, %44, %45 : vector<32x1xi32>
    %47 = arith.andi %42, %46 : vector<32x1xi1>
    %48 = vector.shape_cast %47 : vector<32x1xi1> to vector<32x1xi1>
    %49 = vector.broadcast %48 : vector<32x1xi1> to vector<32x32xi1>
    %c-4_i32 = arith.constant -4 : i32
    %50 = vector.broadcast %c-4_i32 : i32 to vector<32x1xi32>
    %51 = arith.addi %38, %50 : vector<32x1xi32>
    %c0_i32_15 = arith.constant 0 : i32
    %52 = vector.broadcast %c0_i32_15 : i32 to vector<32x1xi32>
    %53 = arith.cmpi sge, %51, %52 : vector<32x1xi32>
    %c-4_i32_16 = arith.constant -4 : i32
    %54 = vector.broadcast %c-4_i32_16 : i32 to vector<32x1xi32>
    %55 = arith.addi %38, %54 : vector<32x1xi32>
    %c32_i32_17 = arith.constant 32 : i32
    %56 = vector.broadcast %c32_i32_17 : i32 to vector<32x1xi32>
    %57 = arith.cmpi slt, %55, %56 : vector<32x1xi32>
    %58 = arith.andi %53, %57 : vector<32x1xi1>
    %59 = vector.shape_cast %58 : vector<32x1xi1> to vector<32x1xi1>
    %60 = vector.broadcast %59 : vector<32x1xi1> to vector<32x32xi1>
    %c4_i32 = arith.constant 4 : i32
    %61 = vector.broadcast %c4_i32 : i32 to vector<32x1xi32>
    %62 = arith.addi %38, %61 : vector<32x1xi32>
    %c0_i32_18 = arith.constant 0 : i32
    %63 = vector.broadcast %c0_i32_18 : i32 to vector<32x1xi32>
    %64 = arith.cmpi sge, %62, %63 : vector<32x1xi32>
    %c4_i32_19 = arith.constant 4 : i32
    %65 = vector.broadcast %c4_i32_19 : i32 to vector<32x1xi32>
    %66 = arith.addi %38, %65 : vector<32x1xi32>
    %c32_i32_20 = arith.constant 32 : i32
    %67 = vector.broadcast %c32_i32_20 : i32 to vector<32x1xi32>
    %68 = arith.cmpi slt, %66, %67 : vector<32x1xi32>
    %69 = arith.andi %64, %68 : vector<32x1xi1>
    %70 = vector.shape_cast %69 : vector<32x1xi1> to vector<32x1xi1>
    %71 = vector.broadcast %70 : vector<32x1xi1> to vector<32x32xi1>
    %c8_i32 = arith.constant 8 : i32
    %72 = vector.broadcast %c8_i32 : i32 to vector<32x1xi32>
    %73 = arith.addi %38, %72 : vector<32x1xi32>
    %c0_i32_21 = arith.constant 0 : i32
    %74 = vector.broadcast %c0_i32_21 : i32 to vector<32x1xi32>
    %75 = arith.cmpi sge, %73, %74 : vector<32x1xi32>
    %c8_i32_22 = arith.constant 8 : i32
    %76 = vector.broadcast %c8_i32_22 : i32 to vector<32x1xi32>
    %77 = arith.addi %38, %76 : vector<32x1xi32>
    %c32_i32_23 = arith.constant 32 : i32
    %78 = vector.broadcast %c32_i32_23 : i32 to vector<32x1xi32>
    %79 = arith.cmpi slt, %77, %78 : vector<32x1xi32>
    %80 = arith.andi %75, %79 : vector<32x1xi1>
    %81 = vector.shape_cast %80 : vector<32x1xi1> to vector<32x1xi1>
    %82 = vector.broadcast %81 : vector<32x1xi1> to vector<32x32xi1>
    %c0_24 = arith.constant 0 : index
    %c0_25 = arith.constant 0 : index
    %c0_26 = arith.constant 0 : index
    %83 = vector.load %arg4[%c0_24, %c0_25, %c0_26] : memref<1x32x1xf32, #tpu.memory_space<vmem>>, vector<1x32x1xf32>
    %84 = vector.shape_cast %83 : vector<1x32x1xf32> to vector<32x1xf32>
    %c0_27 = arith.constant 0 : index
    %c0_28 = arith.constant 0 : index
    %85 = vector.load %arg5[%c0_27, %c0_28] : memref<1x32xf32, #tpu.memory_space<vmem>>, vector<1x32xf32>
    %86 = vector.broadcast %84 : vector<32x1xf32> to vector<32x32xf32>
    %87 = vector.broadcast %85 : vector<1x32xf32> to vector<32x32xf32>
    %88 = arith.mulf %86, %87 : vector<32x32xf32>
    %c0_29 = arith.constant 0 : index
    %c0_30 = arith.constant 0 : index
    %89 = vector.load %arg6[%c0_29, %c0_30] : memref<1x32xf32, #tpu.memory_space<vmem>>, vector<1x32xf32>
    %90 = vector.broadcast %89 : vector<1x32xf32> to vector<32x32xf32>
    %91 = arith.addf %88, %90 : vector<32x32xf32>
    %c0_31 = arith.constant 0 : index
    %c0_32 = arith.constant 0 : index
    %92 = vector.load %arg7[%c0_31, %c0_32] : memref<32x32xf32, #tpu.memory_space<vmem>>, vector<32x32xf32>
    %cst_33 = arith.constant dense<0.000000e+00> : vector<32x32xf32>
    %93 = tpu.matmul %91, %92, %cst_33 {dimension_numbers = #tpu.dot_dimension_numbers<[1], [0], [0], [1], [0, 0, 1, 1], [], []>} : vector<32x32xf32>, vector<32x32xf32>, vector<32x32xf32> -> vector<32x32xf32>
    %94 = vector.shape_cast %93 : vector<32x32xf32> to vector<8x4x32xf32>
    "tpu.trace_start"() <{level = 10 : i32, message = "wst,wtd->wsd"}> : () -> ()
    %cst_34 = arith.constant dense<0.000000e+00> : vector<8x4x32xf32>
    %95 = tpu.matmul %37, %94, %cst_34 {dimension_numbers = #tpu.dot_dimension_numbers<[2], [1], [1], [2], [0, 0, 0, 1, 1, 2], [0], [0]>} : vector<8x4x4xf32>, vector<8x4x32xf32>, vector<8x4x32xf32> -> vector<8x4x32xf32>
    "tpu.trace_stop"() : () -> ()
    %96 = vector.shape_cast %95 : vector<8x4x32xf32> to vector<32x32xf32>
    %c0_35 = arith.constant 0 : index
    %c0_36 = arith.constant 0 : index
    %97 = vector.load %arg8[%c0_35, %c0_36] : memref<1x32xf32, #tpu.memory_space<vmem>>, vector<1x32xf32>
    %98 = vector.broadcast %97 : vector<1x32xf32> to vector<32x32xf32>
    %99 = arith.addf %96, %98 : vector<32x32xf32>
    %c1 = arith.constant 1 : index
    %c0_37 = arith.constant 0 : index
    %c0_38 = arith.constant 0 : index
    %100 = vector.load %arg9[%c1, %c0_37, %c0_38] : memref<3x32x32xf32, #tpu.memory_space<vmem>>, vector<1x32x32xf32>
    %101 = vector.shape_cast %100 : vector<1x32x32xf32> to vector<32x32xf32>
    %cst_39 = arith.constant dense<0.000000e+00> : vector<32x32xf32>
    %102 = tpu.matmul %99, %101, %cst_39 {dimension_numbers = #tpu.dot_dimension_numbers<[1], [0], [0], [1], [0, 0, 1, 1], [], []>} : vector<32x32xf32>, vector<32x32xf32>, vector<32x32xf32> -> vector<32x32xf32>
    %c0_40 = arith.constant 0 : index
    %c0_41 = arith.constant 0 : index
    %103 = vector.load %arg10[%c0_40, %c0_41] : memref<1x32xf32, #tpu.memory_space<vmem>>, vector<1x32xf32>
    %104 = vector.broadcast %103 : vector<1x32xf32> to vector<32x32xf32>
    %105 = arith.addf %102, %104 : vector<32x32xf32>
    %c4_i32_42 = arith.constant 4 : i32
    %106 = tpu.dynamic_rotate %99 by %c4_i32_42 dim 0 : vector<32x32xf32>, i32 -> vector<32x32xf32>
    %cst_43 = arith.constant 0.000000e+00 : f32
    %107 = vector.broadcast %cst_43 : f32 to vector<32x32xf32>
    %108 = arith.select %60, %106, %107 : vector<32x32xi1>, vector<32x32xf32>
    %c0_44 = arith.constant 0 : index
    %c0_45 = arith.constant 0 : index
    %c0_46 = arith.constant 0 : index
    %109 = vector.load %arg9[%c0_44, %c0_45, %c0_46] : memref<3x32x32xf32, #tpu.memory_space<vmem>>, vector<1x32x32xf32>
    %110 = vector.shape_cast %109 : vector<1x32x32xf32> to vector<32x32xf32>
    %cst_47 = arith.constant dense<0.000000e+00> : vector<32x32xf32>
    %111 = tpu.matmul %108, %110, %cst_47 {dimension_numbers = #tpu.dot_dimension_numbers<[1], [0], [0], [1], [0, 0, 1, 1], [], []>} : vector<32x32xf32>, vector<32x32xf32>, vector<32x32xf32> -> vector<32x32xf32>
    %112 = arith.addf %105, %111 : vector<32x32xf32>
    %c28_i32 = arith.constant 28 : i32
    %113 = tpu.dynamic_rotate %99 by %c28_i32 dim 0 : vector<32x32xf32>, i32 -> vector<32x32xf32>
    %cst_48 = arith.constant 0.000000e+00 : f32
    %114 = vector.broadcast %cst_48 : f32 to vector<32x32xf32>
    %115 = arith.select %71, %113, %114 : vector<32x32xi1>, vector<32x32xf32>
    %c2 = arith.constant 2 : index
    %c0_49 = arith.constant 0 : index
    %c0_50 = arith.constant 0 : index
    %116 = vector.load %arg9[%c2, %c0_49, %c0_50] : memref<3x32x32xf32, #tpu.memory_space<vmem>>, vector<1x32x32xf32>
    %117 = vector.shape_cast %116 : vector<1x32x32xf32> to vector<32x32xf32>
    %cst_51 = arith.constant dense<0.000000e+00> : vector<32x32xf32>
    %118 = tpu.matmul %115, %117, %cst_51 {dimension_numbers = #tpu.dot_dimension_numbers<[1], [0], [0], [1], [0, 0, 1, 1], [], []>} : vector<32x32xf32>, vector<32x32xf32>, vector<32x32xf32> -> vector<32x32xf32>
    %119 = arith.addf %112, %118 : vector<32x32xf32>
    %cst_52 = arith.constant 0.000000e+00 : f32
    %120 = vector.broadcast %cst_52 : f32 to vector<32x32xf32>
    %121 = arith.cmpf ogt, %119, %120 : vector<32x32xf32>
    %cst_53 = arith.constant 0.00999999977 : f32
    %122 = vector.broadcast %cst_53 : f32 to vector<32x32xf32>
    %123 = arith.mulf %122, %119 : vector<32x32xf32>
    %124 = arith.select %121, %119, %123 : vector<32x32xi1>, vector<32x32xf32>
    %c0_54 = arith.constant 0 : index
    %c0_55 = arith.constant 0 : index
    %125 = vector.load %arg11[%c0_54, %c0_55] : memref<32x32xf32, #tpu.memory_space<vmem>>, vector<32x32xf32>
    %cst_56 = arith.constant dense<0.000000e+00> : vector<32x32xf32>
    %126 = tpu.matmul %124, %125, %cst_56 {dimension_numbers = #tpu.dot_dimension_numbers<[1], [0], [0], [1], [0, 0, 1, 1], [], []>} : vector<32x32xf32>, vector<32x32xf32>, vector<32x32xf32> -> vector<32x32xf32>
    %127 = vector.shape_cast %126 : vector<32x32xf32> to vector<8x4x32xf32>
    "tpu.trace_start"() <{level = 10 : i32, message = "wst,wtd->wsd"}> : () -> ()
    %cst_57 = arith.constant dense<0.000000e+00> : vector<8x4x32xf32>
    %128 = tpu.matmul %37, %127, %cst_57 {dimension_numbers = #tpu.dot_dimension_numbers<[2], [1], [1], [2], [0, 0, 0, 1, 1, 2], [0], [0]>} : vector<8x4x4xf32>, vector<8x4x32xf32>, vector<8x4x32xf32> -> vector<8x4x32xf32>
    "tpu.trace_stop"() : () -> ()
    %129 = vector.shape_cast %128 : vector<8x4x32xf32> to vector<32x32xf32>
    %c0_58 = arith.constant 0 : index
    %c0_59 = arith.constant 0 : index
    %130 = vector.load %arg12[%c0_58, %c0_59] : memref<1x32xf32, #tpu.memory_space<vmem>>, vector<1x32xf32>
    %131 = vector.broadcast %130 : vector<1x32xf32> to vector<32x32xf32>
    %132 = arith.addf %129, %131 : vector<32x32xf32>
    %c2_60 = arith.constant 2 : index
    %c0_61 = arith.constant 0 : index
    %c0_62 = arith.constant 0 : index
    %133 = vector.load %arg13[%c2_60, %c0_61, %c0_62] : memref<5x32x32xf32, #tpu.memory_space<vmem>>, vector<1x32x32xf32>
    %134 = vector.shape_cast %133 : vector<1x32x32xf32> to vector<32x32xf32>
    %cst_63 = arith.constant dense<0.000000e+00> : vector<32x32xf32>
    %135 = tpu.matmul %132, %134, %cst_63 {dimension_numbers = #tpu.dot_dimension_numbers<[1], [0], [0], [1], [0, 0, 1, 1], [], []>} : vector<32x32xf32>, vector<32x32xf32>, vector<32x32xf32> -> vector<32x32xf32>
    %c0_64 = arith.constant 0 : index
    %c0_65 = arith.constant 0 : index
    %136 = vector.load %arg14[%c0_64, %c0_65] : memref<1x32xf32, #tpu.memory_space<vmem>>, vector<1x32xf32>
    %137 = vector.broadcast %136 : vector<1x32xf32> to vector<32x32xf32>
    %138 = arith.addf %135, %137 : vector<32x32xf32>
    %c8_i32_66 = arith.constant 8 : i32
    %139 = tpu.dynamic_rotate %132 by %c8_i32_66 dim 0 : vector<32x32xf32>, i32 -> vector<32x32xf32>
    %cst_67 = arith.constant 0.000000e+00 : f32
    %140 = vector.broadcast %cst_67 : f32 to vector<32x32xf32>
    %141 = arith.select %49, %139, %140 : vector<32x32xi1>, vector<32x32xf32>
    %c0_68 = arith.constant 0 : index
    %c0_69 = arith.constant 0 : index
    %c0_70 = arith.constant 0 : index
    %142 = vector.load %arg13[%c0_68, %c0_69, %c0_70] : memref<5x32x32xf32, #tpu.memory_space<vmem>>, vector<1x32x32xf32>
    %143 = vector.shape_cast %142 : vector<1x32x32xf32> to vector<32x32xf32>
    %cst_71 = arith.constant dense<0.000000e+00> : vector<32x32xf32>
    %144 = tpu.matmul %141, %143, %cst_71 {dimension_numbers = #tpu.dot_dimension_numbers<[1], [0], [0], [1], [0, 0, 1, 1], [], []>} : vector<32x32xf32>, vector<32x32xf32>, vector<32x32xf32> -> vector<32x32xf32>
    %145 = arith.addf %138, %144 : vector<32x32xf32>
    %c4_i32_72 = arith.constant 4 : i32
    %146 = tpu.dynamic_rotate %132 by %c4_i32_72 dim 0 : vector<32x32xf32>, i32 -> vector<32x32xf32>
    %cst_73 = arith.constant 0.000000e+00 : f32
    %147 = vector.broadcast %cst_73 : f32 to vector<32x32xf32>
    %148 = arith.select %60, %146, %147 : vector<32x32xi1>, vector<32x32xf32>
    %c1_74 = arith.constant 1 : index
    %c0_75 = arith.constant 0 : index
    %c0_76 = arith.constant 0 : index
    %149 = vector.load %arg13[%c1_74, %c0_75, %c0_76] : memref<5x32x32xf32, #tpu.memory_space<vmem>>, vector<1x32x32xf32>
    %150 = vector.shape_cast %149 : vector<1x32x32xf32> to vector<32x32xf32>
    %cst_77 = arith.constant dense<0.000000e+00> : vector<32x32xf32>
    %151 = tpu.matmul %148, %150, %cst_77 {dimension_numbers = #tpu.dot_dimension_numbers<[1], [0], [0], [1], [0, 0, 1, 1], [], []>} : vector<32x32xf32>, vector<32x32xf32>, vector<32x32xf32> -> vector<32x32xf32>
    %152 = arith.addf %145, %151 : vector<32x32xf32>
    %c28_i32_78 = arith.constant 28 : i32
    %153 = tpu.dynamic_rotate %132 by %c28_i32_78 dim 0 : vector<32x32xf32>, i32 -> vector<32x32xf32>
    %cst_79 = arith.constant 0.000000e+00 : f32
    %154 = vector.broadcast %cst_79 : f32 to vector<32x32xf32>
    %155 = arith.select %71, %153, %154 : vector<32x32xi1>, vector<32x32xf32>
    %c3 = arith.constant 3 : index
    %c0_80 = arith.constant 0 : index
    %c0_81 = arith.constant 0 : index
    %156 = vector.load %arg13[%c3, %c0_80, %c0_81] : memref<5x32x32xf32, #tpu.memory_space<vmem>>, vector<1x32x32xf32>
    %157 = vector.shape_cast %156 : vector<1x32x32xf32> to vector<32x32xf32>
    %cst_82 = arith.constant dense<0.000000e+00> : vector<32x32xf32>
    %158 = tpu.matmul %155, %157, %cst_82 {dimension_numbers = #tpu.dot_dimension_numbers<[1], [0], [0], [1], [0, 0, 1, 1], [], []>} : vector<32x32xf32>, vector<32x32xf32>, vector<32x32xf32> -> vector<32x32xf32>
    %159 = arith.addf %152, %158 : vector<32x32xf32>
    %c24_i32 = arith.constant 24 : i32
    %160 = tpu.dynamic_rotate %132 by %c24_i32 dim 0 : vector<32x32xf32>, i32 -> vector<32x32xf32>
    %cst_83 = arith.constant 0.000000e+00 : f32
    %161 = vector.broadcast %cst_83 : f32 to vector<32x32xf32>
    %162 = arith.select %82, %160, %161 : vector<32x32xi1>, vector<32x32xf32>
    %c4 = arith.constant 4 : index
    %c0_84 = arith.constant 0 : index
    %c0_85 = arith.constant 0 : index
    %163 = vector.load %arg13[%c4, %c0_84, %c0_85] : memref<5x32x32xf32, #tpu.memory_space<vmem>>, vector<1x32x32xf32>
    %164 = vector.shape_cast %163 : vector<1x32x32xf32> to vector<32x32xf32>
    %cst_86 = arith.constant dense<0.000000e+00> : vector<32x32xf32>
    %165 = tpu.matmul %162, %164, %cst_86 {dimension_numbers = #tpu.dot_dimension_numbers<[1], [0], [0], [1], [0, 0, 1, 1], [], []>} : vector<32x32xf32>, vector<32x32xf32>, vector<32x32xf32> -> vector<32x32xf32>
    %166 = arith.addf %159, %165 : vector<32x32xf32>
    %cst_87 = arith.constant 0.000000e+00 : f32
    %167 = vector.broadcast %cst_87 : f32 to vector<32x32xf32>
    %168 = arith.cmpf ogt, %166, %167 : vector<32x32xf32>
    %cst_88 = arith.constant 0.00999999977 : f32
    %169 = vector.broadcast %cst_88 : f32 to vector<32x32xf32>
    %170 = arith.mulf %169, %166 : vector<32x32xf32>
    %171 = arith.select %168, %166, %170 : vector<32x32xi1>, vector<32x32xf32>
    %172 = vector.shape_cast %171 : vector<32x32xf32> to vector<32x1x32xf32>
    %c0_89 = arith.constant 0 : index
    %c0_90 = arith.constant 0 : index
    %c0_91 = arith.constant 0 : index
    %173 = vector.load %arg15[%c0_89, %c0_90, %c0_91] : memref<32x32x12xf32, #tpu.memory_space<vmem>>, vector<32x32x12xf32>
    "tpu.trace_start"() <{level = 10 : i32, message = "rad,rdo->rao"}> : () -> ()
    %cst_92 = arith.constant dense<0.000000e+00> : vector<32x1x12xf32>
    %174 = tpu.matmul %172, %173, %cst_92 {dimension_numbers = #tpu.dot_dimension_numbers<[2], [1], [1], [2], [0, 0, 0, 1, 1, 2], [0], [0]>} : vector<32x1x32xf32>, vector<32x32x12xf32>, vector<32x1x12xf32> -> vector<32x1x12xf32>
    "tpu.trace_stop"() : () -> ()
    %175 = vector.shape_cast %174 : vector<32x1x12xf32> to vector<32x12xf32>
    %cst_93 = arith.constant dense<0.000000e+00> : vector<12xf32>
    %176 = vector.multi_reduction <add>, %175, %cst_93 [0] : vector<32x12xf32> to vector<12xf32>
    %177 = vector.shape_cast %176 : vector<12xf32> to vector<1x12xf32>
    %c0_94 = arith.constant 0 : index
    %c0_95 = arith.constant 0 : index
    %178 = vector.load %arg16[%c0_94, %c0_95] : memref<1x12xf32, #tpu.memory_space<vmem>>, vector<1x12xf32>
    %179 = arith.addf %177, %178 : vector<1x12xf32>
    %c0_96 = arith.constant 0 : index
    %c0_97 = arith.constant 0 : index
    %c0_98 = arith.constant 0 : index
    %180 = vector.load %arg17[%c0_96, %c0_97, %c0_98] : memref<1x1x12xf32, #tpu.memory_space<vmem>>, vector<1x1x12xf32>
    %181 = vector.shape_cast %180 : vector<1x1x12xf32> to vector<1x12xf32>
    %182 = vector.shape_cast %179 : vector<1x12xf32> to vector<1x1x12xf32>
    tpu.vector_store %arg17[%c0_96, %c0_97, %c0_98], %182 {strides = array<i32>} : memref<1x1x12xf32, #tpu.memory_space<vmem>>, vector<1x1x12xf32>,
    return
  }
  func.func @transform_0(%arg0: i32) -> (i32, i32, i32) {
    %c0_i32 = arith.constant 0 : i32
    %c0_i32_0 = arith.constant 0 : i32
    %c0_i32_1 = arith.constant 0 : i32
    return %arg0, %c0_i32, %c0_i32_0 : i32, i32, i32
  }
  func.func @transform_1(%arg0: i32) -> (i32, i32) {
    %c0_i32 = arith.constant 0 : i32
    %c0_i32_0 = arith.constant 0 : i32
    %c0_i32_1 = arith.constant 0 : i32
    return %c0_i32, %c0_i32_0 : i32, i32
  }
  func.func @transform_2(%arg0: i32) -> (i32, i32) {
    %c0_i32 = arith.constant 0 : i32
    %c0_i32_0 = arith.constant 0 : i32
    %c0_i32_1 = arith.constant 0 : i32
    return %c0_i32, %c0_i32_0 : i32, i32
  }
  func.func @transform_3(%arg0: i32) -> (i32, i32, i32) {
    %c0_i32 = arith.constant 0 : i32
    %c0_i32_0 = arith.constant 0 : i32
    %c0_i32_1 = arith.constant 0 : i32
    return %arg0, %c0_i32, %c0_i32_0 : i32, i32, i32
  }
  func.func @transform_4(%arg0: i32) -> (i32, i32) {
    %c0_i32 = arith.constant 0 : i32
    %c0_i32_0 = arith.constant 0 : i32
    %c0_i32_1 = arith.constant 0 : i32
    return %c0_i32, %c0_i32_0 : i32, i32
  }
  func.func @transform_5(%arg0: i32) -> (i32, i32) {
    %c0_i32 = arith.constant 0 : i32
    %c0_i32_0 = arith.constant 0 : i32
    %c0_i32_1 = arith.constant 0 : i32
    return %c0_i32, %c0_i32_0 : i32, i32
  }
  func.func @transform_6(%arg0: i32) -> (i32, i32) {
    %c0_i32 = arith.constant 0 : i32
    %c0_i32_0 = arith.constant 0 : i32
    %c0_i32_1 = arith.constant 0 : i32
    return %c0_i32, %c0_i32_0 : i32, i32
  }
  func.func @transform_7(%arg0: i32) -> (i32, i32) {
    %c0_i32 = arith.constant 0 : i32
    %c0_i32_0 = arith.constant 0 : i32
    %c0_i32_1 = arith.constant 0 : i32
    return %c0_i32, %c0_i32_0 : i32, i32
  }
  func.func @transform_8(%arg0: i32) -> (i32, i32, i32) {
    %c0_i32 = arith.constant 0 : i32
    %c0_i32_0 = arith.constant 0 : i32
    %c0_i32_1 = arith.constant 0 : i32
    %c0_i32_2 = arith.constant 0 : i32
    return %c0_i32, %c0_i32_0, %c0_i32_1 : i32, i32, i32
  }
  func.func @transform_9(%arg0: i32) -> (i32, i32) {
    %c0_i32 = arith.constant 0 : i32
    %c0_i32_0 = arith.constant 0 : i32
    %c0_i32_1 = arith.constant 0 : i32
    return %c0_i32, %c0_i32_0 : i32, i32
  }
  func.func @transform_10(%arg0: i32) -> (i32, i32) {
    %c0_i32 = arith.constant 0 : i32
    %c0_i32_0 = arith.constant 0 : i32
    %c0_i32_1 = arith.constant 0 : i32
    return %c0_i32, %c0_i32_0 : i32, i32
  }
  func.func @transform_11(%arg0: i32) -> (i32, i32) {
    %c0_i32 = arith.constant 0 : i32
    %c0_i32_0 = arith.constant 0 : i32
    %c0_i32_1 = arith.constant 0 : i32
    return %c0_i32, %c0_i32_0 : i32, i32
  }
  func.func @transform_12(%arg0: i32) -> (i32, i32, i32) {
    %c0_i32 = arith.constant 0 : i32
    %c0_i32_0 = arith.constant 0 : i32
    %c0_i32_1 = arith.constant 0 : i32
    %c0_i32_2 = arith.constant 0 : i32
    return %c0_i32, %c0_i32_0, %c0_i32_1 : i32, i32, i32
  }
  func.func @transform_13(%arg0: i32) -> (i32, i32) {
    %c0_i32 = arith.constant 0 : i32
    %c0_i32_0 = arith.constant 0 : i32
    %c0_i32_1 = arith.constant 0 : i32
    return %c0_i32, %c0_i32_0 : i32, i32
  }
  func.func @transform_14(%arg0: i32) -> (i32, i32, i32) {
    %c0_i32 = arith.constant 0 : i32
    %c0_i32_0 = arith.constant 0 : i32
    %c0_i32_1 = arith.constant 0 : i32
    %c0_i32_2 = arith.constant 0 : i32
    return %c0_i32, %c0_i32_0, %c0_i32_1 : i32, i32, i32
  }
  func.func @transform_15(%arg0: i32) -> (i32, i32) {
    %c0_i32 = arith.constant 0 : i32
    %c0_i32_0 = arith.constant 0 : i32
    %c0_i32_1 = arith.constant 0 : i32
    return %c0_i32, %c0_i32_0 : i32, i32
  }
  func.func @transform_16(%arg0: i32) -> (i32, i32, i32) {
    %c0_i32 = arith.constant 0 : i32
    %c0_i32_0 = arith.constant 0 : i32
    %c0_i32_1 = arith.constant 0 : i32
    return %arg0, %c0_i32, %c0_i32_0 : i32, i32, i32
  }
}

</mosaic_0001>

<bundles_post_ra>
// kernel: forward.2
= control target key start
LH: loop header
LB: loop body
LE: loop exit
PB: predicated region body
PF: predicated region fallthrough
CT: control target
= control target key end

     0   :  { %v1189_v0 = vmov 0.0|0.0   ;;  %vm1190_vm0 = vmmov 0   ;;  %v1191_v4 = vmov 0.0   ;;  %v1192_v7 = vmov 0   ;;  %s1193_s29 = smov 64   ;;  %s1396_s3 = inlined_call_operand.vmem [shape: f32[32,96], index: 3, kind: input, shape index: {}]   ;;  %s1397_s0 = inlined_call_operand.vmem [shape: f32[8,8,1], index: 0, kind: input, shape index: {}]   ;;  %s1398_s4 = inlined_call_operand.vmem [shape: f32[1,96], index: 4, kind: input, shape index: {}]   ;;  %s1399_s1 = inlined_call_operand.vmem [shape: f32[1,96], index: 1, kind: input, shape index: {}]   ;;  %s1400_s2 = inlined_call_operand.vmem [shape: f32[1,96], index: 2, kind: input, shape index: {}]   ;;  %s1401_s5 = inlined_call_operand.vmem [shape: f32[8,32], index: 5, kind: output, shape index: {}]  }
   0x1   :  { %1085 = vmatprep.subr.bf16.mxu0 %v1189_v0  ;;  %v22_v1 = vld [vmem:[%s1396_s3] sm:$0xff]  ;;  %v23_v2 = vld [vmem:[%s1396_s3 + $0x8] sm:$0xff]  ;;  %v24_v3 = vld [vmem:[%s1396_s3 + $0x10] sm:$0xff]  ;;  %1005 = vmatprep.mubr.msk.f32.mxu0 %vm1190_vm0, %v1191_v4  ;;  %vm53_vm1 = vcmask 261120  }
   0x2   :  { %v1237_v5 = vpack.c.bf16 %v23_v2, %v22_v1  ;;  %v25_v6 = vld [vmem:[%s1396_s3 + $0x18] sm:$0xff]  ;;  %1139 = vset.pattern.permute.xlu0 %v1192_v7  ;;  %v27_v8 = vld [vmem:[%s1397_s0] sm:$0xff]  ;;  %1091 = vmatprep.subr.bf16.mxu1 %v1189_v0  ;;  %v936_v29 = vld [vmem:[%s1397_s0 + $0x8] sm:$0xff] }
   0x3   :  { %30 = vperm.xlu0 %1139, %v27_v8   ;;  %1016 = vmatprep.mubr.msk.f32.mxu1 %vm1190_vm0, %v1191_v4  ;;  %v1249_v9 = vpack.c.bf16 %v25_v6, %v24_v3  ;;  %v1268_v10 = vld [vmem:[%s1398_s4] ss:$0 sm:$0xff]  ;;  %v939_v52 = vld [vmem:[%s1397_s0 + $0x10] sm:$0xff] }
   0x4   :  { %1087 = vmatpush3.bf16.msra.mxu0 %v1237_v5  ;;  %1093 = vmatpush3.bf16.msra.mxu1 %v1237_v5  ;;  %v1275_v14 = vld [vmem:[%s1399_s1] ss:$0 sm:$0xff]  ;;  %s1194_s1 = smov 96  }
   0x5   :  { %1088 = vmatprep.subr.bf16.mxu0 %v1189_v0  ;;  %1094 = vmatprep.subr.bf16.mxu1 %v1189_v0  ;;  %v1281_v17 = vld [vmem:[%s1400_s2] ss:$0 sm:$0xff] }
   0x6   :  { %1140 = vset.pattern.permute.xlu1 %v1192_v7 }
   0x8   :  { %1090 = vmatpush3.bf16.msra.mxu0 %v1249_v9  ;;  %1096 = vmatpush3.bf16.msra.mxu1 %v1249_v9 }
   0x9   :  { %1097 = vmatprep.subr.bf16.mxu0 %v1189_v0  ;;  %1103 = vmatprep.subr.bf16.mxu1 %v1189_v0 }
   0xb   :  { %1006 = vmatmul.mubr.f32.vlgmr.msra.gmra.mrb[0].mxu0 %v1191_v4 }
   0xc   :  { %1099 = vmatpush3.bf16.msra.mxu0 %v1237_v5  ;;  %1027 = vmatprep.mubr.msk.f32.mxu0 %vm1190_vm0, %v1191_v4 }
   0xd   :  { %1100 = vmatprep.subr.bf16.mxu0 %v1189_v0 }
  0x10   :  { %1102 = vmatpush3.bf16.msra.mxu0 %v1249_v9 }
  0x11   :  { %1109 = vmatprep.subr.bf16.mxu0 %v1189_v0 }
  0x82   :  { %v31_v15 = vpop.permute.xlu0 %30 }
  0x83   :  { %v39_v16 = vmul.f32 %v1275_v14, %v31_v15 }
  0x85   :  { %v46_v18 = vadd.f32 %v1281_v17, %v39_v16 }
  0xde   :  { %v123_v11 = vpop.f32.mrb[0].mxu0 }
  0xdf   :  { %v124_v12 = vadd.f32 %v1268_v10, %v123_v11  ;;  %v1007_v13 = vpop.f32.mrb[1].mxu0 }
  0xe1   :  { %135 = vrot.lane.b32.xlu0 %v124_v12, %s1193_s29  ;;  %v127_v19 = vadd.f32 %v124_v12, %v46_v18 }
  0xe3   :  { %v935_v20 = vmul.f32 -1.442695, %v127_v19 }
  0xe5   :  { %1141 = vpow2.f32 %v935_v20 }
  0xef   :  { %v1142_v21 = vpop.eup %1141 }
  0xf0   :  { %v131_v22 = vadd.f32 1.0, %v1142_v21 }
  0xf2   :  { %1143 = vrcp.f32 %v131_v22 }
  0xfc   :  { %v1144_v23 = vpop.eup %1143 }
  0xfd   :  { %v145_v30 = vsub.f32 1.0, %v1144_v23  ;;  %v151_v32 = vmul.f32 0.0, %v1144_v23 }
 0x153   :  { %v136_v24 = vpop.permute.xlu0 %135 }
 0x154   :  { %v138_v25 = vmul.f32 %v1144_v23, %v136_v24 }
 0x156   :  { %140 = vrot.lane.b32.xlu1 %v138_v25, %s1193_s29 }
 0x1c8   :  { %v141_v26 = vpop.permute.xlu1 %140 }
 0x1c9   :  { %v143_v27 = vadd.f32 %v141_v26, %v46_v18  ;;  %v942_v18 = vld [vmem:[%s1397_s0 + $0x18] sm:$0xff] }
 0x1cb   :  { %1145 = vtanh.f32 %v143_v27 }
 0x1d5   :  { %v1146_v28 = vpop.eup %1145 }
 0x1d6   :  { %147 = vrot.lane.b32.xlu1 %v1146_v28, %s1194_s1 }
 0x1da   :  { %157 = vperm.xlu1 %1140, %v936_v29  }
 0x248   :  { %v148_v31 = vpop.permute.xlu1 %147 }
 0x249   :  { %v150_v33 = vmul.f32 %v148_v31, %v145_v30 }
 0x24b   :  { %v152_v34 = vadd.f32 %v151_v32, %v150_v33 }
 0x24d   :  { %163 = vrot.lane.b32.xlu0 %v152_v34, %s1194_s1 }
 0x259   :  { %v158_v39 = vpop.permute.xlu1 %157 }
 0x25a   :  { %v160_v40 = vmul.f32 %v1275_v14, %v158_v39 }
 0x25c   :  { %v161_v41 = vadd.f32 %v1281_v17, %v160_v40 }
 0x2bf   :  { %v164_v35 = vpop.permute.xlu0 %163 }
 0x2c0   :  { %1017 = vmatmul.mubr.msk.f32.vlgmr.msra.gmra.mrb[0].mxu1 %vm53_vm1, %v164_v35 }
 0x2c1   :  { %1105 = vmatpush3.bf16.msra.mxu1 %v1237_v5  ;;  %1038 = vmatprep.mubr.msk.f32.mxu1 %vm1190_vm0, %v1191_v4 }
 0x2c2   :  { %1106 = vmatprep.subr.bf16.mxu1 %v1189_v0 }
 0x2c5   :  { %1108 = vmatpush3.bf16.msra.mxu1 %v1249_v9 }
 0x2c6   :  { %1115 = vmatprep.subr.bf16.mxu1 %v1189_v0 }
 0x393   :  { %v233_v36 = vpop.f32.mrb[0].mxu1 }
 0x394   :  { %v234_v37 = vadd.f32 %v1268_v10, %v233_v36  ;;  %v1018_v38 = vpop.f32.mrb[1].mxu1 }
 0x396   :  { %245 = vrot.lane.b32.xlu0 %v234_v37, %s1193_s29  ;;  %v237_v42 = vadd.f32 %v234_v37, %v161_v41 }
 0x398   :  { %v938_v43 = vmul.f32 -1.442695, %v237_v42 }
 0x39a   :  { %1147 = vpow2.f32 %v938_v43 }
 0x3a4   :  { %v1148_v44 = vpop.eup %1147 }
 0x3a5   :  { %v241_v45 = vadd.f32 1.0, %v1148_v44 }
 0x3a7   :  { %1149 = vrcp.f32 %v241_v45 }
 0x3b1   :  { %v1150_v46 = vpop.eup %1149 }
 0x3b2   :  { %v255_v53 = vsub.f32 1.0, %v1150_v46  ;;  %v261_v55 = vmul.f32 %v1150_v46, %v152_v34 }
 0x408   :  { %v246_v47 = vpop.permute.xlu0 %245 }
 0x409   :  { %v248_v48 = vmul.f32 %v1150_v46, %v246_v47 }
 0x40b   :  { %250 = vrot.lane.b32.xlu1 %v248_v48, %s1193_s29 }
 0x47d   :  { %v251_v49 = vpop.permute.xlu1 %250 }
 0x47e   :  { %v253_v50 = vadd.f32 %v251_v49, %v161_v41  ;;  %v945_v41 = vld [vmem:[%s1397_s0 + $0x20] sm:$0xff] }
 0x480   :  { %1151 = vtanh.f32 %v253_v50 }
 0x48a   :  { %v1152_v51 = vpop.eup %1151 }
 0x48b   :  { %257 = vrot.lane.b32.xlu0 %v1152_v51, %s1194_s1 }
 0x48f   :  { %267 = vperm.xlu0 %1139, %v939_v52  }
 0x4fd   :  { %v258_v54 = vpop.permute.xlu0 %257 }
 0x4fe   :  { %v260_v56 = vmul.f32 %v258_v54, %v255_v53 }
 0x500   :  { %v262_v57 = vadd.f32 %v261_v55, %v260_v56 }
 0x502   :  { %273 = vrot.lane.b32.xlu1 %v262_v57, %s1194_s1 }
 0x50e   :  { %v268_v62 = vpop.permute.xlu0 %267 }
 0x50f   :  { %v270_v63 = vmul.f32 %v1275_v14, %v268_v62 }
 0x511   :  { %v271_v1 = vadd.f32 %v1281_v17, %v270_v63 }
 0x574   :  { %v274_v58 = vpop.permute.xlu1 %273 }
 0x575   :  { %1028 = vmatmul.mubr.msk.f32.vlgmr.msra.gmra.mrb[2].mxu0 %vm53_vm1, %v274_v58 }
 0x576   :  { %1111 = vmatpush3.bf16.msra.mxu0 %v1237_v5  ;;  %1049 = vmatprep.mubr.msk.f32.mxu0 %vm1190_vm0, %v1191_v4 }
 0x577   :  { %1112 = vmatprep.subr.bf16.mxu0 %v1189_v0 }
 0x57a   :  { %1114 = vmatpush3.bf16.msra.mxu0 %v1249_v9 }
 0x57b   :  { %1121 = vmatprep.subr.bf16.mxu0 %v1189_v0 }
 0x648   :  { %v343_v59 = vpop.f32.mrb[2].mxu0 }
 0x649   :  { %v344_v60 = vadd.f32 %v1268_v10, %v343_v59  ;;  %v1029_v61 = vpop.f32.mrb[3].mxu0 }
 0x64b   :  { %355 = vrot.lane.b32.xlu1 %v344_v60, %s1193_s29  ;;  %v347_v2 = vadd.f32 %v344_v60, %v271_v1 }
 0x64d   :  { %v941_v3 = vmul.f32 -1.442695, %v347_v2 }
 0x64f   :  { %1153 = vpow2.f32 %v941_v3 }
 0x659   :  { %v1154_v6 = vpop.eup %1153 }
 0x65a   :  { %v351_v7 = vadd.f32 1.0, %v1154_v6 }
 0x65c   :  { %1155 = vrcp.f32 %v351_v7 }
 0x666   :  { %v1156_v8 = vpop.eup %1155 }
 0x667   :  { %v365_v19 = vsub.f32 1.0, %v1156_v8  ;;  %v371_v21 = vmul.f32 %v1156_v8, %v262_v57 }
 0x6bd   :  { %v356_v11 = vpop.permute.xlu1 %355 }
 0x6be   :  { %v358_v12 = vmul.f32 %v1156_v8, %v356_v11 }
 0x6c0   :  { %360 = vrot.lane.b32.xlu0 %v358_v12, %s1193_s29 }
 0x732   :  { %v361_v13 = vpop.permute.xlu0 %360 }
 0x733   :  { %v363_v15 = vadd.f32 %v361_v13, %v271_v1  ;;  %v948_v1 = vld [vmem:[%s1397_s0 + $0x28] sm:$0xff] }
 0x735   :  { %1157 = vtanh.f32 %v363_v15 }
 0x73f   :  { %v1158_v16 = vpop.eup %1157 }
 0x740   :  { %367 = vrot.lane.b32.xlu1 %v1158_v16, %s1194_s1 }
 0x744   :  { %377 = vperm.xlu1 %1140, %v942_v18  }
 0x7b2   :  { %v368_v20 = vpop.permute.xlu1 %367 }
 0x7b3   :  { %v370_v22 = vmul.f32 %v368_v20, %v365_v19 }
 0x7b5   :  { %v372_v23 = vadd.f32 %v371_v21, %v370_v22 }
 0x7b7   :  { %383 = vrot.lane.b32.xlu0 %v372_v23, %s1194_s1 }
 0x7c3   :  { %v378_v28 = vpop.permute.xlu1 %377 }
 0x7c4   :  { %v380_v29 = vmul.f32 %v1275_v14, %v378_v28 }
 0x7c6   :  { %v381_v30 = vadd.f32 %v1281_v17, %v380_v29 }
 0x829   :  { %v384_v24 = vpop.permute.xlu0 %383 }
 0x82a   :  { %1039 = vmatmul.mubr.msk.f32.vlgmr.msra.gmra.mrb[2].mxu1 %vm53_vm1, %v384_v24 }
 0x82b   :  { %1117 = vmatpush3.bf16.msra.mxu1 %v1237_v5  ;;  %1060 = vmatprep.mubr.msk.f32.mxu1 %vm1190_vm0, %v1191_v4 }
 0x82c   :  { %1118 = vmatprep.subr.bf16.mxu1 %v1189_v0 }
 0x82f   :  { %1120 = vmatpush3.bf16.msra.mxu1 %v1249_v9 }
 0x830   :  { %1127 = vmatprep.subr.bf16.mxu1 %v1189_v0 }
 0x8fd   :  { %v453_v25 = vpop.f32.mrb[2].mxu1 }
 0x8fe   :  { %v454_v26 = vadd.f32 %v1268_v10, %v453_v25  ;;  %v1040_v27 = vpop.f32.mrb[3].mxu1 }
 0x900   :  { %465 = vrot.lane.b32.xlu0 %v454_v26, %s1193_s29  ;;  %v457_v31 = vadd.f32 %v454_v26, %v381_v30  ;;  %v951_v26 = vld [vmem:[%s1397_s0 + $0x30] sm:$0xff] }
 0x902   :  { %v944_v32 = vmul.f32 -1.442695, %v457_v31 }
 0x904   :  { %1159 = vpow2.f32 %v944_v32 }
 0x90e   :  { %v1160_v33 = vpop.eup %1159 }
 0x90f   :  { %v461_v34 = vadd.f32 1.0, %v1160_v33 }
 0x911   :  { %1161 = vrcp.f32 %v461_v34 }
 0x91b   :  { %v1162_v35 = vpop.eup %1161 }
 0x91c   :  { %v475_v42 = vsub.f32 1.0, %v1162_v35  ;;  %v481_v44 = vmul.f32 %v1162_v35, %v372_v23 }
 0x972   :  { %v466_v36 = vpop.permute.xlu0 %465 }
 0x973   :  { %v468_v37 = vmul.f32 %v1162_v35, %v466_v36 }
 0x975   :  { %470 = vrot.lane.b32.xlu1 %v468_v37, %s1193_s29 }
 0x9e7   :  { %v471_v38 = vpop.permute.xlu1 %470 }
 0x9e8   :  { %v473_v39 = vadd.f32 %v471_v38, %v381_v30 }
 0x9ea   :  { %1163 = vtanh.f32 %v473_v39 }
 0x9f4   :  { %v1164_v40 = vpop.eup %1163 }
 0x9f5   :  { %477 = vrot.lane.b32.xlu0 %v1164_v40, %s1194_s1 }
 0x9f9   :  { %487 = vperm.xlu0 %1139, %v945_v41  }
 0xa67   :  { %v478_v43 = vpop.permute.xlu0 %477 }
 0xa68   :  { %v480_v45 = vmul.f32 %v478_v43, %v475_v42 }
 0xa6a   :  { %v482_v46 = vadd.f32 %v481_v44, %v480_v45 }
 0xa6c   :  { %493 = vrot.lane.b32.xlu1 %v482_v46, %s1194_s1 }
 0xa78   :  { %v488_v51 = vpop.permute.xlu0 %487 }
 0xa79   :  { %v490_v52 = vmul.f32 %v1275_v14, %v488_v51 }
 0xa7b   :  { %v491_v53 = vadd.f32 %v1281_v17, %v490_v52 }
 0xade   :  { %v494_v47 = vpop.permute.xlu1 %493 }
 0xadf   :  { %1050 = vmatmul.mubr.msk.f32.vlgmr.msra.gmra.mrb[4].mxu0 %vm53_vm1, %v494_v47 }
 0xae0   :  { %1123 = vmatpush3.bf16.msra.mxu0 %v1237_v5  ;;  %1071 = vmatprep.mubr.msk.f32.mxu0 %vm1190_vm0, %v1191_v4 }
 0xae1   :  { %1124 = vmatprep.subr.bf16.mxu0 %v1189_v0 }
 0xae4   :  { %1126 = vmatpush3.bf16.msra.mxu0 %v1249_v9 }
 0xbb2   :  { %v563_v48 = vpop.f32.mrb[4].mxu0 }
 0xbb3   :  { %v564_v49 = vadd.f32 %v1268_v10, %v563_v48  ;;  %v1051_v50 = vpop.f32.mrb[5].mxu0 }
 0xbb5   :  { %575 = vrot.lane.b32.xlu1 %v564_v49, %s1193_s29  ;;  %v567_v54 = vadd.f32 %v564_v49, %v491_v53  ;;  %v954_v49 = vld [vmem:[%s1397_s0 + $0x38] sm:$0xff] }
 0xbb7   :  { %v947_v55 = vmul.f32 -1.442695, %v567_v54 }
 0xbb9   :  { %1165 = vpow2.f32 %v947_v55 }
 0xbc3   :  { %v1166_v56 = vpop.eup %1165 }
 0xbc4   :  { %v571_v57 = vadd.f32 1.0, %v1166_v56 }
 0xbc6   :  { %1167 = vrcp.f32 %v571_v57 }
 0xbd0   :  { %v1168_v58 = vpop.eup %1167 }
 0xbd1   :  { %v585_v2 = vsub.f32 1.0, %v1168_v58  ;;  %v591_v6 = vmul.f32 %v1168_v58, %v482_v46 }
 0xc27   :  { %v576_v59 = vpop.permute.xlu1 %575 }
 0xc28   :  { %v578_v60 = vmul.f32 %v1168_v58, %v576_v59 }
 0xc2a   :  { %580 = vrot.lane.b32.xlu0 %v578_v60, %s1193_s29 }
 0xc9c   :  { %v581_v61 = vpop.permute.xlu0 %580 }
 0xc9d   :  { %v583_v62 = vadd.f32 %v581_v61, %v491_v53 }
 0xc9f   :  { %1169 = vtanh.f32 %v583_v62 }
 0xca9   :  { %v1170_v63 = vpop.eup %1169 }
 0xcaa   :  { %587 = vrot.lane.b32.xlu1 %v1170_v63, %s1194_s1 }
 0xcae   :  { %597 = vperm.xlu1 %1140, %v948_v1  }
 0xd1c   :  { %v588_v3 = vpop.permute.xlu1 %587 }
 0xd1d   :  { %v590_v7 = vmul.f32 %v588_v3, %v585_v2 }
 0xd1f   :  { %v592_v8 = vadd.f32 %v591_v6, %v590_v7 }
 0xd21   :  { %603 = vrot.lane.b32.xlu0 %v592_v8, %s1194_s1 }
 0xd2d   :  { %v598_v16 = vpop.permute.xlu1 %597 }
 0xd2e   :  { %v600_v18 = vmul.f32 %v1275_v14, %v598_v16 }
 0xd30   :  { %v601_v19 = vadd.f32 %v1281_v17, %v600_v18 }
 0xd93   :  { %v604_v11 = vpop.permute.xlu0 %603 }
 0xd94   :  { %1061 = vmatmul.mubr.msk.f32.vlgmr.msra.gmra.mrb[4].mxu1 %vm53_vm1, %v604_v11 }
 0xd95   :  { %1129 = vmatpush3.bf16.msra.mxu1 %v1237_v5  ;;  %1082 = vmatprep.mubr.msk.f32.mxu1 %vm1190_vm0, %v1191_v4 }
 0xd96   :  { %1130 = vmatprep.subr.bf16.mxu1 %v1189_v0 }
 0xd99   :  { %1132 = vmatpush3.bf16.msra.mxu1 %v1249_v9 }
 0xe67   :  { %v673_v12 = vpop.f32.mrb[4].mxu1 }
 0xe68   :  { %v674_v13 = vadd.f32 %v1268_v10, %v673_v12  ;;  %v1062_v15 = vpop.f32.mrb[5].mxu1 }
 0xe6a   :  { %685 = vrot.lane.b32.xlu0 %v674_v13, %s1193_s29  ;;  %v677_v20 = vadd.f32 %v674_v13, %v601_v19 }
 0xe6c   :  { %v950_v5 = vmul.f32 -1.442695, %v677_v20 }
 0xe6e   :  { %1171 = vpow2.f32 %v950_v5 }
 0xe78   :  { %v1172_v21 = vpop.eup %1171 }
 0xe79   :  { %v681_v4 = vadd.f32 1.0, %v1172_v21 }
 0xe7b   :  { %1173 = vrcp.f32 %v681_v4 }
 0xe85   :  { %v1174_v0 = vpop.eup %1173 }
 0xe86   :  { %v695_v27 = vsub.f32 1.0, %v1174_v0  ;;  %v701_v29 = vmul.f32 %v1174_v0, %v592_v8 }
 0xedc   :  { %v686_v22 = vpop.permute.xlu0 %685 }
 0xedd   :  { %v688_v9 = vmul.f32 %v1174_v0, %v686_v22 }
 0xedf   :  { %690 = vrot.lane.b32.xlu1 %v688_v9, %s1193_s29 }
 0xf51   :  { %v691_v23 = vpop.permute.xlu1 %690 }
 0xf52   :  { %v693_v24 = vadd.f32 %v691_v23, %v601_v19 }
 0xf54   :  { %1175 = vtanh.f32 %v693_v24 }
 0xf5e   :  { %v1176_v25 = vpop.eup %1175 }
 0xf5f   :  { %697 = vrot.lane.b32.xlu0 %v1176_v25, %s1194_s1 }
 0xf63   :  { %707 = vperm.xlu0 %1139, %v951_v26  }
 0xfd1   :  { %v698_v28 = vpop.permute.xlu0 %697 }
 0xfd2   :  { %v700_v30 = vmul.f32 %v698_v28, %v695_v27 }
 0xfd4   :  { %v702_v31 = vadd.f32 %v701_v29, %v700_v30 }
 0xfd6   :  { %713 = vrot.lane.b32.xlu1 %v702_v31, %s1194_s1 }
 0xfe2   :  { %v708_v36 = vpop.permute.xlu0 %707 }
 0xfe3   :  { %v710_v37 = vmul.f32 %v1275_v14, %v708_v36 }
 0xfe5   :  { %v711_v38 = vadd.f32 %v1281_v17, %v710_v37 }
0x1048   :  { %v714_v32 = vpop.permute.xlu1 %713 }
0x1049   :  { %1072 = vmatmul.mubr.msk.f32.vlgmr.msra.gmra.mrb[6].mxu0 %vm53_vm1, %v714_v32 }
0x111c   :  { %v783_v33 = vpop.f32.mrb[6].mxu0 }
0x111d   :  { %v784_v34 = vadd.f32 %v1268_v10, %v783_v33  ;;  %v1073_v35 = vpop.f32.mrb[7].mxu0 }
0x111f   :  { %795 = vrot.lane.b32.xlu1 %v784_v34, %s1193_s29  ;;  %v787_v39 = vadd.f32 %v784_v34, %v711_v38 }
0x1121   :  { %v953_v40 = vmul.f32 -1.442695, %v787_v39 }
0x1123   :  { %1177 = vpow2.f32 %v953_v40 }
0x112d   :  { %v1178_v41 = vpop.eup %1177 }
0x112e   :  { %v791_v42 = vadd.f32 1.0, %v1178_v41 }
0x1130   :  { %1179 = vrcp.f32 %v791_v42 }
0x113a   :  { %v1180_v43 = vpop.eup %1179 }
0x113b   :  { %v805_v50 = vsub.f32 1.0, %v1180_v43  ;;  %v811_v52 = vmul.f32 %v1180_v43, %v702_v31 }
0x1191   :  { %v796_v44 = vpop.permute.xlu1 %795 }
0x1192   :  { %v798_v45 = vmul.f32 %v1180_v43, %v796_v44 }
0x1194   :  { %800 = vrot.lane.b32.xlu0 %v798_v45, %s1193_s29 }
0x1206   :  { %v801_v46 = vpop.permute.xlu0 %800 }
0x1207   :  { %v803_v47 = vadd.f32 %v801_v46, %v711_v38 }
0x1209   :  { %1181 = vtanh.f32 %v803_v47 }
0x1213   :  { %v1182_v48 = vpop.eup %1181 }
0x1214   :  { %807 = vrot.lane.b32.xlu1 %v1182_v48, %s1194_s1 }
0x1218   :  { %817 = vperm.xlu1 %1140, %v954_v49  }
0x1286   :  { %v808_v51 = vpop.permute.xlu1 %807 }
0x1287   :  { %v810_v53 = vmul.f32 %v808_v51, %v805_v50 }
0x1289   :  { %v812_v54 = vadd.f32 %v811_v52, %v810_v53 }
0x128b   :  { %823 = vrot.lane.b32.xlu0 %v812_v54, %s1194_s1 }
0x1297   :  { %v818_v59 = vpop.permute.xlu1 %817 }
0x1298   :  { %v820_v60 = vmul.f32 %v1275_v14, %v818_v59 }
0x129a   :  { %v821_v61 = vadd.f32 %v1281_v17, %v820_v60 }
0x12fd   :  { %v824_v55 = vpop.permute.xlu0 %823 }
0x12fe   :  { %1083 = vmatmul.mubr.msk.f32.vlgmr.msra.gmra.mrb[6].mxu1 %vm53_vm1, %v824_v55 }
0x13d1   :  { %v893_v56 = vpop.f32.mrb[6].mxu1 }
0x13d2   :  { %v894_v57 = vadd.f32 %v1268_v10, %v893_v56  ;;  %v1084_v58 = vpop.f32.mrb[7].mxu1 }
0x13d4   :  { %905 = vrot.lane.b32.xlu0 %v894_v57, %s1193_s29  ;;  %v897_v62 = vadd.f32 %v894_v57, %v821_v61 }
0x13d6   :  { %v956_v63 = vmul.f32 -1.442695, %v897_v62 }
0x13d8   :  { %1183 = vpow2.f32 %v956_v63 }
0x13e2   :  { %v1184_v1 = vpop.eup %1183 }
0x13e3   :  { %v901_v2 = vadd.f32 1.0, %v1184_v1 }
0x13e5   :  { %1185 = vrcp.f32 %v901_v2 }
0x13ef   :  { %v1186_v3 = vpop.eup %1185 }
0x13f0   :  { %v915_v14 = vsub.f32 1.0, %v1186_v3  ;;  %v921_v17 = vmul.f32 %v1186_v3, %v812_v54 }
0x1446   :  { %v906_v6 = vpop.permute.xlu0 %905 }
0x1447   :  { %v908_v7 = vmul.f32 %v1186_v3, %v906_v6 }
0x1449   :  { %910 = vrot.lane.b32.xlu1 %v908_v7, %s1193_s29 }
0x14bb   :  { %v911_v10 = vpop.permute.xlu1 %910 }
0x14bc   :  { %v913_v8 = vadd.f32 %v911_v10, %v821_v61 }
0x14be   :  { %1187 = vtanh.f32 %v913_v8 }
0x14c8   :  { %v1188_v11 = vpop.eup %1187 }
0x14c9   :  { %917 = vrot.lane.b32.xlu0 %v1188_v11, %s1194_s1 }
0x153b   :  { %v918_v12 = vpop.permute.xlu0 %917 }
0x153c   :  { %v920_v13 = vmul.f32 %v918_v12, %v915_v14 }
0x153e   :  { %v922_v15 = vadd.f32 %v921_v17, %v920_v13 }
0x1540   :  { %924 = vrot.lane.b32.xlu1 %v922_v15, %s1194_s1 }
0x15b2   :  { %v925_v16 = vpop.permute.xlu1 %924 }
0x15b3   :  { %927 = vst.msk [vmem:[%s1401_s5] sm:$0xff] %vm53_vm1, %v925_v16 }

// kernel: forward.3
= control target key start
LH: loop header
LB: loop body
LE: loop exit
PB: predicated region body
PF: predicated region fallthrough
CT: control target
= control target key end

     0   :  { %s7511_s21 = smov 0   ;;  %s8564_s0 = inlined_call_operand.vmem [shape: f32[2,4,32], index: 0, kind: input, shape index: {}]   ;;  %s8565_s1 = inlined_call_operand.vmem [shape: f32[32,32], index: 1, kind: input, shape index: {}]   ;;  %s8566_s2 = inlined_call_operand.vmem [shape: f32[1,32], index: 2, kind: input, shape index: {}]   ;;  %s8567_s3 = inlined_call_operand.vmem [shape: f32[2,32,1], index: 3, kind: input, shape index: {}]   ;;  %s8568_s4 = inlined_call_operand.vmem [shape: f32[1,32], index: 4, kind: input, shape index: {}]   ;;  %s8569_s5 = inlined_call_operand.vmem [shape: f32[1,32], index: 5, kind: input, shape index: {}]   ;;  %s8570_s6 = inlined_call_operand.vmem [shape: f32[32,32], index: 6, kind: input, shape index: {}]   ;;  %s8571_s7 = inlined_call_operand.vmem [shape: f32[1,32], index: 7, kind: input, shape index: {}]   ;;  %s8572_s8 = inlined_call_operand.vmem [shape: f32[3,32,32], index: 8, kind: input, shape index: {}]   ;;  %s8573_s9 = inlined_call_operand.vmem [shape: f32[1,32], index: 9, kind: input, shape index: {}]   ;;  %s8574_s10 = inlined_call_operand.vmem [shape: f32[32,32], index: 10, kind: input, shape index: {}]   ;;  %s8575_s11 = inlined_call_operand.vmem [shape: f32[1,32], index: 11, kind: input, shape index: {}]   ;;  %s8576_s12 = inlined_call_operand.vmem [shape: f32[5,32,32], index: 12, kind: input, shape index: {}]   ;;  %s8577_s13 = inlined_call_operand.vmem [shape: f32[1,32], index: 13, kind: input, shape index: {}]   ;;  %s8578_s14 = inlined_call_operand.vmem [shape: f32[32,32,12], index: 14, kind: input, shape index: {}]   ;;  %s8579_s15 = inlined_call_operand.vmem [shape: f32[1,12], index: 15, kind: input, shape index: {}]   ;;  %s8580_s16 = inlined_call_operand.vmem [shape: f32[2,1,12], index: 16, kind: output, shape index: {}]  }
   0x1   :  { %8581 = sst [smem:[#allocation2_spill]] %s8564_s0 }
   0x2 LB: > { %s6064_s22 = sadd.s32 4294967295, %s7418_s21   ;;  %p6068_p0 = scmp.ge.s32.totalorder %s7418_s21, 1  ;;  %s7418_s21 = sphi %s7511_s21, %s26_s21  }
   0x3   : > { %p471_p1 = scmp.lt.s32.totalorder %s7418_s21, 3 }
   0x5   : > { %p472_p2 = pnand %p6068_p0, %p471_p1 }
   0x6   : > { %v536_v0 = vld [vmem:[%s8565_s1] sm:$0xff] (!%p472_p2)  ;;  %v537_v1 = vld [vmem:[%s8565_s1 + $0x8] sm:$0xff] (!%p472_p2)  ;;  %v538_v2 = vld [vmem:[%s8565_s1 + $0x10] sm:$0xff] (!%p472_p2)  ;;  %v7420_v3 = vmov (!%p472_p2), 0.0|0.0   ;;  %vm7421_vm0 = vmmov (!%p472_p2), 0   ;;  %v7422_v6 = vmov (!%p472_p2), 0.0  }
   0x7   : > { %475 = sbr.rel (%p472_p2) target bundleno = 2697 (0xa89), region = 84  ;;  %7078 = vmatprep.subr.bf16.mxu0 (!%p472_p2), %v7420_v3  ;;  %v7079_v4 = vpack.c.bf16 (!%p472_p2), %v537_v1, %v536_v0  ;;  %v539_v5 = vld [vmem:[%s8565_s1 + $0x18] sm:$0xff] (!%p472_p2)  ;;  %6498 = vmatprep.mubr.msk.f32.mxu0 (!%p472_p2), %vm7421_vm0, %v7422_v6  ;;  %p523_p3 = scmp.lt.s32.totalorder (!%p472_p2), %s6064_s22, 1  ;;  %vm547_vm1 = vcmask (!%p472_p2), 261120   ;;  %v6072_v9 = vld [vmem:[%s8566_s2] ss:$0 sm:$0xff] (!%p472_p2) }
   0x8   : > { %6501 = vmatprep.subr.mxu1 (!%p472_p2), %v7422_v6  ;;  %6503 = vmatprep.mubr.msk.f32.mxu1 (!%p472_p2), %vm7421_vm0, %v7422_v6  ;;  %v7082_v7 = vpack.c.bf16 (!%p472_p2), %v539_v5, %v538_v2  ;;  %s8582_s19 = sld [smem:[#allocation2_spill]] (!%p472_p2)  ;;  %s7423_s25 = smov (!%p472_p2), 112   ;;  %vm624_vm2 = vcmask (!%p472_p2), 130048   ;;  %v7424_v14 = vmov (!%p472_p2), 0   ;;  %vm700_vm3 = vcmask (!%p472_p2), 27648   ;;  %v906_v26 = vld [vmem:[%s8570_s6] sm:$0xff] (!%p472_p2) }
   0x9   : > { %7080 = vmatpush3.bf16.msra.mxu0 (!%p472_p2), %v7079_v4  ;;  %7402 = vset.pattern.permute.xlu1 (!%p472_p2), %v7424_v14  ;;  %v6076_v23 = vld [vmem:[%s8568_s4] ss:$0 sm:$0xff] (!%p472_p2)  ;;  %v907_v28 = vld [vmem:[%s8570_s6 + $0x8] sm:$0xff] (!%p472_p2)  ;;  %v908_v29 = vld [vmem:[%s8570_s6 + $0x10] sm:$0xff] (!%p472_p2)  ;;  %vm1019_vm4 = vcmask (!%p472_p2), 1043456   ;;  %vm1015_vm5 = vcmask (!%p472_p2), 31744  }
   0xa   : > { %7081 = vmatprep.subr.bf16.mxu0 (!%p472_p2), %v7420_v3  ;;  %v6077_v24 = vld [vmem:[%s8569_s5] ss:$0 sm:$0xff] (!%p472_p2)  ;;  %v909_v30 = vld [vmem:[%s8570_s6 + $0x18] sm:$0xff] (!%p472_p2)  ;;  %v7084_v31 = vpack.c.bf16 (!%p472_p2), %v907_v28, %v906_v26  ;;  %v760_v26 = vlaneseq (!%p472_p2) }
   0xb   : > { %v7088_v32 = vpack.c.bf16 (!%p472_p2), %v909_v30, %v908_v29 }
   0xd   : > { %7083 = vmatpush3.bf16.msra.mxu0 (!%p472_p2), %v7082_v7 }
   0xe   : > { %s8584_s22 = smov (!%p523_p3, %s6064_s22), 1  ;;  %6525 = vmatprep.subr.mxu0 %v7422_v6 }
   0xf   : > { %s6069_s0 = sshll.u32 %s8584_s22, 2  ;;  %s6210_s26 = sshll.u32 %s8584_s22, 5 }
  0x10   : > { %s526_s20 = scalar_lea.vmem %s8582_s19, %s6069_s0  ;;  %s531_s29 = scalar_lea.vmem %s8567_s3, %s6210_s26 }
  0x11   : > { %v535_v8 = vld [vmem:[%s526_s20] sm:$0xf]  ;;  %v861_v16 = vld [vmem:[%s531_s29 + $0x8] sm:$0xff]  ;;  %v862_v17 = vld [vmem:[%s531_s29 + $0x10] sm:$0xff]  ;;  %s534_s0 = scalar_lea.vmem %s8580_s16, %s8584_s22 }
  0x12   : > { %6499 = vmatmul.mubr.msk.f32.vlgmr.msra.gmra.mrb[0].mxu0 %vm547_vm1, %v535_v8  ;;  %v860_v15 = vld [vmem:[%s531_s29] sm:$0xff]  ;;  %v863_v18 = vld [vmem:[%s531_s29 + $0x18] sm:$0xff] }
  0x13   : > { %6527 = vmatprep.mubr.msk.f32.mxu0 %vm7421_vm0, %v7422_v6  ;;  %867 = vperm.xlu1 %7402, %v860_v15  }
  0x17   : > { %872 = vperm.xlu1 %7402, %v861_v16   ;;  %v6101_v16 = vld [vmem:[%s8572_s8 + $0x30] sm:$0xff] }
  0x1b   : > { %877 = vperm.xlu1 %7402, %v862_v17   ;;  %v6102_v17 = vld [vmem:[%s8572_s8 + $0x38] sm:$0xff] }
  0x1f   : > { %882 = vperm.xlu1 %7402, %v863_v18   ;;  %v7096_v18 = vpack.c.bf16 %v6102_v17, %v6101_v16  ;;  %v1975_v16 = vld [vmem:[%s8574_s10 + $0x8] sm:$0xff] }
  0x92   : > { %v868_v25 = vpop.permute.xlu1 %867 }
  0x93   : > { %v891_v27 = vmul.f32 %v6076_v23, %v868_v25 }
  0x95   : > { %v902_v33 = vadd.f32 %v6077_v24, %v891_v27 }
  0x96   : > { %v873_v34 = vpop.permute.xlu1 %872 }
  0x97   : > { %v892_v35 = vmul.f32 %v6076_v23, %v873_v34  ;;  %v1749_v34 = vld [vmem:[%s8572_s8 + $0x10] sm:$0xff] }
  0x99   : > { %v903_v36 = vadd.f32 %v6077_v24, %v892_v35  ;;  %v1750_v35 = vld [vmem:[%s8572_s8 + $0x18] sm:$0xff] }
  0x9a   : > { %v878_v37 = vpop.permute.xlu1 %877 }
  0x9b   : > { %v893_v38 = vmul.f32 %v6076_v23, %v878_v37 }
  0x9d   : > { %v904_v39 = vadd.f32 %v6077_v24, %v893_v38 }
  0x9e   : > { %v883_v40 = vpop.permute.xlu1 %882 }
  0x9f   : > { %v894_v41 = vmul.f32 %v6076_v23, %v883_v40 }
  0xa1   : > { %v905_v42 = vadd.f32 %v6077_v24, %v894_v41 }
  0xe5   : > { %v617_v10 = vpop.f32.mrb[0].mxu0 }
  0xe6   : > { %v618_v11 = vadd.f32 %v6072_v9, %v617_v10  ;;  %v6500_v12 = vpop.f32.mrb[1].mxu0 }
  0xe8   : > { %622 = vrot.lane.b32.xlu0 %v618_v11, %s7423_s25 }
 0x15a   : > { %v623_v13 = vpop.permute.xlu0 %622 }
 0x15b   : > { %6502 = vmatpush3.xpose.msk.msra.mxu1 %vm624_vm2, %v623_v13  ;;  %v6099_v13 = vld [vmem:[%s8572_s8 + $0x20] sm:$0xff] }
 0x15c   : > { %7085 = vmatprep.subr.bf16.mxu1 %v7084_v31 }
 0x15e   : > { %6504 = vmatmul.mubr.msk.f32.vlgmr.msra.gmra.mrb[0].mxu1 %vm624_vm2, %v618_v11 }
 0x15f   : > { %7087 = vmatpush3.bf16.msra.mxu1 %v7084_v31  ;;  %6514 = vmatprep.mubr.msk.f32.mxu1 %vm547_vm1, %v902_v33 }
 0x160   : > { %7089 = vmatprep.subr.bf16.mxu1 %v7088_v32 }
 0x163   : > { %7091 = vmatpush3.bf16.msra.mxu1 %v7088_v32 }
 0x164   : > { %6520 = vmatprep.subr.mxu1 %v7422_v6 }
 0x166   : > { %6515 = vmatmul.mubr.msk.f32.vlgmr.msra.gmra.mrb[2].mxu1 %vm547_vm1, %v903_v36  ;;  %v7657_v36 = vshrl.u32 %v760_v26, 7 }
 0x167   : > { %6517 = vmatprep.mubr.msk.f32.mxu1 %vm547_vm1, %v904_v39 }
 0x168   : > { %vm1738_vm6 = vcmp.lt.s32.totalorder %v7657_v36, 4 }
 0x16a   : > { %6518 = vmatmul.mubr.msk.f32.gmra.mrb[4].mxu1 %vm547_vm1, %v905_v42  ;;  %v7104_v42 = vpack.c.bf16 %v1750_v35, %v1749_v34 }
 0x16b   : > { %6522 = vmatprep.mubr.msk.f32.mxu1 %vm7421_vm0, %v7422_v6 }
 0x231   : > { %v695_v19 = vpop.f32.mrb[0].mxu1 }
 0x232   : > { %v699_v20 = vmul.f32 0.25, %v695_v19  ;;  %v6505_v21 = vpop.f32.mrb[1].mxu1  ;;  %v1747_v19 = vld [vmem:[%s8572_s8] sm:$0xff] }
 0x234   : > { %v701_v22 = vsel %vm700_vm3, %v699_v20, -inf }
 0x235   : > { %702 = vmax.xlane.f32.xlu0 %v701_v22  ;;  %v6098_v22 = vld [vmem:[%s8571_s7] ss:$0 sm:$0xff] }
 0x236   : > { %v1603_v23 = vcombine.high %v6098_v22, %v6098_v22 }
 0x239   : > { %v6516_v51 = vpop.f32.mrb[2].mxu1 }
 0x23a   : > { %v988_v52 = vpop.f32.mrb[3].mxu1  ;;  %v1012_v10 = vcombine.high %v6516_v51, %v6516_v51 }
 0x23b   : > { %v1011_v53 = vcombine.high %v988_v52, %v988_v52  ;;  %6521 = vmatpush3.msk.msra.mxu1 %vm1019_vm4, %v988_v52 }
 0x23c   : > { %6535 = vmatprep.subr.mxu1 %v7422_v6 }
 0x23d   : > { %v6519_v54 = vpop.f32.mrb[4].mxu1  ;;  %6526 = vmatpush3.msk.msra.mxu0 %vm1019_vm4, %v1011_v53 }
 0x23e   : > { %v998_v55 = vpop.f32.mrb[5].mxu1  ;;  %6530 = vmatprep.subr.mxu0 %v7422_v6  ;;  %v1014_v12 = vcombine.high %v6519_v54, %v6519_v54 }
 0x23f   : > { %v1013_v11 = vcombine.high %v998_v55, %v998_v55 }
 0x2c2   : > { %v703_v43 = vpop.xlane.xlu0 %702 }
 0x2c3   : > { %v704_v44 = vsub.f32 %v699_v20, %v703_v43  ;;  %v1748_v20 = vld [vmem:[%s8572_s8 + $0x8] sm:$0xff] }
 0x2c4   : > { %v7100_v21 = vpack.c.bf16 %v1748_v20, %v1747_v19  ;;  %v1977_v19 = vld [vmem:[%s8574_s10 + $0x18] sm:$0xff] }
 0x2c5   : > { %v705_v45 = vmul.f32 1.442695, %v704_v44 }
 0x2c7   : > { %7404 = vpow2.f32 %v705_v45  ;;  %v6112_v45 = vld [vmem:[%s8572_s8 + $0x40] sm:$0xff] }
 0x2d1   : > { %v7405_v46 = vpop.eup %7404 }
 0x2d2   : > { %v707_v47 = vsel %vm700_vm3, %v7405_v46, 0.0 }
 0x2d3   : > { %708 = vadd.xlane.f32.xlu1 %v707_v47 }
 0x360   : > { %v709_v48 = vpop.xlane.xlu1 %708 }
 0x361   : > { %7406 = vrcp.f32 %v709_v48 }
 0x36b   : > { %v7407_v49 = vpop.eup %7406 }
 0x36c   : > { %v711_v50 = vmul.f32 %v7407_v49, %v7405_v46  ;;  %v6113_v46 = vld [vmem:[%s8572_s8 + $0x48] sm:$0xff] }
 0x36e   : > { %712 = vxpose.xlu0.b32.start.end [1/1] (short) (narrow) %v711_v50, 8  ;;  %v748_v58 = vsel %vm700_vm3, %v711_v50, 0.0 }
 0x36f   : > { %v749_v59 = vrot.slane %v748_v58, 4 }
 0x371   : > { %v750_v60 = vadd.f32 %v749_v59, %v748_v58 }
 0x373   : > { %v751_v61 = vrot.slane %v750_v60, 2 }
 0x375   : > { %v752_v62 = vadd.f32 %v751_v61, %v750_v60 }
 0x377   : > { %v753_v63 = vrot.slane %v752_v62, 1 }
 0x379   : > { %v754_v0 = vadd.f32 %v753_v63, %v752_v62  ;;  %v7672_v63 = vadd.s32 4294967292, %v7657_v36 }
 0x37b   : > { %v755_v2 = vmax.f32 %v754_v0, 1e-12  ;;  %vm793_vm7 = vcmp.ge.s32.totalorder %v7672_v63, 0 }
 0x397   : > { %7403 = vset.pattern.permute.xlu0 %v7424_v14  ;;  %v6100_v14 = vld [vmem:[%s8572_s8 + $0x28] sm:$0xff] }
 0x398   : > { %v7092_v15 = vpack.c.bf16 %v6100_v14, %v6099_v13 }
 0x3ee   : > { %v728_v56 = vpop.trf.xlu0 }
 0x3ef   : > { %v744_v57 = vsel %vm700_vm3, %v728_v56, 0.0  ;;  %vm5921_vm3 = vcmask 1041409  }
 0x3f0   : > { %745 = vadd.xlane.f32.xlu1 %v744_v57 }
 0x47d   : > { %v746_v1 = vpop.xlane.xlu1 %745 }
 0x47e   : > { %v747_v4 = vmax.f32 %v746_v1, 1e-12 }
 0x480   : > { %7408 = vrsqrt.f32 %v747_v4  ;;  %v6114_v4 = vld [vmem:[%s8572_s8 + $0x50] sm:$0xff] }
 0x481   : > { %7410 = vrsqrt.f32 %v755_v2 }
 0x48a   : > { %v7409_v5 = vpop.eup %7408 }
 0x48b   : > { %v757_v7 = vmul.f32 %v7409_v5, %v728_v56  ;;  %v7411_v8 = vpop.eup %7410  ;;  %v6115_v5 = vld [vmem:[%s8572_s8 + $0x58] sm:$0xff] }
 0x48d   : > { %v7590_v9 = vmul.f32 %v7411_v8, %v757_v7 }
 0x48f   : > { %6523 = vmatmul.mubr.msk.f32.vlgmr.msra.gmra.mrb[6].mxu1 %vm1015_vm5, %v7590_v9  ;;  %6528 = vmatmul.mubr.msk.f32.vlgmr.msra.gmra.mrb[2].mxu0 %vm1015_vm5, %v7590_v9 }
 0x490   : > { %6531 = vmatpush3.msk.msra.mxu0 %vm1019_vm4, %v6516_v51  ;;  %6536 = vmatpush3.msk.msra.mxu1 %vm1019_vm4, %v1012_v10 }
 0x491   : > { %6532 = vmatprep.mubr.msk.f32.mxu0 %vm7421_vm0, %v7422_v6  ;;  %6537 = vmatprep.mubr.msk.f32.mxu1 %vm7421_vm0, %v7422_v6 }
 0x492   : > { %6540 = vmatprep.subr.mxu0 %v7422_v6  ;;  %6545 = vmatprep.subr.mxu1 %v7422_v6 }
 0x493   : > { %6533 = vmatmul.mubr.msk.f32.vlgmr.msra.gmra.mrb[4].mxu0 %vm1015_vm5, %v7590_v9  ;;  %6538 = vmatmul.mubr.msk.f32.vlgmr.msra.gmra.mrb[8].mxu1 %vm1015_vm5, %v7590_v9 }
 0x494   : > { %6541 = vmatpush3.msk.msra.mxu0 %vm1019_vm4, %v998_v55  ;;  %6546 = vmatpush3.msk.msra.mxu1 %vm1019_vm4, %v1013_v11  ;;  %v7108_v55 = vpack.c.bf16 %v6113_v46, %v6112_v45  ;;  %v7112_v11 = vpack.c.bf16 %v6115_v5, %v6114_v4 }
 0x495   : > { %6542 = vmatprep.mubr.msk.f32.mxu0 %vm7421_vm0, %v7422_v6  ;;  %6547 = vmatprep.mubr.msk.f32.mxu1 %vm7421_vm0, %v7422_v6 }
 0x496   : > { %6550 = vmatprep.subr.mxu0 %v7422_v6  ;;  %6555 = vmatprep.subr.mxu1 %v7422_v6 }
 0x497   : > { %6543 = vmatmul.mubr.msk.f32.vlgmr.msra.gmra.mrb[6].mxu0 %vm1015_vm5, %v7590_v9  ;;  %6548 = vmatmul.mubr.msk.f32.vlgmr.msra.gmra.mrb[10].mxu1 %vm1015_vm5, %v7590_v9 }
 0x498   : > { %6551 = vmatpush3.msk.msra.mxu0 %vm1019_vm4, %v6519_v54  ;;  %6556 = vmatpush3.msk.msra.mxu1 %vm1019_vm4, %v1014_v12  ;;  %v764_v12 = vadd.s32 24, %v7657_v36 }
 0x499   : > { %6552 = vmatprep.mubr.msk.f32.mxu0 %vm7421_vm0, %v7422_v6  ;;  %6557 = vmatprep.mubr.msk.f32.mxu1 %vm7421_vm0, %v7422_v6 }
 0x49a   : > { %7093 = vmatprep.subr.bf16.mxu0 %v7092_v15  ;;  %v7695_v13 = vadd.s32 4, %v764_v12  ;;  %v2804_v12 = vld [vmem:[%s8576_s12 + $0x18] sm:$0xff] }
 0x49b   : > { %6553 = vmatmul.mubr.msk.f32.vlgmr.msra.gmra.mrb[8].mxu0 %vm1015_vm5, %v7590_v9  ;;  %6558 = vmatmul.mubr.msk.f32.vlgmr.msra.gmra.mrb[12].mxu1 %vm1015_vm5, %v7590_v9 }
 0x49c   : > { %7095 = vmatpush3.bf16.msra.mxu0 %v7092_v15  ;;  %vm824_vm8 = vcmp.lt.s32.totalorder %v7695_v13, 32  ;;  %v1974_v15 = vld [vmem:[%s8574_s10] sm:$0xff] }
 0x49d   : > { %7097 = vmatprep.subr.bf16.mxu0 %v7096_v18  ;;  %v7116_v17 = vpack.c.bf16 %v1975_v16, %v1974_v15  ;;  %v3456_v13 = vld [vmem:[%s8578_s14] sm:$0xff] }
 0x49f   : > { %7117 = vmatprep.subr.bf16.mxu1 %v7116_v17 }
 0x4a0   : > { %7099 = vmatpush3.bf16.msra.mxu0 %v7096_v18  ;;  %7119 = vmatpush3.bf16.msra.mxu1 %v7116_v17  ;;  %v1976_v18 = vld [vmem:[%s8574_s10 + $0x10] sm:$0xff] }
 0x4a1   : > { %7101 = vmatprep.subr.bf16.mxu0 %v7100_v21  ;;  %v7120_v20 = vpack.c.bf16 %v1977_v19, %v1976_v18 }
 0x4a3   : > { %7121 = vmatprep.subr.bf16.mxu1 %v7120_v20 }
 0x4a4   : > { %7123 = vmatpush3.bf16.msra.mxu1 %v7120_v20  ;;  %v6153_v20 = vld [vmem:[%s8576_s12 + $0x20] sm:$0xff] }
 0x4a5   : > { %6616 = vmatprep.subr.mxu1 %v7422_v6 }
 0x562   : > { %v1088_v24 = vpop.f32.mrb[6].mxu1  ;;  %v1160_v25 = vpop.f32.mrb[2].mxu0 }
 0x563   : > { %v1605_v27 = vadd.f32 %v6098_v22, %v1088_v24  ;;  %v1606_v28 = vadd.f32 %v1603_v23, %v1160_v25  ;;  %v6524_v29 = vpop.f32.mrb[7].mxu1  ;;  %v6529_v30 = vpop.f32.mrb[3].mxu0 }
 0x565   : > { %v1633_v31 = vcombine.low %v1605_v27, %v1606_v28 }
 0x566   : > { %v1232_v32 = vpop.f32.mrb[4].mxu0  ;;  %v1304_v33 = vpop.f32.mrb[8].mxu1 }
 0x567   : > { %v1607_v37 = vadd.f32 %v6098_v22, %v1232_v32  ;;  %v1608_v38 = vadd.f32 %v1603_v23, %v1304_v33  ;;  %v6534_v39 = vpop.f32.mrb[5].mxu0  ;;  %v6539_v40 = vpop.f32.mrb[9].mxu1  ;;  %6568 = vmatprep.mubr.msk.f32.mxu0 %vm547_vm1, %v1633_v31  ;;  %v1734_v47 = vrot.slane %v1633_v31, 4 }
 0x569   : > { %v1634_v41 = vcombine.low %v1607_v37, %v1608_v38 }
 0x56a   : > { %v1376_v43 = vpop.f32.mrb[6].mxu0  ;;  %v1448_v44 = vpop.f32.mrb[10].mxu1 }
 0x56b   : > { %v1735_v48 = vrot.slane %v1634_v41, 4  ;;  %v1609_v49 = vadd.f32 %v6098_v22, %v1376_v43  ;;  %v1610_v50 = vadd.f32 %v1603_v23, %v1448_v44  ;;  %v6544_v51 = vpop.f32.mrb[7].mxu0  ;;  %v6549_v52 = vpop.f32.mrb[11].mxu1  ;;  %6569 = vmatmul.mubr.msk.f32.vlgmr.msra.gmra.mrb[10].mxu0 %vm547_vm1, %v1634_v41 }
 0x56c   : > { %7103 = vmatpush3.bf16.msra.mxu0 %v7100_v21  ;;  %v6103_v21 = vld [vmem:[%s8573_s9] ss:$0 sm:$0xff] }
 0x56d   : > { %v1635_v53 = vcombine.low %v1609_v49, %v1610_v50  ;;  %7105 = vmatprep.subr.bf16.mxu0 %v7104_v42  ;;  %v1741_v54 = vsel %vm1738_vm6, %v1734_v47, %v1735_v48  ;;  %v6143_v50 = vld [vmem:[%s8576_s12 + $0x50] sm:$0xff]  ;;  %v2801_v52 = vld [vmem:[%s8576_s12] sm:$0xff] }
 0x56e   : > { %v1520_v56 = vpop.f32.mrb[8].mxu0  ;;  %v1592_v57 = vpop.f32.mrb[12].mxu1 }
 0x56f   : > { %v1736_v58 = vrot.slane %v1635_v53, 4  ;;  %v1611_v59 = vadd.f32 %v6098_v22, %v1520_v56  ;;  %v1612_v60 = vadd.f32 %v1603_v23, %v1592_v57  ;;  %v6554_v61 = vpop.f32.mrb[9].mxu0  ;;  %v6559_v62 = vpop.f32.mrb[13].mxu1  ;;  %6571 = vmatprep.mubr.msk.f32.mxu0 %vm547_vm1, %v1635_v53  ;;  %v2802_v53 = vld [vmem:[%s8576_s12 + $0x8] sm:$0xff]  ;;  %v6140_v56 = vld [vmem:[%s8575_s11] ss:$0 sm:$0xff] }
 0x570   : > { %7107 = vmatpush3.bf16.msra.mxu0 %v7104_v42 }
 0x571   : > { %v1636_v0 = vcombine.low %v1611_v59, %v1612_v60  ;;  %7109 = vmatprep.subr.bf16.mxu0 %v7108_v55  ;;  %v1740_v1 = vsel %vm1738_vm6, %v1735_v48, %v1736_v58  ;;  %v6142_v48 = vld [vmem:[%s8576_s12 + $0x48] sm:$0xff] }
 0x573   : > { %v1737_v2 = vrot.slane %v1636_v0, 4  ;;  %6572 = vmatmul.mubr.msk.f32.gmra.mrb[12].mxu0 %vm547_vm1, %v1636_v0 }
 0x575   : > { %v1742_v7 = vsel %vm1738_vm6, %v1737_v2, %v1734_v47  ;;  %v1739_v8 = vsel %vm1738_vm6, %v1736_v58, %v1737_v2  ;;  %v6141_v47 = vld [vmem:[%s8576_s12 + $0x40] sm:$0xff]  ;;  %v2666_v58 = vcombine.high %v6140_v56, %v6140_v56 }
 0x576   : > { %v1743_v10 = vsel %vm793_vm7, %v1742_v7, 0.0  ;;  %v1855_v14 = vsel %vm824_vm8, %v1742_v7, 0.0  ;;  %v7124_v49 = vpack.c.bf16 %v6142_v48, %v6141_v47  ;;  %v6163_v47 = vld [vmem:[%s8576_s12 + $0x70] sm:$0xff]  ;;  %v6164_v48 = vld [vmem:[%s8576_s12 + $0x78] sm:$0xff] }
 0x577   : > { %6582 = vmatprep.mubr.msk.f32.mxu0 %vm547_vm1, %v1743_v10 }
 0x578   : > { %6583 = vmatmul.mubr.msk.f32.vlgmr.msra.gmra.mrb[10].mxu0 %vm547_vm1, %v1741_v54 }
 0x579   : > { %6585 = vmatprep.mubr.msk.f32.mxu0 %vm547_vm1, %v1740_v1  ;;  %7111 = vmatpush3.bf16.msra.mxu0 %v7108_v55 }
 0x57a   : > { %7113 = vmatprep.subr.bf16.mxu0 %v7112_v11 }
 0x57c   : > { %6586 = vmatmul.mubr.msk.f32.gmra.mrb[12].mxu0 %vm547_vm1, %v1739_v8 }
 0x57d   : > { %7115 = vmatpush3.bf16.msra.mxu0 %v7112_v11  ;;  %6596 = vmatprep.mubr.msk.f32.mxu0 %vm547_vm1, %v1741_v54  ;;  %v7132_v54 = vpack.c.bf16 %v2802_v53, %v2801_v52  ;;  %v2803_v11 = vld [vmem:[%s8576_s12 + $0x10] sm:$0xff]  ;;  %v6172_v53 = vld [vmem:[%s8576_s12 + $0x98] sm:$0xff] }
 0x57e   : > { %6636 = vmatprep.subr.mxu0 %v7422_v6  ;;  %v7136_v18 = vpack.c.bf16 %v2804_v12, %v2803_v11  ;;  %v6171_v52 = vld [vmem:[%s8576_s12 + $0x90] sm:$0xff] }
 0x580   : > { %6597 = vmatmul.mubr.msk.f32.vlgmr.msra.gmra.mrb[10].mxu0 %vm547_vm1, %v1740_v1 }
 0x581   : > { %6599 = vmatprep.mubr.msk.f32.mxu0 %vm547_vm1, %v1739_v8 }
 0x584   : > { %6600 = vmatmul.mubr.msk.f32.gmra.mrb[12].mxu0 %vm547_vm1, %v1855_v14 }
 0x585   : > { %6638 = vmatprep.mubr.msk.f32.mxu0 %vm7421_vm0, %v7422_v6 }
 0x653   : > { %v6598_v22 = vpop.f32.mrb[10].mxu0 }
 0x654   : > { %v7356_v23 = vadd.f32 %v6598_v22, %v6103_v21  ;;  %v1939_v24 = vpop.f32.mrb[11].mxu0 }
 0x655   : > { %v7357_v25 = vadd.f32 %v6103_v21, %v1939_v24 }
 0x656   : > { %v1967_v26 = vmul.f32 0.01, %v7356_v23  ;;  %vm1963_vm9 = vcmp.gt.f32.partialorder %v7356_v23, 0.0 }
 0x657   : > { %vm1962_vm10 = vcmp.gt.f32.partialorder %v7357_v25, 0.0  ;;  %v1966_v27 = vmul.f32 0.01, %v7357_v25  ;;  %v6601_v28 = vpop.f32.mrb[12].mxu0 }
 0x658   : > { %v7358_v29 = vadd.f32 %v6601_v28, %v6103_v21  ;;  %v1949_v30 = vpop.f32.mrb[13].mxu0  ;;  %v1971_v33 = vsel %vm1963_vm9, %v7356_v23, %v1967_v26  ;;  %vm6003_vm9 = vcmask 90112  }
 0x659   : > { %v7359_v31 = vadd.f32 %v6103_v21, %v1949_v30  ;;  %v1970_v32 = vsel %vm1962_vm10, %v7357_v25, %v1966_v27  ;;  %v6154_v21 = vld [vmem:[%s8576_s12 + $0x28] sm:$0xff] }
 0x65a   : > { %v1969_v34 = vmul.f32 0.01, %v7358_v29  ;;  %6610 = vmatprep.mubr.msk.f32.mxu1 %vm547_vm1, %v1970_v32  ;;  %vm1965_vm11 = vcmp.gt.f32.partialorder %v7358_v29, 0.0  ;;  %v7140_v28 = vpack.c.bf16 %v6154_v21, %v6153_v20 }
 0x65b   : > { %vm1964_vm12 = vcmp.gt.f32.partialorder %v7359_v31, 0.0  ;;  %v1968_v35 = vmul.f32 0.01, %v7359_v31  ;;  %6611 = vmatmul.mubr.msk.f32.vlgmr.msra.gmra.mrb[14].mxu1 %vm547_vm1, %v1971_v33 }
 0x65c   : > { %v1973_v38 = vsel %vm1965_vm11, %v7358_v29, %v1969_v34 }
 0x65d   : > { %v1972_v37 = vsel %vm1964_vm12, %v7359_v31, %v1968_v35 }
 0x65e   : > { %6613 = vmatprep.mubr.msk.f32.mxu1 %vm547_vm1, %v1972_v37 }
 0x65f   : > { %6614 = vmatmul.mubr.msk.f32.gmra.mrb[16].mxu1 %vm547_vm1, %v1973_v38  ;;  %v6155_v38 = vld [vmem:[%s8576_s12 + $0x30] sm:$0xff] }
 0x660   : > { %6618 = vmatprep.mubr.msk.f32.mxu1 %vm7421_vm0, %v7422_v6 }
 0x72e   : > { %v6612_v39 = vpop.f32.mrb[14].mxu1 }
 0x72f   : > { %v2056_v40 = vpop.f32.mrb[15].mxu1  ;;  %v2080_v44 = vcombine.high %v6612_v39, %v6612_v39 }
 0x730   : > { %v2079_v41 = vcombine.high %v2056_v40, %v2056_v40  ;;  %6617 = vmatpush3.msk.msra.mxu1 %vm1019_vm4, %v2056_v40 }
 0x731   : > { %6619 = vmatmul.mubr.msk.f32.vlgmr.msra.gmra.mrb[18].mxu1 %vm1015_vm5, %v7590_v9  ;;  %6621 = vmatprep.subr.mxu1 %v7422_v6 }
 0x732   : > { %v6615_v42 = vpop.f32.mrb[16].mxu1  ;;  %6622 = vmatpush3.msk.msra.mxu1 %vm1019_vm4, %v2079_v41  ;;  %6623 = vmatprep.mubr.msk.f32.mxu1 %vm7421_vm0, %v7422_v6 }
 0x733   : > { %v2066_v43 = vpop.f32.mrb[17].mxu1  ;;  %6626 = vmatprep.subr.mxu1 %v7422_v6  ;;  %v2082_v46 = vcombine.high %v6615_v42, %v6615_v42 }
 0x734   : > { %6637 = vmatpush3.msk.msra.mxu0 %vm1019_vm4, %v2066_v43  ;;  %v2081_v45 = vcombine.high %v2066_v43, %v2066_v43 }
 0x735   : > { %6624 = vmatmul.mubr.msk.f32.vlgmr.msra.gmra.mrb[20].mxu1 %vm1015_vm5, %v7590_v9  ;;  %6639 = vmatmul.mubr.msk.f32.vlgmr.msra.gmra.mrb[14].mxu0 %vm1015_vm5, %v7590_v9 }
 0x736   : > { %6627 = vmatpush3.msk.msra.mxu1 %vm1019_vm4, %v6612_v39  ;;  %6646 = vmatprep.subr.mxu0 %v7422_v6  ;;  %v6156_v39 = vld [vmem:[%s8576_s12 + $0x38] sm:$0xff] }
 0x737   : > { %6647 = vmatpush3.msk.msra.mxu0 %vm1019_vm4, %v6615_v42  ;;  %6628 = vmatprep.mubr.msk.f32.mxu1 %vm7421_vm0, %v7422_v6  ;;  %v7144_v41 = vpack.c.bf16 %v6156_v39, %v6155_v38 }
 0x738   : > { %6631 = vmatprep.subr.mxu1 %v7422_v6  ;;  %6648 = vmatprep.mubr.msk.f32.mxu0 %vm7421_vm0, %v7422_v6 }
 0x739   : > { %6629 = vmatmul.mubr.msk.f32.vlgmr.msra.gmra.mrb[22].mxu1 %vm1015_vm5, %v7590_v9  ;;  %6649 = vmatmul.mubr.msk.f32.vlgmr.msra.gmra.mrb[16].mxu0 %vm1015_vm5, %v7590_v9 }
 0x73a   : > { %6632 = vmatpush3.msk.msra.mxu1 %vm1019_vm4, %v2080_v44  ;;  %6633 = vmatprep.mubr.msk.f32.mxu1 %vm7421_vm0, %v7422_v6  ;;  %v6161_v44 = vld [vmem:[%s8576_s12 + $0x60] sm:$0xff] }
 0x73b   : > { %6641 = vmatprep.subr.mxu1 %v7422_v6  ;;  %7125 = vmatprep.subr.bf16.mxu0 %v7124_v49 }
 0x73c   : > { %7127 = vmatpush3.bf16.msra.mxu0 %v7124_v49 }
 0x73d   : > { %6634 = vmatmul.mubr.msk.f32.vlgmr.msra.gmra.mrb[24].mxu1 %vm1015_vm5, %v7590_v9 }
 0x73e   : > { %6642 = vmatpush3.msk.msra.mxu1 %vm1019_vm4, %v2081_v45  ;;  %6643 = vmatprep.mubr.msk.f32.mxu1 %vm7421_vm0, %v7422_v6  ;;  %v6162_v45 = vld [vmem:[%s8576_s12 + $0x68] sm:$0xff] }
 0x73f   : > { %6651 = vmatprep.subr.mxu1 %v7422_v6 }
 0x741   : > { %6644 = vmatmul.mubr.msk.f32.vlgmr.msra.gmra.mrb[26].mxu1 %vm1015_vm5, %v7590_v9 }
 0x742   : > { %6652 = vmatpush3.msk.msra.mxu1 %vm1019_vm4, %v2082_v46  ;;  %6653 = vmatprep.mubr.msk.f32.mxu1 %vm7421_vm0, %v7422_v6  ;;  %v7148_v46 = vpack.c.bf16 %v6162_v45, %v6161_v44  ;;  %v3484_v45 = vld [vmem:[%s8578_s14 + $0xe0] sm:$0xff]  ;;  %vm5930_vm4 = vcmask 1044484  }
 0x743   : > { %7164 = vmatprep.subr.bf16.mxu1 %v7420_v3 }
 0x745   : > { %6654 = vmatmul.mubr.msk.f32.vlgmr.msra.gmra.mrb[28].mxu1 %vm1015_vm5, %v7590_v9  ;;  %v6144_v9 = vld [vmem:[%s8576_s12 + $0x58] sm:$0xff]  ;;  %vm5933_vm5 = vcmask 1045509  }
 0x746   : > { %6734 = vmatprep.mubr.msk.f32.mxu1 %vm7421_vm0, %v7422_v6  ;;  %v7128_v51 = vpack.c.bf16 %v6144_v9, %v6143_v50  ;;  %v7152_v50 = vpack.c.bf16 %v6164_v48, %v6163_v47  ;;  %v6169_v9 = vld [vmem:[%s8576_s12 + $0x80] sm:$0xff] }
 0x748   : > { %7129 = vmatprep.subr.bf16.mxu0 %v7128_v51 }
 0x749   : > { %7131 = vmatpush3.bf16.msra.mxu0 %v7128_v51  ;;  %v6170_v51 = vld [vmem:[%s8576_s12 + $0x88] sm:$0xff] }
 0x74a   : > { %7133 = vmatprep.subr.bf16.mxu0 %v7132_v54  ;;  %v7156_v63 = vpack.c.bf16 %v6170_v51, %v6169_v9 }
 0x804   : > { %v2151_v55 = vpop.f32.mrb[18].mxu1 }
 0x805   : > { %v6620_v57 = vpop.f32.mrb[19].mxu1  ;;  %v2668_v61 = vadd.f32 %v6140_v56, %v2151_v55 }
 0x808   : > { %v2223_v59 = vpop.f32.mrb[20].mxu1  ;;  %v2439_v60 = vpop.f32.mrb[14].mxu0 }
 0x809   : > { %v2669_v62 = vadd.f32 %v2666_v58, %v2223_v59  ;;  %v6625_v0 = vpop.f32.mrb[21].mxu1  ;;  %v6640_v1 = vpop.f32.mrb[15].mxu0  ;;  %v2672_v23 = vadd.f32 %v6140_v56, %v2439_v60  ;;  %v3459_v59 = vld [vmem:[%s8578_s14 + $0x18] sm:$0xff]  ;;  %v3476_v60 = vld [vmem:[%s8578_s14 + $0xa0] sm:$0xff] }
 0x80a   : > { %v3478_v1 = vld [vmem:[%s8578_s14 + $0xb0] sm:$0xff] }
 0x80b   : > { %v2696_v2 = vcombine.low %v2668_v61, %v2669_v62  ;;  %v3477_v62 = vld [vmem:[%s8578_s14 + $0xa8] sm:$0xff] }
 0x80c   : > { %v2295_v4 = vpop.f32.mrb[22].mxu1  ;;  %v2583_v5 = vpop.f32.mrb[16].mxu0  ;;  %v7195_v0 = vpack.c.bf16 %v3477_v62, %v3476_v60 }
 0x80d   : > { %v6630_v7 = vpop.f32.mrb[23].mxu1  ;;  %v6650_v8 = vpop.f32.mrb[17].mxu0  ;;  %6664 = vmatprep.mubr.msk.f32.mxu0 %vm547_vm1, %v2696_v2  ;;  %v2670_v14 = vadd.f32 %v6140_v56, %v2295_v4  ;;  %v2906_v22 = vrot.slane %v2696_v2, 4  ;;  %v2674_v31 = vadd.f32 %v6140_v56, %v2583_v5  ;;  %v3457_v56 = vld [vmem:[%s8578_s14 + $0x8] sm:$0xff]  ;;  %v7425_v5 = vmov 1966171168  }
 0x80e   : > { %v7165_v57 = vpack.c.bf16 %v3457_v56, %v3456_v13  ;;  %v3262_v7 = vunpack.c.l.s4 %v7425_v5  ;;  %v3486_v13 = vld [vmem:[%s8578_s14 + $0xf0] sm:$0xff]  ;;  %v3487_v56 = vld [vmem:[%s8578_s14 + $0xf8] sm:$0xff] }
 0x810   : > { %v2367_v10 = vpop.f32.mrb[24].mxu1  ;;  %7166 = vmatpush3.bf16.msra.mxu1 %v7165_v57  ;;  %v3263_v8 = vunpack.c.0.s8 %v3262_v7  ;;  %v7210_v7 = vpack.c.bf16 %v3487_v56, %v3486_v13  ;;  %v3510_v13 = vld [vmem:[%s8578_s14 + $0x1b0] sm:$0xff]  ;;  %v3511_v56 = vld [vmem:[%s8578_s14 + $0x1b8] sm:$0xff] }
 0x811   : > { %v2671_v15 = vadd.f32 %v2666_v58, %v2367_v10  ;;  %v6635_v16 = vpop.f32.mrb[25].mxu1  ;;  %7167 = vmatprep.subr.bf16.mxu1 %v7420_v3  ;;  %v6145_v10 = vld [vmem:[%s8577_s13] ss:$0 sm:$0xff] }
 0x813   : > { %v7802_v17 = vcombine.low %v2670_v14, %v2671_v15  ;;  %v7910_v15 = vsub.s32 %v3263_v8, %v7657_v36 }
 0x814   : > { %v2511_v19 = vpop.f32.mrb[26].mxu1 }
 0x815   : > { %v2907_v24 = vrot.slane %v7802_v17, 4  ;;  %v2673_v25 = vadd.f32 %v2666_v58, %v2511_v19  ;;  %v6645_v26 = vpop.f32.mrb[27].mxu1  ;;  %6665 = vmatmul.mubr.msk.f32.vlgmr.msra.gmra.mrb[18].mxu0 %vm547_vm1, %v7802_v17 }
 0x816   : > { %7135 = vmatpush3.bf16.msra.mxu0 %v7132_v54  ;;  %v7160_v54 = vpack.c.bf16 %v6172_v53, %v6171_v52  ;;  %v3464_v52 = vld [vmem:[%s8578_s14 + $0x40] sm:$0xff]  ;;  %v3465_v53 = vld [vmem:[%s8578_s14 + $0x48] sm:$0xff] }
 0x817   : > { %v2698_v27 = vcombine.low %v2672_v23, %v2673_v25  ;;  %7137 = vmatprep.subr.bf16.mxu0 %v7136_v18  ;;  %v2912_v29 = vsel %vm1738_vm6, %v2906_v22, %v2907_v24  ;;  %v3460_v23 = vld [vmem:[%s8578_s14 + $0x20] sm:$0xff] }
 0x818   : > { %v2655_v30 = vpop.f32.mrb[28].mxu1 }
 0x819   : > { %v2675_v32 = vadd.f32 %v2666_v58, %v2655_v30  ;;  %v6655_v33 = vpop.f32.mrb[29].mxu1  ;;  %6667 = vmatprep.mubr.msk.f32.mxu0 %vm547_vm1, %v2698_v27  ;;  %v2908_v34 = vrot.slane %v2698_v27, 4  ;;  %v3458_v58 = vld [vmem:[%s8578_s14 + $0x10] sm:$0xff] }
 0x81a   : > { %7139 = vmatpush3.bf16.msra.mxu0 %v7136_v18  ;;  %v7168_v61 = vpack.c.bf16 %v3459_v59, %v3458_v58 }
 0x81b   : > { %v2699_v35 = vcombine.low %v2674_v31, %v2675_v32  ;;  %7141 = vmatprep.subr.bf16.mxu0 %v7140_v28  ;;  %v2911_v37 = vsel %vm1738_vm6, %v2907_v24, %v2908_v34  ;;  %v3461_v24 = vld [vmem:[%s8578_s14 + $0x28] sm:$0xff] }
 0x81c   : > { %7169 = vmatpush3.bf16.msra.mxu1 %v7168_v61 }
 0x81d   : > { %v2909_v40 = vrot.slane %v2699_v35, 4  ;;  %6668 = vmatmul.mubr.msk.f32.gmra.mrb[20].mxu0 %vm547_vm1, %v2699_v35  ;;  %7170 = vmatprep.subr.bf16.mxu1 %v7420_v3 }
 0x81e   : > { %6678 = vmatprep.mubr.f32.mxu0 %v7422_v6 }
 0x81f   : > { %v2913_v42 = vsel %vm1738_vm6, %v2909_v40, %v2906_v22  ;;  %v2910_v43 = vsel %vm1738_vm6, %v2908_v34, %v2909_v40  ;;  %v7171_v34 = vpack.c.bf16 %v3461_v24, %v3460_v23  ;;  %v3462_v40 = vld [vmem:[%s8578_s14 + $0x30] sm:$0xff]  ;;  %v3468_v24 = vld [vmem:[%s8578_s14 + $0x60] sm:$0xff]  ;;  %vm5936_vm6 = vcmask 1046534  }
 0x820   : > { %v2914_v49 = vsel %vm793_vm7, %v2913_v42, 0.0  ;;  %v3027_v55 = vsel %vm824_vm8, %v2913_v42, 0.0  ;;  %vm5939_vm7 = vcmask 1047559   ;;  %vm5987_vm8 = vcmask 97280  }
 0x821   : > { %6679 = vmatmul.mubr.msk.f32.vlgmr.msra.gmra.mrb[18].mxu0 %vm547_vm1, %v2696_v2  ;;  %v3479_v2 = vld [vmem:[%s8578_s14 + $0xb8] sm:$0xff] }
 0x822   : > { %6681 = vmatprep.mubr.msk.f32.mxu0 %vm547_vm1, %v7802_v17  ;;  %7143 = vmatpush3.bf16.msra.mxu0 %v7140_v28  ;;  %v7198_v4 = vpack.c.bf16 %v3479_v2, %v3478_v1  ;;  %v7177_v1 = vpack.c.bf16 %v3465_v53, %v3464_v52  ;;  %v3480_v53 = vld [vmem:[%s8578_s14 + $0xc0] sm:$0xff] }
 0x823   : > { %7145 = vmatprep.subr.bf16.mxu0 %v7144_v41 }
 0x825   : > { %6682 = vmatmul.mubr.msk.f32.gmra.mrb[20].mxu0 %vm547_vm1, %v2698_v27 }
 0x826   : > { %7147 = vmatpush3.bf16.msra.mxu0 %v7144_v41  ;;  %6692 = vmatprep.mubr.msk.f32.mxu0 %vm547_vm1, %v2914_v49  ;;  %v3463_v41 = vld [vmem:[%s8578_s14 + $0x38] sm:$0xff] }
 0x827   : > { %7149 = vmatprep.subr.bf16.mxu0 %v7148_v46 }
 0x829   : > { %6693 = vmatmul.mubr.msk.f32.vlgmr.msra.gmra.mrb[18].mxu0 %vm547_vm1, %v2912_v29 }
 0x82a   : > { %6695 = vmatprep.mubr.msk.f32.mxu0 %vm547_vm1, %v2911_v37  ;;  %7151 = vmatpush3.bf16.msra.mxu0 %v7148_v46  ;;  %v3485_v46 = vld [vmem:[%s8578_s14 + $0xe8] sm:$0xff] }
 0x82b   : > { %7153 = vmatprep.subr.bf16.mxu0 %v7152_v50 }
 0x82d   : > { %6696 = vmatmul.mubr.msk.f32.gmra.mrb[20].mxu0 %vm547_vm1, %v2910_v43 }
 0x82e   : > { %7155 = vmatpush3.bf16.msra.mxu0 %v7152_v50  ;;  %6706 = vmatprep.mubr.msk.f32.mxu0 %vm547_vm1, %v2912_v29 }
 0x82f   : > { %7157 = vmatprep.subr.bf16.mxu0 %v7156_v63 }
 0x831   : > { %6707 = vmatmul.mubr.msk.f32.vlgmr.msra.gmra.mrb[18].mxu0 %vm547_vm1, %v2911_v37 }
 0x832   : > { %6709 = vmatprep.mubr.msk.f32.mxu0 %vm547_vm1, %v2910_v43  ;;  %7159 = vmatpush3.bf16.msra.mxu0 %v7156_v63  ;;  %v7174_v63 = vpack.c.bf16 %v3463_v41, %v3462_v40  ;;  %v3473_v40 = vld [vmem:[%s8578_s14 + $0x88] sm:$0xff]  ;;  %v3502_v41 = vld [vmem:[%s8578_s14 + $0x170] sm:$0xff] }
 0x833   : > { %7161 = vmatprep.subr.bf16.mxu0 %v7160_v54 }
 0x835   : > { %6710 = vmatmul.mubr.msk.f32.gmra.mrb[20].mxu0 %vm547_vm1, %v3027_v55  ;;  %v7207_v55 = vpack.c.bf16 %v3485_v46, %v3484_v45 }
 0x836   : > { %7163 = vmatpush3.bf16.msra.mxu0 %v7160_v54  ;;  %6720 = vmatprep.mubr.msk.f32.mxu0 %vm547_vm1, %v7802_v17 }
 0x837   : > { %7194 = vmatprep.subr.bf16.mxu0 %v7420_v3 }
 0x839   : > { %6721 = vmatmul.mubr.msk.f32.vlgmr.msra.gmra.mrb[18].mxu0 %vm547_vm1, %v2698_v27 }
 0x83a   : > { %6723 = vmatprep.mubr.msk.f32.mxu0 %vm547_vm1, %v2699_v35  ;;  %7196 = vmatpush3.bf16.msra.mxu0 %v7195_v0 }
 0x83b   : > { %7197 = vmatprep.subr.bf16.mxu0 %v7420_v3 }
 0x83d   : > { %6724 = vmatmul.mubr.f32.gmra.mrb[20].mxu0 %v7422_v6 }
 0x83e   : > { %6789 = vmatprep.mubr.msk.f32.mxu0 %vm7421_vm0, %v7422_v6  ;;  %7199 = vmatpush3.bf16.msra.mxu0 %v7198_v4 }
 0x83f   : > { %7206 = vmatprep.subr.bf16.mxu0 %v7420_v3 }
 0x90c   : > { %v6722_v11 = vpop.f32.mrb[18].mxu0 }
 0x90d   : > { %v7360_v12 = vadd.f32 %v6722_v11, %v6145_v10  ;;  %v3221_v14 = vpop.f32.mrb[19].mxu0 }
 0x90e   : > { %v7361_v16 = vadd.f32 %v6145_v10, %v3221_v14  ;;  %v3467_v14 = vld [vmem:[%s8578_s14 + $0x58] sm:$0xff] }
 0x90f   : > { %vm3245_vm13 = vcmp.gt.f32.partialorder %v7360_v12, 0.0  ;;  %v3249_v17 = vmul.f32 0.01, %v7360_v12 }
 0x910   : > { %vm3244_vm14 = vcmp.gt.f32.partialorder %v7361_v16, 0.0  ;;  %v3248_v18 = vmul.f32 0.01, %v7361_v16  ;;  %v6725_v19 = vpop.f32.mrb[20].mxu0 }
 0x911   : > { %v3253_v20 = vsel %vm3245_vm13, %v7360_v12, %v3249_v17  ;;  %v7362_v21 = vadd.f32 %v6725_v19, %v6145_v10  ;;  %v3231_v22 = vpop.f32.mrb[21].mxu0  ;;  %v3466_v12 = vld [vmem:[%s8578_s14 + $0x50] sm:$0xff]  ;;  %v3493_v17 = vld [vmem:[%s8578_s14 + $0x128] sm:$0xff] }
 0x912   : > { %v3309_v25 = vcombine.high %v3253_v20, %v3253_v20  ;;  %v3316_v36 = vrot.slane %v3253_v20, %v7910_v15  ;;  %v3252_v26 = vsel %vm3244_vm14, %v7361_v16, %v3248_v18  ;;  %v7363_v27 = vadd.f32 %v6145_v10, %v3231_v22  ;;  %v3492_v16 = vld [vmem:[%s8578_s14 + $0x120] sm:$0xff] }
 0x913   : > { %v3260_v28 = vcombine.high %v3252_v26, %v3252_v26  ;;  %v3267_v29 = vrot.slane %v3252_v26, %v7910_v15  ;;  %vm3247_vm15 = vcmp.gt.f32.partialorder %v7362_v21, 0.0  ;;  %v3251_v30 = vmul.f32 0.01, %v7362_v21 }
 0x914   : > { %v3323_v31 = vrot.slane %v3309_v25, %v7910_v15  ;;  %v3324_v32 = vcombine.high %v3316_v36, %v3316_v36  ;;  %v7922_v33 = vrot.slane %v3316_v36, %v7910_v15  ;;  %vm3246_vm2 = vcmp.gt.f32.partialorder %v7363_v27, 0.0  ;;  %v3469_v25 = vld [vmem:[%s8578_s14 + $0x68] sm:$0xff] }
 0x915   : > { %v3274_v35 = vrot.slane %v3260_v28, %v7910_v15  ;;  %v3275_v37 = vcombine.high %v3267_v29, %v3267_v29  ;;  %v7926_v38 = vrot.slane %v3267_v29, %v7910_v15  ;;  %v3255_v39 = vsel %vm3247_vm15, %v7362_v21, %v3251_v30  ;;  %v3495_v28 = vld [vmem:[%s8578_s14 + $0x138] sm:$0xff] }
 0x916   : > { %v3325_v42 = vcombine.high %v3323_v31, %v3323_v31  ;;  %v7935_v43 = vrot.slane %v3323_v31, %v7910_v15  ;;  %v7938_v44 = vrot.slane %v3324_v32, %v7910_v15  ;;  %v3407_v50 = vcombine.high %v3255_v39, %v3255_v39  ;;  %v3470_v31 = vld [vmem:[%s8578_s14 + $0x70] sm:$0xff]  ;;  %v3471_v32 = vld [vmem:[%s8578_s14 + $0x78] sm:$0xff] }
 0x917   : > { %v3276_v47 = vcombine.high %v3274_v35, %v3274_v35  ;;  %v7947_v48 = vrot.slane %v3274_v35, %v7910_v15  ;;  %v7950_v49 = vrot.slane %v3275_v37, %v7910_v15  ;;  %6735 = vmatmul.mubr.msk.f32.vlgmr.msra.gmra.mrb[30].mxu1 %vm547_vm1, %v7926_v38  ;;  %v3414_v9 = vrot.slane %v3255_v39, %v7910_v15  ;;  %v3501_v35 = vld [vmem:[%s8578_s14 + $0x168] sm:$0xff]  ;;  %v3472_v39 = vld [vmem:[%s8578_s14 + $0x80] sm:$0xff] }
 0x918   : > { %v3250_v51 = vmul.f32 0.01, %v7363_v27  ;;  %7172 = vmatpush3.bf16.msra.mxu1 %v7171_v34  ;;  %6745 = vmatprep.mubr.msk.f32.mxu1 %vm7421_vm0, %v7422_v6  ;;  %v7972_v57 = vrot.slane %v3325_v42, %v7910_v15  ;;  %v3421_v58 = vrot.slane %v3407_v50, %v7910_v15  ;;  %v7180_v22 = vpack.c.bf16 %v3467_v14, %v3466_v12  ;;  %v3500_v34 = vld [vmem:[%s8578_s14 + $0x160] sm:$0xff]  ;;  %v3503_v42 = vld [vmem:[%s8578_s14 + $0x178] sm:$0xff]  ;;  %v3474_v50 = vld [vmem:[%s8578_s14 + $0x90] sm:$0xff] }
 0x919   : > { %v3304_v54 = vrot.slane %v3276_v47, %v7910_v15  ;;  %7173 = vmatprep.subr.bf16.mxu1 %v7420_v3  ;;  %v3422_v59 = vcombine.high %v3414_v9, %v3414_v9  ;;  %v7976_v60 = vrot.slane %v3414_v9, %v7910_v15  ;;  %v7219_v23 = vpack.c.bf16 %v3493_v17, %v3492_v16  ;;  %v3475_v9 = vld [vmem:[%s8578_s14 + $0x98] sm:$0xff] }
 0x91a   : > { %v3254_v61 = vsel %vm3246_vm2, %v7363_v27, %v3250_v51  ;;  %v3423_v2 = vcombine.high %v3421_v58, %v3421_v58  ;;  %v7982_v4 = vrot.slane %v3421_v58, %v7910_v15  ;;  %v3494_v27 = vld [vmem:[%s8578_s14 + $0x130] sm:$0xff]  ;;  %v7183_v29 = vpack.c.bf16 %v3469_v25, %v3468_v24  ;;  %v3509_v51 = vld [vmem:[%s8578_s14 + $0x1a8] sm:$0xff]  ;;  %v3519_v12 = vld [vmem:[%s8578_s14 + $0x1f8] sm:$0xff] }
 0x91b   : > { %v3358_v62 = vcombine.high %v3254_v61, %v3254_v61  ;;  %v3365_v0 = vrot.slane %v3254_v61, %v7910_v15  ;;  %6790 = vmatmul.mubr.msk.f32.vlgmr.msra.gmra.mrb[22].mxu0 %vm547_vm1, %v3304_v54  ;;  %v7985_v5 = vrot.slane %v3422_v59, %v7910_v15  ;;  %v3308_v26 = vcombine.high %v3304_v54, %v3304_v54  ;;  %v3481_v54 = vld [vmem:[%s8578_s14 + $0xc8] sm:$0xff]  ;;  %v3483_v61 = vld [vmem:[%s8578_s14 + $0xd8] sm:$0xff] }
 0x91c   : > { %7175 = vmatpush3.bf16.msra.mxu1 %v7174_v63  ;;  %7208 = vmatpush3.bf16.msra.mxu0 %v7207_v55  ;;  %v8008_v18 = vrot.slane %v3423_v2, %v7910_v15  ;;  %v3305_v30 = vcombine.high %v7926_v38, %v7926_v38  ;;  %v7186_v37 = vpack.c.bf16 %v3471_v32, %v3470_v31  ;;  %v3499_v32 = vld [vmem:[%s8578_s14 + $0x158] sm:$0xff] }
 0x91d   : > { %v3372_v8 = vrot.slane %v3358_v62, %v7910_v15  ;;  %v3373_v10 = vcombine.high %v3365_v0, %v3365_v0  ;;  %v7989_v11 = vrot.slane %v3365_v0, %v7910_v15  ;;  %7176 = vmatprep.subr.bf16.mxu1 %v7420_v3  ;;  %7209 = vmatprep.subr.bf16.mxu0 %v7420_v3  ;;  %v3516_v62 = vld [vmem:[%s8578_s14 + $0x1e0] sm:$0xff]  ;;  %v3517_v0 = vld [vmem:[%s8578_s14 + $0x1e8] sm:$0xff] }
 0x91e   : > { %6811 = vmatprep.mubr.msk.f32.mxu0 %vm7421_vm0, %v7422_v6  ;;  %v7231_v38 = vpack.c.bf16 %v3501_v35, %v3500_v34  ;;  %v7189_v45 = vpack.c.bf16 %v3473_v40, %v3472_v39  ;;  %v3307_v46 = vcombine.high %v7950_v49, %v7950_v49  ;;  %v7234_v47 = vpack.c.bf16 %v3503_v42, %v3502_v41  ;;  %v3532_v34 = vld [vmem:[%s8578_s14 + $0x260] sm:$0xff]  ;;  %v3533_v35 = vld [vmem:[%s8578_s14 + $0x268] sm:$0xff]  ;;  %v3534_v41 = vld [vmem:[%s8578_s14 + $0x270] sm:$0xff] }
 0x91f   : > { %v3374_v19 = vcombine.high %v3372_v8, %v3372_v8  ;;  %v8011_v20 = vrot.slane %v3372_v8, %v7910_v15  ;;  %v8014_v21 = vrot.slane %v3373_v10, %v7910_v15  ;;  %6746 = vmatmul.mubr.msk.f32.vlgmr.msra.gmra.mrb[32].mxu1 %vm547_vm1, %v7950_v49  ;;  %v3508_v49 = vld [vmem:[%s8578_s14 + $0x1a0] sm:$0xff]  ;;  %v7192_v63 = vpack.c.bf16 %v3475_v9, %v3474_v50  ;;  %v3489_v8 = vld [vmem:[%s8578_s14 + $0x108] sm:$0xff]  ;;  %v3518_v10 = vld [vmem:[%s8578_s14 + $0x1f0] sm:$0xff] }
 0x920   : > { %7178 = vmatpush3.bf16.msra.mxu1 %v7177_v1  ;;  %6756 = vmatprep.mubr.msk.f32.mxu1 %vm7421_vm0, %v7422_v6  ;;  %v7243_v52 = vpack.c.bf16 %v3509_v51, %v3508_v49  ;;  %v3356_v55 = vcombine.high %v7938_v44, %v7938_v44  ;;  %v7201_v58 = vpack.c.bf16 %v3481_v54, %v3480_v53  ;;  %v3504_v39 = vld [vmem:[%s8578_s14 + $0x180] sm:$0xff]  ;;  %v3505_v40 = vld [vmem:[%s8578_s14 + $0x188] sm:$0xff]  ;;  %v3535_v42 = vld [vmem:[%s8578_s14 + $0x278] sm:$0xff] }
 0x921   : > { %7211 = vmatpush3.bf16.msra.mxu0 %v7210_v7  ;;  %7179 = vmatprep.subr.bf16.mxu1 %v7420_v3  ;;  %v8028_v36 = vrot.slane %v3374_v19, %v7910_v15  ;;  %v7222_v15 = vpack.c.bf16 %v3495_v28, %v3494_v27  ;;  %v7246_v59 = vpack.c.bf16 %v3511_v56, %v3510_v13  ;;  %v3488_v7 = vld [vmem:[%s8578_s14 + $0x100] sm:$0xff]  ;;  %v3490_v19 = vld [vmem:[%s8578_s14 + $0x110] sm:$0xff]  ;;  %v3497_v27 = vld [vmem:[%s8578_s14 + $0x148] sm:$0xff] }
 0x922   : > { %7218 = vmatprep.subr.bf16.mxu0 %v7420_v3  ;;  %v7255_v2 = vpack.c.bf16 %v3517_v0, %v3516_v62  ;;  %v7213_v14 = vpack.c.bf16 %v3489_v8, %v3488_v7  ;;  %v3306_v16 = vcombine.high %v7947_v48, %v7947_v48  ;;  %v7258_v17 = vpack.c.bf16 %v3519_v12, %v3518_v10  ;;  %v3506_v50 = vld [vmem:[%s8578_s14 + $0x190] sm:$0xff]  ;;  %v3507_v9 = vld [vmem:[%s8578_s14 + $0x198] sm:$0xff]  ;;  %v3541_v49 = vld [vmem:[%s8578_s14 + $0x2a8] sm:$0xff] }
 0x923   : > { %v3357_v28 = vcombine.high %v7972_v57, %v7972_v57  ;;  %v7240_v51 = vpack.c.bf16 %v3507_v9, %v3506_v50  ;;  %v3513_v53 = vld [vmem:[%s8578_s14 + $0x1c8] sm:$0xff]  ;;  %v3405_v54 = vcombine.high %v8014_v21, %v8014_v21  ;;  %v3543_v13 = vld [vmem:[%s8578_s14 + $0x2b8] sm:$0xff]  ;;  %v3550_v7 = vld [vmem:[%s8578_s14 + $0x2f0] sm:$0xff]  ;;  %v3355_v12 = vcombine.high %v7935_v43, %v7935_v43 }
 0x924   : > { %6812 = vmatmul.mubr.msk.f32.vlgmr.msra.gmra.mrb[24].mxu0 %vm547_vm1, %v3308_v26  ;;  %7181 = vmatpush3.bf16.msra.mxu1 %v7180_v22  ;;  %v3491_v22 = vld [vmem:[%s8578_s14 + $0x118] sm:$0xff]  ;;  %v3496_v26 = vld [vmem:[%s8578_s14 + $0x140] sm:$0xff] }
 0x925   : > { %7220 = vmatpush3.bf16.msra.mxu0 %v7219_v23  ;;  %7182 = vmatprep.subr.bf16.mxu1 %v7420_v3  ;;  %v3525_v23 = vld [vmem:[%s8578_s14 + $0x228] sm:$0xff]  ;;  %v7216_v24 = vpack.c.bf16 %v3491_v22, %v3490_v19  ;;  %v3551_v8 = vld [vmem:[%s8578_s14 + $0x2f8] sm:$0xff]  ;;  %v3544_v9 = vld [vmem:[%s8578_s14 + $0x2c0] sm:$0xff] }
 0x926   : > { %7221 = vmatprep.subr.bf16.mxu0 %v7420_v3  ;;  %6833 = vmatprep.mubr.msk.f32.mxu0 %vm7421_vm0, %v7422_v6  ;;  %v3557_v19 = vld [vmem:[%s8578_s14 + $0x328] sm:$0xff] }
 0x927   : > { %6757 = vmatmul.mubr.msk.f32.vlgmr.msra.gmra.mrb[34].mxu1 %vm547_vm1, %v3305_v30  ;;  %v3527_v30 = vld [vmem:[%s8578_s14 + $0x238] sm:$0xff] }
 0x928   : > { %7184 = vmatpush3.bf16.msra.mxu1 %v7183_v29  ;;  %6767 = vmatprep.mubr.msk.f32.mxu1 %vm7421_vm0, %v7422_v6  ;;  %v3526_v29 = vld [vmem:[%s8578_s14 + $0x230] sm:$0xff] }
 0x929   : > { %7223 = vmatpush3.bf16.msra.mxu0 %v7222_v15  ;;  %7185 = vmatprep.subr.bf16.mxu1 %v7420_v3  ;;  %v7225_v15 = vpack.c.bf16 %v3497_v27, %v3496_v26  ;;  %v7270_v31 = vpack.c.bf16 %v3527_v30, %v3526_v29  ;;  %v3558_v26 = vld [vmem:[%s8578_s14 + $0x330] sm:$0xff]  ;;  %v3559_v27 = vld [vmem:[%s8578_s14 + $0x338] sm:$0xff] }
 0x92a   : > { %7230 = vmatprep.subr.bf16.mxu0 %v7420_v3  ;;  %v7318_v29 = vpack.c.bf16 %v3559_v27, %v3558_v26  ;;  %v3531_v30 = vld [vmem:[%s8578_s14 + $0x258] sm:$0xff]  ;;  %v3577_v26 = vld [vmem:[%s8578_s14 + $0x3c8] sm:$0xff] }
 0x92c   : > { %6834 = vmatmul.mubr.msk.f32.vlgmr.msra.gmra.mrb[26].mxu0 %vm547_vm1, %v7938_v44  ;;  %7187 = vmatpush3.bf16.msra.mxu1 %v7186_v37  ;;  %v3482_v44 = vld [vmem:[%s8578_s14 + $0xd0] sm:$0xff] }
 0x92d   : > { %7232 = vmatpush3.bf16.msra.mxu0 %v7231_v38  ;;  %7188 = vmatprep.subr.bf16.mxu1 %v7420_v3  ;;  %v7204_v1 = vpack.c.bf16 %v3483_v61, %v3482_v44  ;;  %v7279_v38 = vpack.c.bf16 %v3533_v35, %v3532_v34  ;;  %v3548_v44 = vld [vmem:[%s8578_s14 + $0x2e0] sm:$0xff]  ;;  %v3549_v61 = vld [vmem:[%s8578_s14 + $0x2e8] sm:$0xff] }
 0x92e   : > { %7233 = vmatprep.subr.bf16.mxu0 %v7420_v3  ;;  %6855 = vmatprep.mubr.msk.f32.mxu0 %vm7421_vm0, %v7422_v6  ;;  %v7303_v0 = vpack.c.bf16 %v3549_v61, %v3548_v44  ;;  %v3536_v34 = vld [vmem:[%s8578_s14 + $0x280] sm:$0xff]  ;;  %v3537_v35 = vld [vmem:[%s8578_s14 + $0x288] sm:$0xff]  ;;  %v3582_v44 = vld [vmem:[%s8578_s14 + $0x3f0] sm:$0xff] }
 0x92f   : > { %6768 = vmatmul.mubr.msk.f32.vlgmr.msra.gmra.mrb[36].mxu1 %vm547_vm1, %v3307_v46  ;;  %v3354_v46 = vcombine.high %v7922_v33, %v7922_v33  ;;  %v3583_v61 = vld [vmem:[%s8578_s14 + $0x3f8] sm:$0xff] }
 0x930   : > { %7190 = vmatpush3.bf16.msra.mxu1 %v7189_v45  ;;  %6778 = vmatprep.mubr.msk.f32.mxu1 %vm7421_vm0, %v7422_v6  ;;  %v7237_v45 = vpack.c.bf16 %v3505_v40, %v3504_v39  ;;  %v7285_v39 = vpack.c.bf16 %v3537_v35, %v3536_v34  ;;  %v3403_v40 = vcombine.high %v7989_v11, %v7989_v11 }
 0x931   : > { %7235 = vmatpush3.bf16.msra.mxu0 %v7234_v47  ;;  %7191 = vmatprep.subr.bf16.mxu1 %v7420_v3  ;;  %v7282_v47 = vpack.c.bf16 %v3535_v42, %v3534_v41  ;;  %v3538_v42 = vld [vmem:[%s8578_s14 + $0x290] sm:$0xff] }
 0x932   : > { %7242 = vmatprep.subr.bf16.mxu0 %v7420_v3 }
 0x934   : > { %6856 = vmatmul.mubr.msk.f32.vlgmr.msra.gmra.mrb[28].mxu0 %vm547_vm1, %v3356_v55  ;;  %7193 = vmatpush3.bf16.msra.mxu1 %v7192_v63  ;;  %v3542_v55 = vld [vmem:[%s8578_s14 + $0x2b0] sm:$0xff] }
 0x935   : > { %7244 = vmatpush3.bf16.msra.mxu0 %v7243_v52  ;;  %7200 = vmatprep.subr.bf16.mxu1 %v7420_v3  ;;  %v3512_v52 = vld [vmem:[%s8578_s14 + $0x1c0] sm:$0xff] }
 0x936   : > { %7245 = vmatprep.subr.bf16.mxu0 %v7420_v3  ;;  %6877 = vmatprep.mubr.msk.f32.mxu0 %vm7421_vm0, %v7422_v6  ;;  %v7249_v56 = vpack.c.bf16 %v3513_v53, %v3512_v52 }
 0x937   : > { %6779 = vmatmul.mubr.msk.f32.vlgmr.msra.gmra.mrb[38].mxu1 %vm547_vm1, %v7947_v48  ;;  %v3524_v48 = vld [vmem:[%s8578_s14 + $0x220] sm:$0xff] }
 0x938   : > { %7202 = vmatpush3.bf16.msra.mxu1 %v7201_v58  ;;  %6800 = vmatprep.mubr.msk.f32.mxu1 %vm7421_vm0, %v7422_v6  ;;  %v7267_v25 = vpack.c.bf16 %v3525_v23, %v3524_v48  ;;  %v7294_v58 = vpack.c.bf16 %v3543_v13, %v3542_v55  ;;  %v3528_v23 = vld [vmem:[%s8578_s14 + $0x240] sm:$0xff]  ;;  %v3581_v13 = vld [vmem:[%s8578_s14 + $0x3e8] sm:$0xff] }
 0x939   : > { %7247 = vmatpush3.bf16.msra.mxu0 %v7246_v59  ;;  %7203 = vmatprep.subr.bf16.mxu1 %v7420_v3  ;;  %v3515_v59 = vld [vmem:[%s8578_s14 + $0x1d8] sm:$0xff]  ;;  %v3580_v55 = vld [vmem:[%s8578_s14 + $0x3e0] sm:$0xff] }
 0x93a   : > { %7254 = vmatprep.subr.bf16.mxu0 %v7420_v3 }
 0x93c   : > { %6878 = vmatmul.mubr.msk.f32.vlgmr.msra.gmra.mrb[30].mxu0 %vm547_vm1, %v7972_v57  ;;  %7205 = vmatpush3.bf16.msra.mxu1 %v7204_v1  ;;  %v3498_v57 = vld [vmem:[%s8578_s14 + $0x150] sm:$0xff]  ;;  %v3520_v1 = vld [vmem:[%s8578_s14 + $0x200] sm:$0xff] }
 0x93d   : > { %7256 = vmatpush3.bf16.msra.mxu0 %v7255_v2  ;;  %7212 = vmatprep.subr.bf16.mxu1 %v7420_v3  ;;  %v7228_v37 = vpack.c.bf16 %v3499_v32, %v3498_v57  ;;  %v3521_v2 = vld [vmem:[%s8578_s14 + $0x208] sm:$0xff] }
 0x93e   : > { %7257 = vmatprep.subr.bf16.mxu0 %v7420_v3  ;;  %6899 = vmatprep.mubr.msk.f32.mxu0 %vm7421_vm0, %v7422_v6  ;;  %v7261_v10 = vpack.c.bf16 %v3521_v2, %v3520_v1  ;;  %v7354_v1 = vpack.c.bf16 %v3583_v61, %v3582_v44  ;;  %v3554_v2 = vld [vmem:[%s8578_s14 + $0x310] sm:$0xff] }
 0x93f   : > { %6801 = vmatmul.mubr.msk.f32.vlgmr.msra.gmra.mrb[40].mxu1 %vm547_vm1, %v3306_v16  ;;  %v3522_v16 = vld [vmem:[%s8578_s14 + $0x210] sm:$0xff] }
 0x940   : > { %7214 = vmatpush3.bf16.msra.mxu1 %v7213_v14  ;;  %6822 = vmatprep.mubr.msk.f32.mxu1 %vm7421_vm0, %v7422_v6  ;;  %v7306_v14 = vpack.c.bf16 %v3551_v8, %v3550_v7  ;;  %v3555_v7 = vld [vmem:[%s8578_s14 + $0x318] sm:$0xff]  ;;  %v3560_v8 = vld [vmem:[%s8578_s14 + $0x340] sm:$0xff] }
 0x941   : > { %7259 = vmatpush3.bf16.msra.mxu0 %v7258_v17  ;;  %7215 = vmatprep.subr.bf16.mxu1 %v7420_v3  ;;  %v3523_v17 = vld [vmem:[%s8578_s14 + $0x218] sm:$0xff] }
 0x942   : > { %7266 = vmatprep.subr.bf16.mxu0 %v7420_v3  ;;  %v7264_v22 = vpack.c.bf16 %v3523_v17, %v3522_v16  ;;  %v3562_v16 = vld [vmem:[%s8578_s14 + $0x350] sm:$0xff]  ;;  %v3563_v17 = vld [vmem:[%s8578_s14 + $0x358] sm:$0xff] }
 0x944   : > { %6900 = vmatmul.mubr.msk.f32.vlgmr.msra.gmra.mrb[32].mxu0 %vm547_vm1, %v3357_v28  ;;  %7217 = vmatpush3.bf16.msra.mxu1 %v7216_v24  ;;  %v3529_v24 = vld [vmem:[%s8578_s14 + $0x248] sm:$0xff] }
 0x945   : > { %7268 = vmatpush3.bf16.msra.mxu0 %v7267_v25  ;;  %7224 = vmatprep.subr.bf16.mxu1 %v7420_v3  ;;  %v3406_v25 = vcombine.high %v8028_v36, %v8028_v36  ;;  %v7273_v28 = vpack.c.bf16 %v3529_v24, %v3528_v23  ;;  %v3570_v23 = vld [vmem:[%s8578_s14 + $0x390] sm:$0xff]  ;;  %v3571_v24 = vld [vmem:[%s8578_s14 + $0x398] sm:$0xff] }
 0x946   : > { %7269 = vmatprep.subr.bf16.mxu0 %v7420_v3  ;;  %6921 = vmatprep.mubr.msk.f32.mxu0 %vm7421_vm0, %v7422_v6 }
 0x947   : > { %6823 = vmatmul.mubr.msk.f32.vlgmr.msra.gmra.mrb[42].mxu1 %vm547_vm1, %v7922_v33  ;;  %v3540_v33 = vld [vmem:[%s8578_s14 + $0x2a0] sm:$0xff] }
 0x948   : > { %7226 = vmatpush3.bf16.msra.mxu1 %v7225_v15  ;;  %6844 = vmatprep.mubr.msk.f32.mxu1 %vm7421_vm0, %v7422_v6  ;;  %v7291_v63 = vpack.c.bf16 %v3541_v49, %v3540_v33  ;;  %v3564_v15 = vld [vmem:[%s8578_s14 + $0x360] sm:$0xff]  ;;  %v3545_v33 = vld [vmem:[%s8578_s14 + $0x2c8] sm:$0xff]  ;;  %v3454_v49 = vcombine.high %v7985_v5, %v7985_v5 }
 0x949   : > { %7271 = vmatpush3.bf16.msra.mxu0 %v7270_v31  ;;  %7227 = vmatprep.subr.bf16.mxu1 %v7420_v3  ;;  %v3565_v31 = vld [vmem:[%s8578_s14 + $0x368] sm:$0xff]  ;;  %v7297_v52 = vpack.c.bf16 %v3545_v33, %v3544_v9 }
 0x94a   : > { %7278 = vmatprep.subr.bf16.mxu0 %v7420_v3  ;;  %v7327_v32 = vpack.c.bf16 %v3565_v31, %v3564_v15 }
 0x94c   : > { %6922 = vmatmul.mubr.msk.f32.vlgmr.msra.gmra.mrb[34].mxu0 %vm547_vm1, %v8014_v21  ;;  %7229 = vmatpush3.bf16.msra.mxu1 %v7228_v37  ;;  %v3514_v21 = vld [vmem:[%s8578_s14 + $0x1d0] sm:$0xff] }
 0x94d   : > { %7280 = vmatpush3.bf16.msra.mxu0 %v7279_v38  ;;  %7236 = vmatprep.subr.bf16.mxu1 %v7420_v3  ;;  %v7252_v62 = vpack.c.bf16 %v3515_v59, %v3514_v21  ;;  %v3566_v37 = vld [vmem:[%s8578_s14 + $0x370] sm:$0xff]  ;;  %v3567_v38 = vld [vmem:[%s8578_s14 + $0x378] sm:$0xff]  ;;  %v3552_v21 = vld [vmem:[%s8578_s14 + $0x300] sm:$0xff] }
 0x94e   : > { %7281 = vmatprep.subr.bf16.mxu0 %v7420_v3  ;;  %6943 = vmatprep.mubr.msk.f32.mxu0 %vm7421_vm0, %v7422_v6  ;;  %v7330_v41 = vpack.c.bf16 %v3567_v38, %v3566_v37  ;;  %v3553_v59 = vld [vmem:[%s8578_s14 + $0x308] sm:$0xff] }
 0x94f   : > { %6845 = vmatmul.mubr.msk.f32.vlgmr.msra.gmra.mrb[44].mxu1 %vm547_vm1, %v3354_v46  ;;  %v3573_v46 = vld [vmem:[%s8578_s14 + $0x3a8] sm:$0xff] }
 0x950   : > { %7238 = vmatpush3.bf16.msra.mxu1 %v7237_v45  ;;  %6866 = vmatprep.mubr.msk.f32.mxu1 %vm7421_vm0, %v7422_v6  ;;  %v3539_v45 = vld [vmem:[%s8578_s14 + $0x298] sm:$0xff] }
 0x951   : > { %7283 = vmatpush3.bf16.msra.mxu0 %v7282_v47  ;;  %7239 = vmatprep.subr.bf16.mxu1 %v7420_v3  ;;  %v7288_v47 = vpack.c.bf16 %v3539_v45, %v3538_v42 }
 0x952   : > { %7290 = vmatprep.subr.bf16.mxu0 %v7420_v3 }
 0x954   : > { %6944 = vmatmul.mubr.msk.f32.vlgmr.msra.gmra.mrb[36].mxu0 %vm547_vm1, %v3405_v54  ;;  %7241 = vmatpush3.bf16.msra.mxu1 %v7240_v51  ;;  %v3574_v51 = vld [vmem:[%s8578_s14 + $0x3b0] sm:$0xff]  ;;  %v3547_v54 = vld [vmem:[%s8578_s14 + $0x2d8] sm:$0xff] }
 0x955   : > { %7292 = vmatpush3.bf16.msra.mxu0 %v7291_v63  ;;  %7248 = vmatprep.subr.bf16.mxu1 %v7420_v3  ;;  %v3575_v63 = vld [vmem:[%s8578_s14 + $0x3b8] sm:$0xff] }
 0x956   : > { %7293 = vmatprep.subr.bf16.mxu0 %v7420_v3  ;;  %6965 = vmatprep.mubr.msk.f32.mxu0 %vm7421_vm0, %v7422_v6  ;;  %v7342_v53 = vpack.c.bf16 %v3575_v63, %v3574_v51 }
 0x957   : > { %6867 = vmatmul.mubr.msk.f32.vlgmr.msra.gmra.mrb[46].mxu1 %vm547_vm1, %v7935_v43  ;;  %v3556_v43 = vld [vmem:[%s8578_s14 + $0x320] sm:$0xff] }
 0x958   : > { %7250 = vmatpush3.bf16.msra.mxu1 %v7249_v56  ;;  %6888 = vmatprep.mubr.msk.f32.mxu1 %vm7421_vm0, %v7422_v6  ;;  %v7315_v48 = vpack.c.bf16 %v3557_v19, %v3556_v43  ;;  %v7324_v43 = vpack.c.bf16 %v3563_v17, %v3562_v16  ;;  %v3569_v19 = vld [vmem:[%s8578_s14 + $0x388] sm:$0xff] }
 0x959   : > { %7295 = vmatpush3.bf16.msra.mxu0 %v7294_v58  ;;  %7251 = vmatprep.subr.bf16.mxu1 %v7420_v3  ;;  %v7351_v58 = vpack.c.bf16 %v3581_v13, %v3580_v55 }
 0x95a   : > { %7302 = vmatprep.subr.bf16.mxu0 %v7420_v3 }
 0x95c   : > { %6966 = vmatmul.mubr.msk.f32.vlgmr.msra.gmra.mrb[38].mxu0 %vm547_vm1, %v8028_v36  ;;  %7253 = vmatpush3.bf16.msra.mxu1 %v7252_v62  ;;  %v3530_v36 = vld [vmem:[%s8578_s14 + $0x250] sm:$0xff]  ;;  %v7309_v62 = vpack.c.bf16 %v3553_v59, %v3552_v21 }
 0x95d   : > { %7304 = vmatpush3.bf16.msra.mxu0 %v7303_v0  ;;  %7260 = vmatprep.subr.bf16.mxu1 %v7420_v3  ;;  %v7276_v57 = vpack.c.bf16 %v3531_v30, %v3530_v36  ;;  %v3404_v0 = vcombine.high %v8011_v20, %v8011_v20  ;;  %v3453_v30 = vcombine.high %v7982_v4, %v7982_v4 }
 0x95e   : > { %7305 = vmatprep.subr.bf16.mxu0 %v7420_v3  ;;  %6987 = vmatprep.mubr.msk.f32.mxu0 %vm7421_vm0, %v7422_v6 }
 0x95f   : > { %6889 = vmatmul.mubr.msk.f32.vlgmr.msra.gmra.mrb[48].mxu1 %vm547_vm1, %v3355_v12  ;;  %v3455_v12 = vcombine.high %v8008_v18, %v8008_v18 }
 0x960   : > { %7262 = vmatpush3.bf16.msra.mxu1 %v7261_v10  ;;  %6910 = vmatprep.mubr.msk.f32.mxu1 %vm7421_vm0, %v7422_v6  ;;  %v3561_v10 = vld [vmem:[%s8578_s14 + $0x348] sm:$0xff] }
 0x961   : > { %7307 = vmatpush3.bf16.msra.mxu0 %v7306_v14  ;;  %7263 = vmatprep.subr.bf16.mxu1 %v7420_v3  ;;  %v7321_v14 = vpack.c.bf16 %v3561_v10, %v3560_v8 }
 0x962   : > { %7314 = vmatprep.subr.bf16.mxu0 %v7420_v3 }
 0x964   : > { %6988 = vmatmul.mubr.msk.f32.vlgmr.msra.gmra.mrb[40].mxu0 %vm547_vm1, %v3406_v25  ;;  %7265 = vmatpush3.bf16.msra.mxu1 %v7264_v22  ;;  %v7336_v25 = vpack.c.bf16 %v3571_v24, %v3570_v23 }
 0x965   : > { %7316 = vmatpush3.bf16.msra.mxu0 %v7315_v48  ;;  %7272 = vmatprep.subr.bf16.mxu1 %v7420_v3  ;;  %v3452_v48 = vcombine.high %v7976_v60, %v7976_v60 }
 0x966   : > { %7317 = vmatprep.subr.bf16.mxu0 %v7420_v3  ;;  %7009 = vmatprep.mubr.msk.f32.mxu0 %vm7421_vm0, %v7422_v6 }
 0x967   : > { %6911 = vmatmul.mubr.msk.f32.vlgmr.msra.gmra.mrb[50].mxu1 %vm547_vm1, %v7989_v11  ;;  %v3572_v11 = vld [vmem:[%s8578_s14 + $0x3a0] sm:$0xff] }
 0x968   : > { %7274 = vmatpush3.bf16.msra.mxu1 %v7273_v28  ;;  %6932 = vmatprep.mubr.msk.f32.mxu1 %vm7421_vm0, %v7422_v6  ;;  %v7339_v50 = vpack.c.bf16 %v3573_v46, %v3572_v11  ;;  %v3578_v28 = vld [vmem:[%s8578_s14 + $0x3d0] sm:$0xff] }
 0x969   : > { %7319 = vmatpush3.bf16.msra.mxu0 %v7318_v29  ;;  %7275 = vmatprep.subr.bf16.mxu1 %v7420_v3  ;;  %v3579_v29 = vld [vmem:[%s8578_s14 + $0x3d8] sm:$0xff] }
 0x96a   : > { %7326 = vmatprep.subr.bf16.mxu0 %v7420_v3  ;;  %v7348_v36 = vpack.c.bf16 %v3579_v29, %v3578_v28 }
 0x96c   : > { %7010 = vmatmul.mubr.msk.f32.vlgmr.msra.gmra.mrb[42].mxu0 %vm547_vm1, %v7985_v5  ;;  %7277 = vmatpush3.bf16.msra.mxu1 %v7276_v57  ;;  %v3546_v5 = vld [vmem:[%s8578_s14 + $0x2d0] sm:$0xff] }
 0x96d   : > { %7328 = vmatpush3.bf16.msra.mxu0 %v7327_v32  ;;  %7284 = vmatprep.subr.bf16.mxu1 %v7420_v3  ;;  %v7300_v56 = vpack.c.bf16 %v3547_v54, %v3546_v5 }
 0x96e   : > { %7329 = vmatprep.subr.bf16.mxu0 %v7420_v3  ;;  %7031 = vmatprep.mubr.msk.f32.mxu0 %vm7421_vm0, %v7422_v6 }
 0x96f   : > { %6933 = vmatmul.mubr.msk.f32.vlgmr.msra.gmra.mrb[52].mxu1 %vm547_vm1, %v3403_v40 }
 0x970   : > { %7286 = vmatpush3.bf16.msra.mxu1 %v7285_v39  ;;  %6954 = vmatprep.mubr.msk.f32.mxu1 %vm7421_vm0, %v7422_v6 }
 0x971   : > { %7331 = vmatpush3.bf16.msra.mxu0 %v7330_v41  ;;  %7287 = vmatprep.subr.bf16.mxu1 %v7420_v3 }
 0x972   : > { %7338 = vmatprep.subr.bf16.mxu0 %v7420_v3 }
 0x974   : > { %7032 = vmatmul.mubr.msk.f32.vlgmr.msra.gmra.mrb[44].mxu0 %vm547_vm1, %v3454_v49  ;;  %7289 = vmatpush3.bf16.msra.mxu1 %v7288_v47 }
 0x975   : > { %7340 = vmatpush3.bf16.msra.mxu0 %v7339_v50  ;;  %7296 = vmatprep.subr.bf16.mxu1 %v7420_v3 }
 0x976   : > { %7341 = vmatprep.subr.bf16.mxu0 %v7420_v3  ;;  %7053 = vmatprep.mubr.msk.f32.mxu0 %vm7421_vm0, %v7422_v6 }
 0x977   : > { %6955 = vmatmul.mubr.msk.f32.vlgmr.msra.gmra.mrb[54].mxu1 %vm547_vm1, %v8011_v20  ;;  %v7312_v20 = vpack.c.bf16 %v3555_v7, %v3554_v2 }
 0x978   : > { %7298 = vmatpush3.bf16.msra.mxu1 %v7297_v52  ;;  %6976 = vmatprep.mubr.msk.f32.mxu1 %vm7421_vm0, %v7422_v6 }
 0x979   : > { %7343 = vmatpush3.bf16.msra.mxu0 %v7342_v53  ;;  %7299 = vmatprep.subr.bf16.mxu1 %v7420_v3 }
 0x97a   : > { %7350 = vmatprep.subr.bf16.mxu0 %v7420_v3 }
 0x97c   : > { %7054 = vmatmul.mubr.msk.f32.vlgmr.msra.gmra.mrb[46].mxu0 %vm547_vm1, %v8008_v18  ;;  %7301 = vmatpush3.bf16.msra.mxu1 %v7300_v56  ;;  %v3568_v18 = vld [vmem:[%s8578_s14 + $0x380] sm:$0xff] }
 0x97d   : > { %7352 = vmatpush3.bf16.msra.mxu0 %v7351_v58  ;;  %7308 = vmatprep.subr.bf16.mxu1 %v7420_v3  ;;  %v7333_v22 = vpack.c.bf16 %v3569_v19, %v3568_v18 }
 0x97e   : > { %7353 = vmatprep.subr.bf16.mxu0 %v7420_v3  ;;  %7075 = vmatprep.mubr.msk.f32.mxu0 %vm7421_vm0, %v7422_v6 }
 0x97f   : > { %6977 = vmatmul.mubr.msk.f32.vlgmr.msra.gmra.mrb[56].mxu1 %vm547_vm1, %v3404_v0 }
 0x980   : > { %7310 = vmatpush3.bf16.msra.mxu1 %v7309_v62  ;;  %6998 = vmatprep.mubr.msk.f32.mxu1 %vm7421_vm0, %v7422_v6 }
 0x981   : > { %7355 = vmatpush3.bf16.msra.mxu0 %v7354_v1  ;;  %7311 = vmatprep.subr.bf16.mxu1 %v7420_v3 }
 0x984   : > { %7076 = vmatmul.mubr.msk.f32.vlgmr.msra.gmra.mrb[48].mxu0 %vm547_vm1, %v3455_v12  ;;  %7313 = vmatpush3.bf16.msra.mxu1 %v7312_v20 }
 0x985   : > { %7320 = vmatprep.subr.bf16.mxu1 %v7420_v3 }
 0x987   : > { %6999 = vmatmul.mubr.msk.f32.vlgmr.msra.gmra.mrb[58].mxu1 %vm547_vm1, %v7976_v60  ;;  %v3576_v60 = vld [vmem:[%s8578_s14 + $0x3c0] sm:$0xff] }
 0x988   : > { %7322 = vmatpush3.bf16.msra.mxu1 %v7321_v14  ;;  %7020 = vmatprep.mubr.msk.f32.mxu1 %vm7421_vm0, %v7422_v6  ;;  %v7345_v27 = vpack.c.bf16 %v3577_v26, %v3576_v60 }
 0x989   : > { %7323 = vmatprep.subr.bf16.mxu1 %v7420_v3 }
 0x98c   : > { %7325 = vmatpush3.bf16.msra.mxu1 %v7324_v43 }
 0x98d   : > { %7332 = vmatprep.subr.bf16.mxu1 %v7420_v3 }
 0x98f   : > { %7021 = vmatmul.mubr.msk.f32.vlgmr.msra.gmra.mrb[60].mxu1 %vm547_vm1, %v3452_v48 }
 0x990   : > { %7334 = vmatpush3.bf16.msra.mxu1 %v7333_v22  ;;  %7042 = vmatprep.mubr.msk.f32.mxu1 %vm7421_vm0, %v7422_v6 }
 0x991   : > { %7335 = vmatprep.subr.bf16.mxu1 %v7420_v3 }
 0x994   : > { %7337 = vmatpush3.bf16.msra.mxu1 %v7336_v25 }
 0x995   : > { %7344 = vmatprep.subr.bf16.mxu1 %v7420_v3 }
 0x997   : > { %7043 = vmatmul.mubr.msk.f32.vlgmr.msra.gmra.mrb[62].mxu1 %vm547_vm1, %v7982_v4 }
 0x998   : > { %7346 = vmatpush3.bf16.msra.mxu1 %v7345_v27  ;;  %7064 = vmatprep.mubr.msk.f32.mxu1 %vm7421_vm0, %v7422_v6  ;;  %vm5924_vm0 = vcmask 1042434  }
 0x999   : > { %7347 = vmatprep.subr.bf16.mxu1 %v7420_v3 }
 0x99c   : > { %7349 = vmatpush3.bf16.msra.mxu1 %v7348_v36 }
 0x99f   : > { %7065 = vmatmul.mubr.msk.f32.vlgmr.msra.gmra.mrb[64].mxu1 %vm547_vm1, %v3453_v30  ;;  %vm5927_vm1 = vcmask 1043459  }
 0x9ea   : > { %v3652_v15 = vpop.f32.mrb[30].mxu1 }
 0x9eb   : > { %v6736_v31 = vpop.f32.mrb[31].mxu1 }
 0x9ee   : > { %v4012_v57 = vpop.f32.mrb[22].mxu0 }
 0x9ef   : > { %v6791_v32 = vpop.f32.mrb[23].mxu0  ;;  %v5932_v52 = vrot.slane %v4012_v57, 3 }
 0x9f2   : > { %v3724_v34 = vpop.f32.mrb[32].mxu1 }
 0x9f3   : > { %v5920_v35 = vrot.slane %v3724_v34, 7  ;;  %v6747_v37 = vpop.f32.mrb[33].mxu1 }
 0x9f5   : > { %v5922_v38 = vsel %vm5921_vm3, %v5920_v35, %v3652_v15 }
 0x9f7   : > { %v4156_v39 = vpop.f32.mrb[24].mxu0 }
 0x9f8   : > { %v6813_v6 = vpop.f32.mrb[25].mxu0  ;;  %v5938_v21 = vrot.slane %v4156_v39, 1 }
 0x9fa   : > { %v3796_v40 = vpop.f32.mrb[34].mxu1 }
 0x9fb   : > { %v5923_v3 = vrot.slane %v3796_v40, 6  ;;  %v6758_v41 = vpop.f32.mrb[35].mxu1 }
 0x9fd   : > { %v5925_v4 = vsel %vm5924_vm0, %v5923_v3, %v5922_v38 }
 0x9ff   : > { %v4300_v42 = vpop.f32.mrb[26].mxu0 }
 0xa00   : > { %v6835_v45 = vpop.f32.mrb[27].mxu0  ;;  %v5941_v0 = vrot.slane %v4300_v42, 7 }
 0xa02   : > { %v3868_v11 = vpop.f32.mrb[36].mxu1 }
 0xa03   : > { %v5926_v46 = vrot.slane %v3868_v11, 5  ;;  %v6769_v47 = vpop.f32.mrb[37].mxu1 }
 0xa05   : > { %v5928_v50 = vsel %vm5927_vm1, %v5926_v46, %v5925_v4 }
 0xa07   : > { %v4444_v9 = vpop.f32.mrb[28].mxu0 }
 0xa08   : > { %v6857_v33 = vpop.f32.mrb[29].mxu0  ;;  %v5945_v16 = vrot.slane %v4444_v9, 5 }
 0xa0a   : > { %v3940_v49 = vpop.f32.mrb[38].mxu1 }
 0xa0b   : > { %v5929_v51 = vrot.slane %v3940_v49, 4  ;;  %v6780_v63 = vpop.f32.mrb[39].mxu1 }
 0xa0d   : > { %v5931_v53 = vsel %vm5930_vm4, %v5929_v51, %v5928_v50 }
 0xa0e   : > { %v5934_v5 = vsel %vm5933_vm5, %v5932_v52, %v5931_v53 }
 0xa0f   : > { %v4588_v54 = vpop.f32.mrb[30].mxu0 }
 0xa10   : > { %v6879_v55 = vpop.f32.mrb[31].mxu0  ;;  %v5949_v24 = vrot.slane %v4588_v54, 3 }
 0xa12   : > { %v4084_v13 = vpop.f32.mrb[40].mxu1 }
 0xa13   : > { %v5935_v56 = vrot.slane %v4084_v13, 2  ;;  %v6802_v58 = vpop.f32.mrb[41].mxu1 }
 0xa15   : > { %v5937_v59 = vsel %vm5936_vm6, %v5935_v56, %v5934_v5 }
 0xa16   : > { %v5940_v44 = vsel %vm5939_vm7, %v5938_v21, %v5937_v59 }
 0xa17   : > { %v4732_v61 = vpop.f32.mrb[32].mxu0  ;;  %v5988_v57 = vsel %vm5987_vm8, %v5940_v44, 0.0 }
 0xa18   : > { %v6901_v62 = vpop.f32.mrb[33].mxu0  ;;  %v5953_v30 = vrot.slane %v4732_v61, 1 }
 0xa1a   : > { %v4228_v1 = vpop.f32.mrb[42].mxu1 }
 0xa1b   : > { %v5942_v2 = vsel %vm5921_vm3, %v5941_v0, %v4228_v1  ;;  %v6824_v7 = vpop.f32.mrb[43].mxu1 }
 0xa1f   : > { %v4876_v20 = vpop.f32.mrb[34].mxu0 }
 0xa20   : > { %v6923_v8 = vpop.f32.mrb[35].mxu0  ;;  %v5955_v38 = vrot.slane %v4876_v20, 7 }
 0xa22   : > { %v4372_v10 = vpop.f32.mrb[44].mxu1 }
 0xa23   : > { %v5943_v12 = vrot.slane %v4372_v10, 6  ;;  %v6846_v14 = vpop.f32.mrb[45].mxu1 }
 0xa25   : > { %v5944_v17 = vsel %vm5924_vm0, %v5943_v12, %v5942_v2 }
 0xa26   : > { %v5946_v43 = vsel %vm5927_vm1, %v5945_v16, %v5944_v17 }
 0xa27   : > { %v5020_v18 = vpop.f32.mrb[36].mxu0 }
 0xa28   : > { %v6945_v19 = vpop.f32.mrb[37].mxu0  ;;  %v5959_v11 = vrot.slane %v5020_v18, 5 }
 0xa2a   : > { %v4516_v22 = vpop.f32.mrb[46].mxu1 }
 0xa2b   : > { %v5947_v48 = vrot.slane %v4516_v22, 4  ;;  %v6868_v23 = vpop.f32.mrb[47].mxu1 }
 0xa2d   : > { %v5948_v25 = vsel %vm5930_vm4, %v5947_v48, %v5946_v43 }
 0xa2e   : > { %v5950_v60 = vsel %vm5933_vm5, %v5949_v24, %v5948_v25 }
 0xa2f   : > { %v5164_v26 = vpop.f32.mrb[38].mxu0 }
 0xa30   : > { %v6967_v27 = vpop.f32.mrb[39].mxu0  ;;  %v5963_v63 = vrot.slane %v5164_v26, 3 }
 0xa32   : > { %v4660_v28 = vpop.f32.mrb[48].mxu1 }
 0xa33   : > { %v5951_v29 = vrot.slane %v4660_v28, 2  ;;  %v6890_v36 = vpop.f32.mrb[49].mxu1 }
 0xa35   : > { %v5952_v15 = vsel %vm5936_vm6, %v5951_v29, %v5950_v60 }
 0xa36   : > { %v5954_v31 = vsel %vm5939_vm7, %v5953_v30, %v5952_v15 }
 0xa37   : > { %v5989_v32 = vsel %vm5987_vm8, %v5954_v31, 0.0  ;;  %v5308_v34 = vpop.f32.mrb[40].mxu0 }
 0xa38   : > { %v5990_v35 = vadd.f32 %v5989_v32, %v5988_v57  ;;  %v6989_v37 = vpop.f32.mrb[41].mxu0  ;;  %v5967_v58 = vrot.slane %v5308_v34, 1  ;;  %v6001_v34 = vld [vmem:[%s8579_s15] sm:$0x1] }
 0xa3a   : > { %v4804_v39 = vpop.f32.mrb[50].mxu1 }
 0xa3b   : > { %v5956_v6 = vsel %vm5921_vm3, %v5955_v38, %v4804_v39  ;;  %v6912_v40 = vpop.f32.mrb[51].mxu1 }
 0xa3f   : > { %v5452_v3 = vpop.f32.mrb[42].mxu0 }
 0xa40   : > { %v7011_v41 = vpop.f32.mrb[43].mxu0  ;;  %v5969_v1 = vrot.slane %v5452_v3, 7 }
 0xa42   : > { %v4948_v4 = vpop.f32.mrb[52].mxu1 }
 0xa43   : > { %v5957_v42 = vrot.slane %v4948_v4, 6  ;;  %v6934_v45 = vpop.f32.mrb[53].mxu1 }
 0xa45   : > { %v5958_v46 = vsel %vm5924_vm0, %v5957_v42, %v5956_v6 }
 0xa46   : > { %v5960_v47 = vsel %vm5927_vm1, %v5959_v11, %v5958_v46 }
 0xa47   : > { %v5596_v50 = vpop.f32.mrb[44].mxu0 }
 0xa48   : > { %v7033_v9 = vpop.f32.mrb[45].mxu0  ;;  %v5973_v14 = vrot.slane %v5596_v50, 5 }
 0xa4a   : > { %v5092_v33 = vpop.f32.mrb[54].mxu1 }
 0xa4b   : > { %v5961_v49 = vrot.slane %v5092_v33, 4  ;;  %v6956_v51 = vpop.f32.mrb[55].mxu1 }
 0xa4d   : > { %v5962_v52 = vsel %vm5930_vm4, %v5961_v49, %v5960_v47 }
 0xa4e   : > { %v5964_v53 = vsel %vm5933_vm5, %v5963_v63, %v5962_v52 }
 0xa4f   : > { %v5740_v5 = vpop.f32.mrb[46].mxu0 }
 0xa50   : > { %v7055_v54 = vpop.f32.mrb[47].mxu0  ;;  %v5977_v22 = vrot.slane %v5740_v5, 3 }
 0xa52   : > { %v5236_v55 = vpop.f32.mrb[56].mxu1 }
 0xa53   : > { %v5965_v13 = vrot.slane %v5236_v55, 2  ;;  %v6978_v56 = vpop.f32.mrb[57].mxu1 }
 0xa55   : > { %v5966_v21 = vsel %vm5936_vm6, %v5965_v13, %v5964_v53 }
 0xa56   : > { %v5968_v59 = vsel %vm5939_vm7, %v5967_v58, %v5966_v21 }
 0xa57   : > { %v5991_v44 = vsel %vm5987_vm8, %v5968_v59, 0.0  ;;  %v5884_v61 = vpop.f32.mrb[48].mxu0 }
 0xa58   : > { %v5992_v62 = vadd.f32 %v5991_v44, %v5990_v35  ;;  %v7077_v0 = vpop.f32.mrb[49].mxu0  ;;  %v5981_v26 = vrot.slane %v5884_v61, 1 }
 0xa5a   : > { %v5380_v2 = vpop.f32.mrb[58].mxu1 }
 0xa5b   : > { %v5970_v7 = vsel %vm5921_vm3, %v5969_v1, %v5380_v2  ;;  %v7000_v20 = vpop.f32.mrb[59].mxu1 }
 0xa62   : > { %v5524_v8 = vpop.f32.mrb[60].mxu1 }
 0xa63   : > { %v5971_v10 = vrot.slane %v5524_v8, 6  ;;  %v7022_v12 = vpop.f32.mrb[61].mxu1 }
 0xa65   : > { %v5972_v16 = vsel %vm5924_vm0, %v5971_v10, %v5970_v7 }
 0xa66   : > { %v5974_v17 = vsel %vm5927_vm1, %v5973_v14, %v5972_v16 }
 0xa6a   : > { %v5668_v43 = vpop.f32.mrb[62].mxu1 }
 0xa6b   : > { %v5975_v18 = vrot.slane %v5668_v43, 4  ;;  %v7044_v19 = vpop.f32.mrb[63].mxu1 }
 0xa6d   : > { %v5976_v48 = vsel %vm5930_vm4, %v5975_v18, %v5974_v17 }
 0xa6e   : > { %v5978_v23 = vsel %vm5933_vm5, %v5977_v22, %v5976_v48 }
 0xa72   : > { %v5812_v24 = vpop.f32.mrb[64].mxu1 }
 0xa73   : > { %v5979_v25 = vrot.slane %v5812_v24, 2  ;;  %v7066_v60 = vpop.f32.mrb[65].mxu1 }
 0xa75   : > { %v5980_v27 = vsel %vm5936_vm6, %v5979_v25, %v5978_v23 }
 0xa76   : > { %v5982_v28 = vsel %vm5939_vm7, %v5981_v26, %v5980_v27 }
 0xa77   : > { %v5993_v29 = vsel %vm5987_vm8, %v5982_v28, 0.0 }
 0xa78   : > { %v5994_v36 = vadd.f32 %v5993_v29, %v5992_v62 }
 0xa7a   : > { %v5995_v30 = vrot.slane %v5994_v36, 4 }
 0xa7c   : > { %v5996_v15 = vadd.f32 %v5995_v30, %v5994_v36 }
 0xa7e   : > { %v5997_v31 = vrot.slane %v5996_v15, 2 }
 0xa80   : > { %v5998_v57 = vadd.f32 %v5997_v31, %v5996_v15 }
 0xa82   : > { %v5999_v32 = vrot.slane %v5998_v57, 1 }
 0xa84   : > { %v6000_v35 = vadd.f32 %v5999_v32, %v5998_v57 }
 0xa86   : > { %v6002_v37 = vadd.f32 %v6001_v34, %v6000_v35 }
 0xa88   : > { %6004 = vst.msk [vmem:[%s534_s0] sm:$0x1] %vm6003_vm9, %v6002_v37 }
 0xa89 PF: > { %s26_s21 = sadd.s32 1, %s7418_s21  }
 0xa8a   : > { %p23_p4 = scmp.ge.s32.totalorder %s26_s21, 4  }
 0xa8c   :  { %25 = sbr.rel (!%p23_p4) target bundleno = 2 (0x2), region = 123 }

</bundles_post_ra>
